<compile_context>
chip_gen: v5e
topology: v5e:2x2
jax: 0.10.0
libtpu: 0.0.40
codegen_flags: <defaults>
</compile_context>

<pallas_src>
import functools
import math

import jax
import jax.numpy as jnp
from jax.experimental import pallas as pl
from jax.experimental.pallas import tpu as pltpu


EDGE_TYPES = ("local", "medium", "long")


# -----------------------------------------------------------------------------
# Pallas kernel
# -----------------------------------------------------------------------------
def _multiscale_message_kernel(
    x_ref,          # (N, H)   f32
    s_src_ref,      # (E, N)   bf16 one-hot of edge sources
    s_dst_ref,      # (E, N)   bf16 one-hot of edge destinations
    mask_ref,       # (E, 3H)  bf16 lane mask selecting each edge's type block
    attr_aff_ref,   # (E, 3H)  f32  hoisted attr @ Wattr_blk + b1_blk
    wsrc_ref,       # (H, 3H)  f32  [Wsrc_local | Wsrc_medium | Wsrc_long]
    wtgt_ref,       # (H, 3H)  f32
    w2bd_ref,       # (3H, 3H) f32  block-diag(W2_local, W2_medium, W2_long)
    b2_ref,         # (1, 3H)  f32
    wgu_ref,        # (4H, 2H) f32  [Wg^T | Wu1^T] fused
    bgu_ref,        # (1, 2H)  f32
    wu2_ref,        # (H, H)   f32
    bu2_ref,        # (1, H)   f32
    gamma_ref,      # (1, H)   f32
    beta_ref,       # (1, H)   f32
    o_ref,          # (N, H)   f32
    *, eps: float, hidden: int,
):
    f32 = jnp.float32
    hi = jax.lax.Precision.HIGHEST

    x = x_ref[...]
    s_src = s_src_ref[...].astype(f32)
    s_dst = s_dst_ref[...].astype(f32)
    mask = mask_ref[...].astype(f32)

    # Node-side projection for all three edge types at once (reassociated).
    xw_src = jnp.dot(x, wsrc_ref[...], precision=hi, preferred_element_type=f32)  # (N,3H)
    xw_tgt = jnp.dot(x, wtgt_ref[...], precision=hi, preferred_element_type=f32)  # (N,3H)

    # Batched one-hot gathers of the projected features.
    src_g = jnp.dot(s_src, xw_src, precision=hi, preferred_element_type=f32)      # (E,3H)
    tgt_g = jnp.dot(s_dst, xw_tgt, precision=hi, preferred_element_type=f32)      # (E,3H)

    # First message Linear (attr projection + bias hoisted wrapper-side) + ReLU.
    # TODO(synk): nn.Dropout(0.1) inside the message MLPs is identity at inference.
    h1 = jnp.maximum(src_g + tgt_g + attr_aff_ref[...], 0.0)                      # (E,3H)

    # Second message Linear: block-diagonal keeps each edge type in its own
    # H-lane block; the lane mask zeroes the off-type blocks so the scatter
    # only accumulates each edge's true message.
    msg = (jnp.dot(h1, w2bd_ref[...], precision=hi, preferred_element_type=f32)
           + b2_ref[...]) * mask                                                  # (E,3H)

    # Single scatter-add: contract the edge axis of the un-transposed dst
    # one-hot.  Result is directly [agg_local | agg_medium | agg_long].
    agg3 = jax.lax.dot_general(
        s_dst, msg, (((0,), (0,)), ((), ())),
        precision=hi, preferred_element_type=f32)                                 # (N,3H)

    ui = jnp.concatenate([x, agg3], axis=-1)                                      # (N,4H)

    # Fused gate / update-hidden projection, split at a static lane offset.
    gu = jnp.dot(ui, wgu_ref[...], precision=hi, preferred_element_type=f32) + bgu_ref[...]
    gate = jax.nn.sigmoid(gu[:, :hidden])
    u1 = jnp.maximum(gu[:, hidden:], 0.0)
    upd = jnp.dot(u1, wu2_ref[...], precision=hi, preferred_element_type=f32) + bu2_ref[...]

    out = gate * upd + (1.0 - gate) * x

    # LayerNorm (PyTorch semantics: biased variance, eps inside sqrt).
    mu = jnp.mean(out, axis=-1, keepdims=True)
    var = jnp.mean((out - mu) * (out - mu), axis=-1, keepdims=True)
    o_ref[...] = (out - mu) * jax.lax.rsqrt(var + eps) * gamma_ref[...] + beta_ref[...]


# -----------------------------------------------------------------------------
# Wrapper (glue: one-hot / mask / blocked-weight construction, pallas_call)
# -----------------------------------------------------------------------------
def multiscale_message_pallas(x, edge_index, edge_attr, edge_slices, params, *, eps=1e-5):
    n, h = x.shape
    f32 = jnp.float32
    bf16 = jnp.bfloat16
    x_f32 = x.astype(f32)

    # --- per-type weight blocks (static per model) ---------------------------
    wsrc_b, wtgt_b, wattr_b, b1_l, w2_l, b2_l = [], [], [], [], [], []
    for et in EDGE_TYPES:
        p = params[et]
        w1t = p["w1"].T.astype(f32)              # (2H+ed, H)
        wsrc_b.append(w1t[:h])
        wtgt_b.append(w1t[h:2 * h])
        wattr_b.append(w1t[2 * h:])              # (ed, H)
        b1_l.append(p["b1"].astype(f32))
        w2_l.append(p["w2"].T.astype(f32))
        b2_l.append(p["b2"].astype(f32))

    wsrc_blk = jnp.concatenate(wsrc_b, axis=1)   # (H, 3H)
    wtgt_blk = jnp.concatenate(wtgt_b, axis=1)   # (H, 3H)
    wattr_blk = jnp.concatenate(wattr_b, axis=1) # (ed, 3H)
    b1_blk = jnp.concatenate(b1_l)[None, :]      # (1, 3H)
    b2_blk = jnp.concatenate(b2_l)[None, :]      # (1, 3H)
    w2_bd = jax.scipy.linalg.block_diag(*w2_l)   # (3H, 3H)

    # --- batched edge data (static per graph; cache it in real use) ----------
    src_rows, dst_rows, attr_rows, mask_rows = [], [], [], []
    for t, et in enumerate(EDGE_TYPES):
        sl = edge_slices.get(et, slice(0, 0))
        e = sl.stop - sl.start
        if e == 0:
            continue
        edges = edge_index[:, sl]
        src_rows.append(edges[0])
        dst_rows.append(edges[1])
        attr_rows.append(edge_attr[sl].astype(f32))
        m = jnp.zeros((e, 3 * h), bf16).at[:, t * h:(t + 1) * h].set(1.0)
        mask_rows.append(m)

    if src_rows:
        src_idx = jnp.concatenate(src_rows)
        dst_idx = jnp.concatenate(dst_rows)
        attr_all = jnp.concatenate(attr_rows, axis=0)                # (E, ed)
        type_mask = jnp.concatenate(mask_rows, axis=0)               # (E, 3H) bf16
        s_src = jax.nn.one_hot(src_idx, n, dtype=bf16)               # (E, N)
        s_dst = jax.nn.one_hot(dst_idx, n, dtype=bf16)               # (E, N)
        # Hoisted attr projection + first-layer bias (off-type lane blocks are
        # killed by type_mask inside the kernel, so no per-block masking needed).
        attr_aff = attr_all @ wattr_blk + b1_blk                     # (E, 3H)
    else:
        # All edge types empty: one dummy edge that contributes exactly nothing.
        s_src = jnp.zeros((1, n), bf16)
        s_dst = jnp.zeros((1, n), bf16)
        type_mask = jnp.zeros((1, 3 * h), bf16)
        attr_aff = jnp.zeros((1, 3 * h), f32)

    # --- fused update-stage weights ------------------------------------------
    wgu = jnp.concatenate(
        [params["wg"].T.astype(f32), params["wu1"].T.astype(f32)], axis=1)   # (4H, 2H)
    bgu = jnp.concatenate(
        [params["bg"].astype(f32), params["bu1"].astype(f32)])[None, :]      # (1, 2H)
    wu2 = params["wu2"].T.astype(f32)
    bu2 = params["bu2"].astype(f32)[None, :]
    gamma = params["ln_gamma"].astype(f32)[None, :]
    beta = params["ln_beta"].astype(f32)[None, :]

    args = [x_f32, s_src, s_dst, type_mask, attr_aff,
            wsrc_blk, wtgt_blk, w2_bd, b2_blk,
            wgu, bgu, wu2, bu2, gamma, beta]

    kernel = functools.partial(_multiscale_message_kernel, eps=eps, hidden=h)
    vmem = pl.BlockSpec(memory_space=pltpu.MemorySpace.VMEM)

    # Single program, no grid: the whole working set (< 200 KB) fits VMEM and
    # there is a single TensorCore on v5e/v6e, so per-step grid overhead is
    # pure loss at this size.
    return pl.pallas_call(
        kernel,
        out_shape=jax.ShapeDtypeStruct((n, h), f32),
        in_specs=[vmem] * len(args),
        out_specs=vmem,
    )(*args)


# -----------------------------------------------------------------------------
# Pure-JAX reference (mirrors the PyTorch forward) for validation
# -----------------------------------------------------------------------------
def multiscale_message_ref(x, edge_index, edge_attr, edge_slices, params, *, eps=1e-5):
    n, h = x.shape
    aggs = {}
    for et in EDGE_TYPES:
        sl = edge_slices.get(et, slice(0, 0))
        agg = jnp.zeros((n, h), jnp.float32)
        if sl.stop - sl.start > 0:
            edges = edge_index[:, sl]
            attrs = edge_attr[sl]
            source = x[edges[0]]
            target = x[edges[1]]
            mi = jnp.concatenate([source, target, attrs], axis=-1)
            p = params[et]
            h1 = jax.nn.relu(mi @ p["w1"].T + p["b1"])
            msg = h1 @ p["w2"].T + p["b2"]
            agg = agg.at[edges[1]].add(msg)
        aggs[et] = agg
    ui = jnp.concatenate([x, aggs["local"], aggs["medium"], aggs["long"]], axis=-1)
    gate = jax.nn.sigmoid(ui @ params["wg"].T + params["bg"])
    u1 = jax.nn.relu(ui @ params["wu1"].T + params["bu1"])
    upd = u1 @ params["wu2"].T + params["bu2"]
    out = gate * upd + (1.0 - gate) * x
    mu = jnp.mean(out, axis=-1, keepdims=True)
    var = jnp.mean((out - mu) ** 2, axis=-1, keepdims=True)
    return (out - mu) / jnp.sqrt(var + eps) * params["ln_gamma"] + params["ln_beta"]


# -----------------------------------------------------------------------------
# Main
# -----------------------------------------------------------------------------
if __name__ == "__main__":
    # Run wrapper-side / reference matmuls at full f32 accuracy so the
    # comparison against the HIGHEST-precision kernel dots is tight.
    jax.config.update("jax_default_matmul_precision", "highest")

    N, H, EDGE_DIM = 16, 32, 3

    key = jax.random.PRNGKey(0)
    keys = jax.random.split(key, 24)
    ki = iter(range(24))

    def lin_init(kw, kb, out_dim, in_dim):
        s = 1.0 / math.sqrt(in_dim)
        w = jax.random.uniform(kw, (out_dim, in_dim), jnp.float32, -s, s)
        b = jax.random.uniform(kb, (out_dim,), jnp.float32, -s, s)
        return w, b

    params = {}
    for et in EDGE_TYPES:
        w1, b1 = lin_init(keys[next(ki)], keys[next(ki)], H, 2 * H + EDGE_DIM)
        w2, b2 = lin_init(keys[next(ki)], keys[next(ki)], H, H)
        params[et] = {"w1": w1, "b1": b1, "w2": w2, "b2": b2}
    params["wg"], params["bg"] = lin_init(keys[next(ki)], keys[next(ki)], H, 4 * H)
    params["wu1"], params["bu1"] = lin_init(keys[next(ki)], keys[next(ki)], H, 4 * H)
    params["wu2"], params["bu2"] = lin_init(keys[next(ki)], keys[next(ki)], H, H)
    params["ln_gamma"] = jnp.ones((H,), jnp.float32)
    params["ln_beta"] = jnp.zeros((H,), jnp.float32)

    # Multi-scale ring graph: local = self + ±1, medium = ±2, long = +8.
    idx = jnp.arange(N)
    local_src = jnp.concatenate([idx, idx, idx])
    local_dst = jnp.concatenate([idx, (idx + 1) % N, (idx - 1) % N])
    med_src = jnp.concatenate([idx, idx])
    med_dst = jnp.concatenate([(idx + 2) % N, (idx - 2) % N])
    long_src = idx
    long_dst = (idx + 8) % N

    src = jnp.concatenate([local_src, med_src, long_src])
    dst = jnp.concatenate([local_dst, med_dst, long_dst])
    edge_index = jnp.stack([src, dst]).astype(jnp.int32)                 # (2, 96)
    n_local, n_med, n_long = 3 * N, 2 * N, N
    edge_slices = {
        "local": slice(0, n_local),
        "medium": slice(n_local, n_local + n_med),
        "long": slice(n_local + n_med, n_local + n_med + n_long),
    }
    edge_attr = jax.random.normal(
        keys[next(ki)], (n_local + n_med + n_long, EDGE_DIM), jnp.float32)
    x = jax.random.normal(keys[next(ki)], (N, H), jnp.float32)

    out = multiscale_message_pallas(x, edge_index, edge_attr, edge_slices, params)
    out = jax.block_until_ready(out)

    ref = multiscale_message_ref(x, edge_index, edge_attr, edge_slices, params)
    assert out.shape == (N, H)
    max_diff = float(jnp.max(jnp.abs(out - ref)))
    assert jnp.allclose(out, ref, atol=1e-4, rtol=1e-4), f"max abs diff {max_diff}"

    print("KERNEL_OK")
</pallas_src>

<mosaic_0001>
module attributes {stable_mosaic.version = 11 : i64} {
  func.func @_multiscale_message_kernel(%arg0: memref<16x32xf32, #tpu.memory_space<vmem>>, %arg1: memref<96x16xbf16, #tpu.memory_space<vmem>>, %arg2: memref<96x16xbf16, #tpu.memory_space<vmem>>, %arg3: memref<96x96xbf16, #tpu.memory_space<vmem>>, %arg4: memref<96x96xf32, #tpu.memory_space<vmem>>, %arg5: memref<32x96xf32, #tpu.memory_space<vmem>>, %arg6: memref<32x96xf32, #tpu.memory_space<vmem>>, %arg7: memref<96x96xf32, #tpu.memory_space<vmem>>, %arg8: memref<1x96xf32, #tpu.memory_space<vmem>>, %arg9: memref<128x64xf32, #tpu.memory_space<vmem>>, %arg10: memref<1x64xf32, #tpu.memory_space<vmem>>, %arg11: memref<32x32xf32, #tpu.memory_space<vmem>>, %arg12: memref<1x32xf32, #tpu.memory_space<vmem>>, %arg13: memref<1x32xf32, #tpu.memory_space<vmem>>, %arg14: memref<1x32xf32, #tpu.memory_space<vmem>>, %arg15: memref<16x32xf32, #tpu.memory_space<vmem>>) attributes {dimension_semantics = [], scalar_prefetch = 0 : i64, scratch_operands = 0 : i64, tpu.core_type = #tpu.core_type<tc>} {
    %c0 = arith.constant 0 : index
    %c0_0 = arith.constant 0 : index
    %0 = vector.load %arg0[%c0, %c0_0] : memref<16x32xf32, #tpu.memory_space<vmem>>, vector<16x32xf32>
    %c0_1 = arith.constant 0 : index
    %c0_2 = arith.constant 0 : index
    %1 = vector.load %arg1[%c0_1, %c0_2] : memref<96x16xbf16, #tpu.memory_space<vmem>>, vector<96x16xbf16>
    %2 = arith.extf %1 : vector<96x16xbf16> to vector<96x16xf32>
    %c0_3 = arith.constant 0 : index
    %c0_4 = arith.constant 0 : index
    %3 = vector.load %arg2[%c0_3, %c0_4] : memref<96x16xbf16, #tpu.memory_space<vmem>>, vector<96x16xbf16>
    %4 = arith.extf %3 : vector<96x16xbf16> to vector<96x16xf32>
    %c0_5 = arith.constant 0 : index
    %c0_6 = arith.constant 0 : index
    %5 = vector.load %arg3[%c0_5, %c0_6] : memref<96x96xbf16, #tpu.memory_space<vmem>>, vector<96x96xbf16>
    %6 = arith.extf %5 : vector<96x96xbf16> to vector<96x96xf32>
    %c0_7 = arith.constant 0 : index
    %c0_8 = arith.constant 0 : index
    %7 = vector.load %arg5[%c0_7, %c0_8] : memref<32x96xf32, #tpu.memory_space<vmem>>, vector<32x96xf32>
    %cst = arith.constant dense<0.000000e+00> : vector<16x96xf32>
    %8 = tpu.matmul %0, %7, %cst {dimension_numbers = #tpu.dot_dimension_numbers<[1], [0], [0], [1], [0, 0, 1, 1], [], []>, precision = #tpu.contract_precision<fp32>} : vector<16x32xf32>, vector<32x96xf32>, vector<16x96xf32> -> vector<16x96xf32>
    %c0_9 = arith.constant 0 : index
    %c0_10 = arith.constant 0 : index
    %9 = vector.load %arg6[%c0_9, %c0_10] : memref<32x96xf32, #tpu.memory_space<vmem>>, vector<32x96xf32>
    %cst_11 = arith.constant dense<0.000000e+00> : vector<16x96xf32>
    %10 = tpu.matmul %0, %9, %cst_11 {dimension_numbers = #tpu.dot_dimension_numbers<[1], [0], [0], [1], [0, 0, 1, 1], [], []>, precision = #tpu.contract_precision<fp32>} : vector<16x32xf32>, vector<32x96xf32>, vector<16x96xf32> -> vector<16x96xf32>
    %cst_12 = arith.constant dense<0.000000e+00> : vector<96x96xf32>
    %11 = tpu.matmul %2, %8, %cst_12 {dimension_numbers = #tpu.dot_dimension_numbers<[1], [0], [0], [1], [0, 0, 1, 1], [], []>, precision = #tpu.contract_precision<fp32>} : vector<96x16xf32>, vector<16x96xf32>, vector<96x96xf32> -> vector<96x96xf32>
    %cst_13 = arith.constant dense<0.000000e+00> : vector<96x96xf32>
    %12 = tpu.matmul %4, %10, %cst_13 {dimension_numbers = #tpu.dot_dimension_numbers<[1], [0], [0], [1], [0, 0, 1, 1], [], []>, precision = #tpu.contract_precision<fp32>} : vector<96x16xf32>, vector<16x96xf32>, vector<96x96xf32> -> vector<96x96xf32>
    %13 = arith.addf %11, %12 : vector<96x96xf32>
    %c0_14 = arith.constant 0 : index
    %c0_15 = arith.constant 0 : index
    %14 = vector.load %arg4[%c0_14, %c0_15] : memref<96x96xf32, #tpu.memory_space<vmem>>, vector<96x96xf32>
    %15 = arith.addf %13, %14 : vector<96x96xf32>
    %cst_16 = arith.constant 0.000000e+00 : f32
    %16 = vector.broadcast %cst_16 : f32 to vector<96x96xf32>
    %17 = arith.maximumf %15, %16 : vector<96x96xf32>
    %c0_17 = arith.constant 0 : index
    %c0_18 = arith.constant 0 : index
    %18 = vector.load %arg7[%c0_17, %c0_18] : memref<96x96xf32, #tpu.memory_space<vmem>>, vector<96x96xf32>
    %cst_19 = arith.constant dense<0.000000e+00> : vector<96x96xf32>
    %19 = tpu.matmul %17, %18, %cst_19 {dimension_numbers = #tpu.dot_dimension_numbers<[1], [0], [0], [1], [0, 0, 1, 1], [], []>, precision = #tpu.contract_precision<fp32>} : vector<96x96xf32>, vector<96x96xf32>, vector<96x96xf32> -> vector<96x96xf32>
    %c0_20 = arith.constant 0 : index
    %c0_21 = arith.constant 0 : index
    %20 = vector.load %arg8[%c0_20, %c0_21] : memref<1x96xf32, #tpu.memory_space<vmem>>, vector<1x96xf32>
    %21 = vector.broadcast %20 : vector<1x96xf32> to vector<96x96xf32>
    %22 = arith.addf %19, %21 : vector<96x96xf32>
    %23 = arith.mulf %22, %6 : vector<96x96xf32>
    %cst_22 = arith.constant dense<0.000000e+00> : vector<16x96xf32>
    %24 = tpu.matmul %4, %23, %cst_22 {dimension_numbers = #tpu.dot_dimension_numbers<[0], [0], [1], [1], [0, 1, 1, 1], [], []>, precision = #tpu.contract_precision<fp32>} : vector<96x16xf32>, vector<96x96xf32>, vector<16x96xf32> -> vector<16x96xf32>
    %25 = tpu.concatenate %0, %24 in 1 : vector<16x32xf32>, vector<16x96xf32> -> vector<16x128xf32>
    %c0_23 = arith.constant 0 : index
    %c0_24 = arith.constant 0 : index
    %26 = vector.load %arg9[%c0_23, %c0_24] : memref<128x64xf32, #tpu.memory_space<vmem>>, vector<128x64xf32>
    %cst_25 = arith.constant dense<0.000000e+00> : vector<16x64xf32>
    %27 = tpu.matmul %25, %26, %cst_25 {dimension_numbers = #tpu.dot_dimension_numbers<[1], [0], [0], [1], [0, 0, 1, 1], [], []>, precision = #tpu.contract_precision<fp32>} : vector<16x128xf32>, vector<128x64xf32>, vector<16x64xf32> -> vector<16x64xf32>
    %c0_26 = arith.constant 0 : index
    %c0_27 = arith.constant 0 : index
    %28 = vector.load %arg10[%c0_26, %c0_27] : memref<1x64xf32, #tpu.memory_space<vmem>>, vector<1x64xf32>
    %29 = vector.broadcast %28 : vector<1x64xf32> to vector<16x64xf32>
    %30 = arith.addf %27, %29 : vector<16x64xf32>
    %31 = vector.extract_strided_slice %30 {offsets = [0, 0], sizes = [16, 32], strides = [1, 1]} : vector<16x64xf32> to vector<16x32xf32>
    %32 = arith.negf %31 : vector<16x32xf32>
    %33 = math.exp %32 : vector<16x32xf32>
    %cst_28 = arith.constant 1.000000e+00 : f32
    %34 = vector.broadcast %cst_28 : f32 to vector<16x32xf32>
    %35 = arith.addf %34, %33 : vector<16x32xf32>
    %36 = arith.divf %34, %35 : vector<16x32xf32>
    %37 = vector.extract_strided_slice %30 {offsets = [0, 32], sizes = [16, 32], strides = [1, 1]} : vector<16x64xf32> to vector<16x32xf32>
    %cst_29 = arith.constant 0.000000e+00 : f32
    %38 = vector.broadcast %cst_29 : f32 to vector<16x32xf32>
    %39 = arith.maximumf %37, %38 : vector<16x32xf32>
    %c0_30 = arith.constant 0 : index
    %c0_31 = arith.constant 0 : index
    %40 = vector.load %arg11[%c0_30, %c0_31] : memref<32x32xf32, #tpu.memory_space<vmem>>, vector<32x32xf32>
    %cst_32 = arith.constant dense<0.000000e+00> : vector<16x32xf32>
    %41 = tpu.matmul %39, %40, %cst_32 {dimension_numbers = #tpu.dot_dimension_numbers<[1], [0], [0], [1], [0, 0, 1, 1], [], []>, precision = #tpu.contract_precision<fp32>} : vector<16x32xf32>, vector<32x32xf32>, vector<16x32xf32> -> vector<16x32xf32>
    %c0_33 = arith.constant 0 : index
    %c0_34 = arith.constant 0 : index
    %42 = vector.load %arg12[%c0_33, %c0_34] : memref<1x32xf32, #tpu.memory_space<vmem>>, vector<1x32xf32>
    %43 = vector.broadcast %42 : vector<1x32xf32> to vector<16x32xf32>
    %44 = arith.addf %41, %43 : vector<16x32xf32>
    %45 = arith.mulf %36, %44 : vector<16x32xf32>
    %cst_35 = arith.constant 1.000000e+00 : f32
    %46 = vector.broadcast %cst_35 : f32 to vector<16x32xf32>
    %47 = arith.subf %46, %36 : vector<16x32xf32>
    %48 = arith.mulf %47, %0 : vector<16x32xf32>
    %49 = arith.addf %45, %48 : vector<16x32xf32>
    %cst_36 = arith.constant dense<0.000000e+00> : vector<16xf32>
    %50 = vector.multi_reduction <add>, %49, %cst_36 [1] : vector<16x32xf32> to vector<16xf32>
    %51 = vector.shape_cast %50 : vector<16xf32> to vector<16x1xf32>
    %cst_37 = arith.constant 3.200000e+01 : f32
    %52 = vector.broadcast %cst_37 : f32 to vector<16x1xf32>
    %53 = arith.divf %51, %52 : vector<16x1xf32>
    %54 = vector.broadcast %53 : vector<16x1xf32> to vector<16x32xf32>
    %55 = arith.subf %49, %54 : vector<16x32xf32>
    %56 = vector.broadcast %53 : vector<16x1xf32> to vector<16x32xf32>
    %57 = arith.subf %49, %56 : vector<16x32xf32>
    %58 = arith.mulf %55, %57 : vector<16x32xf32>
    %cst_38 = arith.constant dense<0.000000e+00> : vector<16xf32>
    %59 = vector.multi_reduction <add>, %58, %cst_38 [1] : vector<16x32xf32> to vector<16xf32>
    %60 = vector.shape_cast %59 : vector<16xf32> to vector<16x1xf32>
    %cst_39 = arith.constant 3.200000e+01 : f32
    %61 = vector.broadcast %cst_39 : f32 to vector<16x1xf32>
    %62 = arith.divf %60, %61 : vector<16x1xf32>
    %63 = vector.broadcast %53 : vector<16x1xf32> to vector<16x32xf32>
    %64 = arith.subf %49, %63 : vector<16x32xf32>
    %cst_40 = arith.constant 9.99999974E-6 : f32
    %65 = vector.broadcast %cst_40 : f32 to vector<16x1xf32>
    %66 = arith.addf %62, %65 : vector<16x1xf32>
    %67 = math.rsqrt %66 : vector<16x1xf32>
    %68 = vector.broadcast %67 : vector<16x1xf32> to vector<16x32xf32>
    %69 = arith.mulf %64, %68 : vector<16x32xf32>
    %c0_41 = arith.constant 0 : index
    %c0_42 = arith.constant 0 : index
    %70 = vector.load %arg13[%c0_41, %c0_42] : memref<1x32xf32, #tpu.memory_space<vmem>>, vector<1x32xf32>
    %71 = vector.broadcast %70 : vector<1x32xf32> to vector<16x32xf32>
    %72 = arith.mulf %69, %71 : vector<16x32xf32>
    %c0_43 = arith.constant 0 : index
    %c0_44 = arith.constant 0 : index
    %73 = vector.load %arg14[%c0_43, %c0_44] : memref<1x32xf32, #tpu.memory_space<vmem>>, vector<1x32xf32>
    %74 = vector.broadcast %73 : vector<1x32xf32> to vector<16x32xf32>
    %75 = arith.addf %72, %74 : vector<16x32xf32>
    %c0_45 = arith.constant 0 : index
    %c0_46 = arith.constant 0 : index
    %76 = vector.load %arg15[%c0_45, %c0_46] : memref<16x32xf32, #tpu.memory_space<vmem>>, vector<16x32xf32>
    tpu.vector_store %arg15[%c0_45, %c0_46], %75 {strides = array<i32>} : memref<16x32xf32, #tpu.memory_space<vmem>>, vector<16x32xf32>,
    return
  }
}

</mosaic_0001>

<bundles_post_ra>
// kernel: tpu_custom_call.1
= control target key start
LH: loop header
LB: loop body
LE: loop exit
PB: predicated region body
PF: predicated region fallthrough
CT: control target
= control target key end

     0   :  { %20 = vsyncpa [#allocation3], 0  ;;  %s5657_s0 = inlined_call_operand.hbm [shape: f32[16,32], index: 0, kind: input, shape index: {}]   ;;  %s5658_s1 = inlined_call_operand.vmem [shape: bf16[96,16], index: 1, kind: input, shape index: {}]   ;;  %s5659_s2 = inlined_call_operand.vmem [shape: bf16[96,16], index: 2, kind: input, shape index: {}]   ;;  %s5660_s3 = inlined_call_operand.vmem [shape: bf16[96,96], index: 3, kind: input, shape index: {}]   ;;  %s5661_s4 = inlined_call_operand.vmem [shape: f32[96,96], index: 4, kind: input, shape index: {}]   ;;  %s5662_s5 = inlined_call_operand.hbm [shape: f32[32,96], index: 5, kind: input, shape index: {}]   ;;  %s5663_s6 = inlined_call_operand.hbm [shape: f32[32,96], index: 6, kind: input, shape index: {}]   ;;  %s5664_s7 = inlined_call_operand.vmem [shape: f32[96,96], index: 7, kind: input, shape index: {}]   ;;  %s5665_s8 = inlined_call_operand.vmem [shape: f32[1,96], index: 8, kind: input, shape index: {}]   ;;  %s5666_s9 = inlined_call_operand.vmem [shape: f32[128,64], index: 9, kind: input, shape index: {}]   ;;  %s5667_s10 = inlined_call_operand.vmem [shape: f32[1,64], index: 10, kind: input, shape index: {}]   ;;  %s5668_s11 = inlined_call_operand.hbm [shape: f32[32,32], index: 11, kind: input, shape index: {}]   ;;  %s5669_s12 = inlined_call_operand.vmem [shape: f32[1,32], index: 12, kind: input, shape index: {}]   ;;  %s5670_s13 = inlined_call_operand.vmem [shape: f32[1,32], index: 13, kind: input, shape index: {}]   ;;  %s5671_s14 = inlined_call_operand.vmem [shape: f32[1,32], index: 14, kind: input, shape index: {}]   ;;  %s5672_s15 = inlined_call_operand.hbm [shape: f32[16,32], index: 15, kind: output, shape index: {}]  }
   0x1   :  { %21 = vsyncpa [#allocation6], 0 }
   0x2   :  { %22 = vsyncpa [#allocation9], 0 }
   0x3   :  { %23 = vsyncpa [#allocation4], 0  ;;  %s49_s20 = sshll.u32 %s5662_s5, 4  ;;  %s3888_s21 = smov [#allocation5]   ;;  %s50_s20 = int_to_ptr.hbm [resolvable:$true] %s49_s20 }
   0x4   :  { %s51_s22 = sshll.u32 %s3888_s21, 4  ;;  %s28_s25 = sshll.u32 %s5657_s0, 4  ;;  %s52_s22 = int_to_ptr.vmem [resolvable:$true] %s51_s22  ;;  %s29_s25 = int_to_ptr.hbm [resolvable:$true] %s28_s25 }
   0x5   :  { %s3889_s26 = smov 128   ;;  %s3890_s27 = smov 8  }
   0x6   :  { %57 = dma.hbm_to_vmem [thread:$0]  %s50_s20, 512, %s52_s22, [#allocation6], %s3889_s26, %s3889_s26, %s3890_s27  }
   0x7   :  { %s3891_s28 = smov [#allocation2]   ;;  %s62_s5 = sshll.u32 %s5663_s6, 4  ;;  %s63_s5 = int_to_ptr.hbm [resolvable:$true] %s62_s5 }
   0x8   :  { %s30_s29 = sshll.u32 %s3891_s28, 4  ;;  %s83_s18 = sshll.u32 %s5668_s11, 4  ;;  %s31_s29 = int_to_ptr.vmem [resolvable:$true] %s30_s29  ;;  %s84_s18 = int_to_ptr.hbm [resolvable:$true] %s83_s18 }
   0x9   :  { %36 = dma.hbm_to_vmem [thread:$0]  %s29_s25, 256, %s31_s29, [#allocation3], %s3889_s26, %s3889_s26, %s3890_s27  }
   0xa   :  { %s3892_s19 = smov [#allocation7]   ;;  %s3893_s20 = smov [#allocation8]  }
   0xb   :  { %s64_s21 = sshll.u32 %s3892_s19, 4  ;;  %s85_s6 = sshll.u32 %s3893_s20, 4  ;;  %s65_s21 = int_to_ptr.vmem [resolvable:$true] %s64_s21  ;;  %s86_s6 = int_to_ptr.vmem [resolvable:$true] %s85_s6 }
   0xc   :  { %70 = dma.hbm_to_vmem [thread:$0]  %s63_s5, 512, %s65_s21, [#allocation6], %s3889_s26, %s3889_s26, %s3890_s27  }
   0xd   :  { %91 = dma.hbm_to_vmem [thread:$0]  %s84_s18, 512, %s86_s6, [#allocation9], %s3889_s26, %s3889_s26, %s3890_s27  }
   0xe   :  { %3880 = dma.done.wait [#allocation3], 256  }
   0xf   :  { %3881 = vsyncadd [#allocation3], 4294967040 }
  0x10   :  { %3882 = dma.done.wait [#allocation6], 1024  }
  0x11   :  { %3883 = vsyncadd [#allocation6], 4294966272 }
  0x12   :  { %3884 = dma.done.wait [#allocation9], 512  }
  0x13   :  { %3885 = vsyncadd [#allocation9], 4294966784  ;;  %vm192_vm0 = vcmask 261120   ;;  %v191_v0 = vld [vmem:[#allocation5 + $0x18] sm:$0xff]  ;;  %v190_v1 = vld [vmem:[#allocation5 + $0x10] sm:$0xff]  ;;  %vm635_vm1 = vcmask 130048  }
  0x14   :  { %v189_v2 = vld [vmem:[#allocation5 + $0x8] sm:$0xff]  ;;  %v4002_v3 = vand.u32 4294901760, %v191_v0  ;;  %v4004_v4 = vand.u32 4294901760, %v190_v1  ;;  %v188_v6 = vld [vmem:[#allocation5] sm:$0xff]  ;;  %v114_v7 = vld [vmem:[#allocation2] sm:$0xff]  ;;  %vm1760_vm2 = vcmask 785408  }
  0x15   :  { %v4006_v5 = vand.u32 4294901760, %v189_v2  ;;  %v115_v8 = vld [vmem:[#allocation2 + $0x8] sm:$0xff]  ;;  %v4008_v9 = vand.u32 4294901760, %v188_v6  ;;  %v194_v10 = vsel %vm192_vm0, %v114_v7, 0  ;;  %v417_v13 = vld [vmem:[#allocation7 + $0x10] sm:$0xff]  ;;  %v416_v37 = vld [vmem:[#allocation7 + $0x8] sm:$0xff] }
  0x16   :  { %v197_v11 = vsel %vm192_vm0, %v115_v8, 0  ;;  %v418_v12 = vld [vmem:[#allocation7 + $0x18] sm:$0xff]  ;;  %212 = vmatpush.msra.mxu0 %v4002_v3  ;;  %v249_v14 = vsub.f32 %v191_v0, %v4002_v3  ;;  %329 = vmatpush.msra.mxu3 %v4002_v3  ;;  %v255_v15 = vsub.f32 %v190_v1, %v4004_v4  ;;  %v4017_v17 = vand.u32 4294901760, %v194_v10  ;;  %v415_v38 = vld [vmem:[#allocation7] sm:$0xff]  ;;  %s3552_s24 = sshll.u32 %s5672_s15, 4  ;;  %s3553_s24 = int_to_ptr.hbm [resolvable:$true] %s3552_s24 }
  0x17   :  { %v261_v16 = vsub.f32 %v189_v2, %v4006_v5  ;;  %v4020_v18 = vsub.f32 %v188_v6, %v4008_v9  ;;  %v4022_v19 = vand.u32 4294901760, %v197_v11  ;;  %v4024_v20 = vand.u32 4294901760, %v418_v12  ;;  %v3666_v6 = vld [vmem:[%s5659_s2] sm:$0xff]  }
  0x18   :  { %v4026_v21 = vand.u32 4294901760, %v417_v13  ;;  %214 = vmatpush.msra.mxu0 %v4004_v4  ;;  %295 = vmatpush.msra.mxu2 %v249_v14  ;;  %v250_v22 = vand.u32 4294901760, %v249_v14  ;;  %v4030_v23 = vsub.f32 %v194_v10, %v4017_v17  ;;  %v256_v24 = vand.u32 4294901760, %v255_v15 }
  0x19   :  { %v262_v25 = vand.u32 4294901760, %v261_v16  ;;  %331 = vmatpush.msra.mxu3 %v4004_v4  ;;  %v268_v26 = vand.u32 4294901760, %v4020_v18  ;;  %v4035_v27 = vsub.f32 %v197_v11, %v4022_v19  ;;  %v4038_v28 = vsub.f32 %v418_v12, %v4024_v20 }
  0x1a   :  { %v4041_v29 = vsub.f32 %v417_v13, %v4026_v21  ;;  %216 = vmatpush.msra.mxu0 %v4006_v5  ;;  %298 = vmatpush.msra.mxu2 %v255_v15  ;;  %v251_v30 = vsub.f32 %v249_v14, %v250_v22  ;;  %v4045_v31 = vand.u32 4294901760, %v4030_v23  ;;  %v257_v32 = vsub.f32 %v255_v15, %v256_v24 }
  0x1b   :  { %v263_v33 = vsub.f32 %v261_v16, %v262_v25  ;;  %333 = vmatpush.msra.mxu3 %v4006_v5  ;;  %v269_v34 = vsub.f32 %v4020_v18, %v268_v26  ;;  %v470_v35 = vand.u32 4294901760, %v4038_v28  ;;  %v4055_v42 = vand.u32 4294901760, %v4035_v27 }
  0x1c   :  { %v476_v36 = vand.u32 4294901760, %v4041_v29  ;;  %218 = vmatpush.msra.mxu0 %v4008_v9  ;;  %v252_v39 = vand.u32 4294901760, %v251_v30  ;;  %301 = vmatpush.msra.mxu2 %v261_v16  ;;  %v222_v40 = vsub.f32 %v4030_v23, %v4045_v31  ;;  %v258_v41 = vand.u32 4294901760, %v257_v32 }
  0x1d   :  { %335 = vmatpush.msra.mxu3 %v4008_v9  ;;  %v471_v43 = vsub.f32 %v4038_v28, %v470_v35  ;;  %v264_v46 = vand.u32 4294901760, %v263_v33  ;;  %v435_v47 = vand.u32 4294901760, %v416_v37  ;;  %v437_v48 = vand.u32 4294901760, %v415_v38 }
  0x1e   :  { %364 = vmatpush.msrb.mxu0 %v250_v22  ;;  %v477_v44 = vsub.f32 %v4041_v29, %v476_v36  ;;  %253 = vmatpush.msra.mxu1 %v252_v39  ;;  %v223_v45 = vand.u32 4294901760, %v222_v40  ;;  %v270_v49 = vand.u32 4294901760, %v269_v34  ;;  %v230_v51 = vsub.f32 %v4035_v27, %v4055_v42 }
  0x1f   :  { %304 = vmatpush.msra.mxu2 %v4020_v18  ;;  %339 = vmatmul.f32.vlgmr.msra.gmra.mxu3 %v4045_v31  ;;  %v472_v50 = vand.u32 4294901760, %v471_v43  ;;  %v481_v53 = vsub.f32 %v416_v37, %v435_v47  ;;  %v487_v54 = vsub.f32 %v415_v38, %v437_v48  ;;  %v4098_v7 = vunpack.c.l.bf16 %v3666_v6 }
  0x20   :  { %307 = vmatmul.f32.vlgmr.msra.gmra.mxu2 %v4030_v23  ;;  %224 = vmatmul.f32.vlgmr.msra.gmra.mxu0 %v223_v45  ;;  %v478_v52 = vand.u32 4294901760, %v477_v44  ;;  %v231_v57 = vand.u32 4294901760, %v230_v51  ;;  %v4101_v14 = vunpack.c.h.bf16 %v3666_v6 }
  0x21   :  { %259 = vmatpush.msra.mxu1 %v258_v41  ;;  %368 = vmatpush.msrb.mxu0 %v256_v24  ;;  %v482_v55 = vand.u32 4294901760, %v481_v53  ;;  %v488_v56 = vand.u32 4294901760, %v487_v54 }
  0x22   :  { %432 = vmatpush.msrb.mxu2 %v4024_v20  ;;  %473 = vmatpush.msrb.mxu3 %v472_v50 }
  0x23   :  { %265 = vmatpush.msra.mxu1 %v264_v46  ;;  %372 = vmatpush.msrb.mxu0 %v262_v25  ;;  %v483_v58 = vsub.f32 %v481_v53, %v482_v55  ;;  %v489_v59 = vsub.f32 %v487_v54, %v488_v56 }
  0x24   :  { %434 = vmatpush.msrb.mxu2 %v4026_v21  ;;  %479 = vmatpush.msrb.mxu3 %v478_v52 }
  0x25   :  { %271 = vmatpush.msra.mxu1 %v270_v49  ;;  %376 = vmatpush.msrb.mxu0 %v268_v26  ;;  %v484_v60 = vand.u32 4294901760, %v483_v58  ;;  %v490_v61 = vand.u32 4294901760, %v489_v59 }
  0x26   :  { %273 = vmatmul.f32.vlgmr.msra.gmra.mxu1 %v4017_v17  ;;  %436 = vmatpush.msrb.mxu2 %v435_v47 }
  0x27   :  { %399 = vmatpush.msrb.mxu1 %v4002_v3  ;;  %345 = vmatmul.f32.gmra.mxu3 %v4055_v42 }
  0x28   :  { %312 = vmatmul.f32.gmra.mxu2 %v4035_v27  ;;  %232 = vmatmul.f32.gmra.mxu0 %v231_v57 }
  0x29   :  { %485 = vmatpush.msrb.mxu3 %v484_v60  ;;  %401 = vmatpush.msrb.mxu1 %v4004_v4 }
  0x2a   :  { %438 = vmatpush.msrb.mxu2 %v437_v48  ;;  %515 = vmatpush.msra.mxu0 %v4038_v28 }
  0x2b   :  { %491 = vmatpush.msrb.mxu3 %v490_v61  ;;  %403 = vmatpush.msrb.mxu1 %v4006_v5 }
  0x2c   :  { %584 = vmatpush.msra.mxu2 %v470_v35  ;;  %518 = vmatpush.msra.mxu0 %v4041_v29 }
  0x2d   :  { %619 = vmatpush.msra.mxu3 %v4024_v20  ;;  %405 = vmatpush.msrb.mxu1 %v4008_v9 }
  0x2e   :  { %277 = vmatmul.f32.gmra.mxu1 %v4022_v19  ;;  %588 = vmatpush.msra.mxu2 %v476_v36  ;;  %v637_v36 = vsel %vm635_vm1, %v4098_v7, 0 }
  0x2f   :  { %521 = vmatpush.msra.mxu0 %v481_v53  ;;  %493 = vmatmul.f32.vlgmr.msrb.gmra.mxu3 %v4017_v17  ;;  %v691_v40 = vsub.f32 %v637_v36, %v637_v36 }
  0x30   :  { %444 = vmatmul.f32.vlgmr.msrb.gmra.mxu2 %v223_v45  ;;  %378 = vmatmul.f32.vlgmr.msrb.gmra.mxu0 %v4017_v17 }
  0x31   :  { %549 = vmatpush.msra.mxu1 %v4024_v20  ;;  %524 = vmatpush.msra.mxu0 %v487_v54  ;;  %v692_v49 = vand.u32 4294901760, %v691_v40  ;;  %v640_v54 = vsel %vm635_vm1, %v4101_v14, 0 }
  0x32   :  { %592 = vmatpush.msra.mxu2 %v482_v55  ;;  %621 = vmatpush.msra.mxu3 %v4026_v21 }
  0x33   :  { %551 = vmatpush.msra.mxu1 %v4026_v21  ;;  %2439 = vxpose.xlu0.b32.start [1/12] (short) (narrow) %v4098_v7, 16  ;;  %v693_v58 = vsub.f32 %v691_v40, %v692_v49 }
  0x34   :  { %596 = vmatpush.msra.mxu2 %v488_v56  ;;  %623 = vmatpush.msra.mxu3 %v435_v47 }
  0x35   :  { %553 = vmatpush.msra.mxu1 %v435_v47 }
  0x36   :  { %407 = vmatmul.f32.vlgmr.msrb.gmra.mxu1 %v4017_v17  ;;  %625 = vmatpush.msra.mxu3 %v437_v48 }
  0x37   :  { %555 = vmatpush.msra.mxu1 %v437_v48  ;;  %497 = vmatmul.f32.gmra.mxu3 %v4022_v19 }
  0x38   :  { %452 = vmatmul.f32.gmra.mxu2 %v231_v57  ;;  %382 = vmatmul.f32.gmra.mxu0 %v4022_v19  ;;  %v3719_v57 = vld [vmem:[%s5659_s2 + $0x10] sm:$0xff]  }
  0x39   :  { %v4128_v59 = vunpack.c.l.bf16 %v3719_v57 }
  0x3b   :  { %2440 = vxpose.xlu0.b32.cont [2/12] (short) (narrow) %v4101_v14, 16 }
  0x3e   :  { %411 = vmatmul.f32.gmra.mxu1 %v4022_v19 }
  0x3f   :  { %627 = vmatmul.f32.vlgmr.msra.gmra.mxu3 %v4017_v17 }
  0x40   :  { %598 = vmatmul.f32.vlgmr.msra.gmra.mxu2 %v4017_v17  ;;  %527 = vmatmul.f32.vlgmr.msra.gmra.mxu0 %v4030_v23  ;;  %v3718_v23 = vld [vmem:[%s5659_s2 + $0x8] sm:$0xff]  }
  0x41   :  { %v4107_v24 = vunpack.c.l.bf16 %v3718_v23  ;;  %v4114_v41 = vunpack.c.h.bf16 %v3718_v23 }
  0x43   :  { %2441 = vxpose.xlu0.b32.cont [3/12] (short) (narrow) %v4107_v24, 16 }
  0x46   :  { %559 = vmatmul.f32.vlgmr.msra.gmra.mxu1 %v4045_v31 }
  0x47   :  { %631 = vmatmul.f32.gmra.mxu3 %v4022_v19 }
  0x48   :  { %602 = vmatmul.f32.gmra.mxu2 %v4022_v19  ;;  %532 = vmatmul.f32.gmra.mxu0 %v4035_v27 }
  0x4b   :  { %2442 = vxpose.xlu0.b32.cont [4/12] (short) (narrow) %v4114_v41, 16 }
  0x4e   :  { %565 = vmatmul.f32.gmra.mxu1 %v4055_v42 }
  0x53   :  { %2443 = vxpose.xlu0.b32.cont [5/12] (short) (narrow) %v4128_v59, 16 }
  0x9d   :  { %v225_v62 = vpop.f32.mrf.mxu0 }
  0xa2   :  { %v340_v1 = vpop.f32.mrf.mxu3 }
  0xa3   :  { %v274_v63 = vpop.f32.mrf.mxu1  ;;  %v308_v0 = vpop.f32.mrf.mxu2 }
  0xa4   :  { %v275_v15 = vadd.f32 %v274_v63, %v225_v62  ;;  %v699_v62 = vsub.f32 %v640_v54, %v640_v54 }
  0xa5   :  { %v233_v2 = vpop.f32.mrf.mxu0 }
  0xa6   :  { %v309_v19 = vadd.f32 %v308_v0, %v275_v15 }
  0xa8   :  { %v341_v25 = vadd.f32 %v340_v1, %v309_v19 }
  0xaa   :  { %v346_v5 = vpop.f32.mrf.mxu3 }
  0xab   :  { %v278_v3 = vpop.f32.mrf.mxu1  ;;  %v313_v4 = vpop.f32.mrf.mxu2 }
  0xac   :  { %v279_v12 = vadd.f32 %v278_v3, %v233_v2  ;;  %v694_v2 = vand.u32 4294901760, %v693_v58 }
  0xad   :  { %v379_v8 = vpop.f32.mrf.mxu0 }
  0xae   :  { %v314_v16 = vadd.f32 %v313_v4, %v279_v12  ;;  %v380_v28 = vadd.f32 %v379_v8, %v341_v25  ;;  %v643_v8 = vsel %vm635_vm1, %v4107_v24, 0 }
  0xaf   :  { %v707_v15 = vsub.f32 %v643_v8, %v643_v8 }
  0xb0   :  { %v347_v21 = vadd.f32 %v346_v5, %v314_v16  ;;  %v700_v5 = vand.u32 4294901760, %v699_v62 }
  0xb1   :  { %v708_v19 = vand.u32 4294901760, %v707_v15 }
  0xb2   :  { %v494_v11 = vpop.f32.mrf.mxu3 }
  0xb3   :  { %v408_v9 = vpop.f32.mrf.mxu1  ;;  %v445_v10 = vpop.f32.mrf.mxu2  ;;  %v709_v23 = vsub.f32 %v707_v15, %v708_v19 }
  0xb4   :  { %v495_v27 = vadd.f32 %v494_v11, %v445_v10  ;;  %v409_v33 = vadd.f32 %v408_v9, %v380_v28  ;;  %v3720_v28 = vld [vmem:[%s5659_s2 + $0x18] sm:$0xff]  }
  0xb5   :  { %v383_v13 = vpop.f32.mrf.mxu0  ;;  %v4162_v36 = vunpack.c.h.bf16 %v3720_v28 }
  0xb6   :  { %v384_v26 = vadd.f32 %v383_v13, %v347_v21  ;;  %v4116_v42 = vand.u32 4294901760, %v409_v33  ;;  %v701_v13 = vsub.f32 %v699_v62, %v700_v5  ;;  %v646_v21 = vsel %vm635_vm1, %v4114_v41, 0 }
  0xb7   :  { %v715_v25 = vsub.f32 %v646_v21, %v646_v21 }
  0xb8   :  { %v1344_v50 = vsub.f32 %v409_v33, %v4116_v42 }
  0xba   :  { %v498_v20 = vpop.f32.mrf.mxu3  ;;  %v1345_v61 = vand.u32 4294901760, %v1344_v50 }
  0xbb   :  { %v412_v17 = vpop.f32.mrf.mxu1  ;;  %v453_v18 = vpop.f32.mrf.mxu2 }
  0xbc   :  { %v413_v29 = vadd.f32 %v412_v17, %v384_v26  ;;  %v499_v43 = vadd.f32 %v498_v20, %v453_v18  ;;  %v1346_v4 = vsub.f32 %v1344_v50, %v1345_v61  ;;  %v702_v18 = vand.u32 4294901760, %v701_v13 }
  0xbd   :  { %v528_v22 = vpop.f32.mrf.mxu0  ;;  %v710_v26 = vand.u32 4294901760, %v709_v23 }
  0xbe   :  { %v529_v30 = vadd.f32 %v528_v22, %v495_v27  ;;  %v4112_v37 = vand.u32 4294901760, %v413_v29  ;;  %v1347_v11 = vand.u32 4294901760, %v1346_v4  ;;  %v4142_v22 = vunpack.c.h.bf16 %v3719_v57 }
  0xbf   :  { %v716_v27 = vand.u32 4294901760, %v715_v25 }
  0xc0   :  { %v1338_v45 = vsub.f32 %v413_v29, %v4112_v37  ;;  %2444 = vxpose.xlu0.b32.cont [6/12] (short) (narrow) %v4142_v22, 16  ;;  %v649_v29 = vsel %vm635_vm1, %v4128_v59, 0 }
  0xc2   :  { %v628_v35 = vpop.f32.mrf.mxu3  ;;  %v1339_v55 = vand.u32 4294901760, %v1338_v45 }
  0xc3   :  { %v560_v31 = vpop.f32.mrf.mxu1  ;;  %v599_v32 = vpop.f32.mrf.mxu2 }
  0xc4   :  { %v561_v34 = vadd.f32 %v560_v31, %v529_v30  ;;  %v1340_v1 = vsub.f32 %v1338_v45, %v1339_v55  ;;  %v4155_v30 = vunpack.c.l.bf16 %v3720_v28  ;;  %v717_v31 = vsub.f32 %v715_v25, %v716_v27  ;;  %v3713_v28 = vld [vmem:[%s5658_s1 + $0x8] sm:$0xff]  }
  0xc5   :  { %v533_v39 = vpop.f32.mrf.mxu0 }
  0xc6   :  { %v600_v38 = vadd.f32 %v599_v32, %v561_v34  ;;  %v534_v46 = vadd.f32 %v533_v39, %v499_v43  ;;  %v1341_v9 = vand.u32 4294901760, %v1340_v1  ;;  %v723_v32 = vsub.f32 %v649_v29, %v649_v29 }
  0xc7   :  { %v718_v33 = vand.u32 4294901760, %v717_v31  ;;  %v655_v43 = vsel %vm635_vm1, %v4155_v30, 0 }
  0xc8   :  { %v629_v44 = vadd.f32 %v628_v35, %v600_v38  ;;  %2445 = vxpose.xlu0.b32.cont [7/12] (short) (narrow) %v4155_v30, 16  ;;  %v724_v34 = vand.u32 4294901760, %v723_v32  ;;  %v652_v35 = vsel %vm635_vm1, %v4142_v22, 0 }
  0xc9   :  { %v731_v38 = vsub.f32 %v652_v35, %v652_v35 }
  0xca   :  { %v4121_v52 = vand.u32 4294901760, %v629_v44  ;;  %v632_v53 = vpop.f32.mrf.mxu3 }
  0xcb   :  { %v566_v47 = vpop.f32.mrf.mxu1  ;;  %v603_v48 = vpop.f32.mrf.mxu2 }
  0xcc   :  { %v567_v51 = vadd.f32 %v566_v47, %v534_v46  ;;  %v808_v63 = vsub.f32 %v629_v44, %v4121_v52  ;;  %v739_v46 = vsub.f32 %v655_v43, %v655_v43 }
  0xce   :  { %v604_v56 = vadd.f32 %v603_v48, %v567_v51  ;;  %v809_v6 = vand.u32 4294901760, %v808_v63  ;;  %v740_v48 = vand.u32 4294901760, %v739_v46 }
  0xd0   :  { %v633_v60 = vadd.f32 %v632_v53, %v604_v56  ;;  %v810_v16 = vsub.f32 %v808_v63, %v809_v6  ;;  %2446 = vxpose.xlu0.b32.cont [8/12] (short) (narrow) %v4162_v36, 16  ;;  %v741_v51 = vsub.f32 %v739_v46, %v740_v48 }
  0xd2   :  { %v686_v0 = vand.u32 4294901760, %v633_v60  ;;  %v811_v20 = vand.u32 4294901760, %v810_v16  ;;  %v742_v53 = vand.u32 4294901760, %v741_v51 }
  0xd4   :  { %v802_v3 = vsub.f32 %v633_v60, %v686_v0  ;;  %687 = vmatpush.msrb.mxu0 %v686_v0  ;;  %958 = vmatpush.msrb.mxu3 %v686_v0 }
  0xd6   :  { %689 = vmatpush.msrb.mxu0 %v4121_v52  ;;  %878 = vmatpush.msrb.mxu2 %v802_v3  ;;  %v803_v10 = vand.u32 4294901760, %v802_v3 }
  0xd7   :  { %960 = vmatpush.msrb.mxu3 %v4121_v52  ;;  %695 = vmatmul.f32.vlgmr.msrb.gmra.mxu0 %v694_v2 }
  0xd8   :  { %881 = vmatpush.msrb.mxu2 %v808_v63  ;;  %v804_v12 = vsub.f32 %v802_v3, %v803_v10  ;;  %1051 = vmatpush.msra.mxu0 %v803_v10 }
  0xd9   :  { %1342 = vmatpush.msra.mxu3 %v1341_v9  ;;  %884 = vmatmul.f32.vlgmr.msrb.gmra.mxu2 %v691_v40  ;;  %v732_v40 = vand.u32 4294901760, %v731_v38 }
  0xda   :  { %1223 = vmatpush.msra.mxu2 %v4112_v37  ;;  %v805_v17 = vand.u32 4294901760, %v804_v12  ;;  %964 = vmatmul.f32.vlgmr.msrb.gmra.mxu3 %v692_v49  ;;  %v658_v49 = vsel %vm635_vm1, %v4162_v36, 0 }
  0xdb   :  { %1348 = vmatpush.msra.mxu3 %v1347_v11  ;;  %1055 = vmatpush.msra.mxu0 %v809_v6 }
  0xdc   :  { %1225 = vmatpush.msra.mxu2 %v4116_v42  ;;  %806 = vmatpush.msrb.mxu1 %v805_v17 }
  0xdd   :  { %1656 = vmatpush.msrb.mxu3 %v4112_v37  ;;  %1414 = vmatpush.msrb.mxu0 %v1338_v45  ;;  %v733_v45 = vsub.f32 %v731_v38, %v732_v40 }
  0xde   :  { %1587 = vmatpush.msrb.mxu2 %v1339_v55  ;;  %812 = vmatpush.msrb.mxu1 %v811_v20  ;;  %v3722_v55 = vld [vmem:[%s5659_s2 + $0x28] sm:$0xff]  }
  0xdf   :  { %1658 = vmatpush.msrb.mxu3 %v4116_v42  ;;  %1417 = vmatpush.msrb.mxu0 %v1344_v50  ;;  %v734_v47 = vand.u32 4294901760, %v733_v45  ;;  %v4189_v57 = vunpack.c.l.bf16 %v3722_v55  ;;  %v3714_v45 = vld [vmem:[%s5658_s1 + $0x10] sm:$0xff]  }
  0xe0   :  { %1591 = vmatpush.msrb.mxu2 %v1345_v61  ;;  %703 = vmatmul.f32.gmra.mxu0 %v702_v18 }
  0xe1   :  { %3567 = vmatmul.msk.f32.vlgmr.msrb.gmra.mxu1 %vm635_vm1, %v4098_v7  ;;  %889 = vmatmul.f32.gmra.mxu2 %v699_v62 }
  0xe2   :  { %1120 = vmatpush.msra.mxu1 %v686_v0  ;;  %970 = vmatmul.f32.gmra.mxu3 %v700_v5  ;;  %v4196_v0 = vunpack.c.h.bf16 %v3722_v55  ;;  %v667_v5 = vsel %vm635_vm1, %v4189_v57, 0 }
  0xe3   :  { %v771_v8 = vsub.f32 %v667_v5, %v667_v5 }
  0xe4   :  { %1122 = vmatpush.msra.mxu1 %v4121_v52  ;;  %v747_v52 = vsub.f32 %v658_v49, %v658_v49  ;;  %v670_v11 = vsel %vm635_vm1, %v4196_v0, 0 }
  0xe5   :  { %v772_v10 = vand.u32 4294901760, %v771_v8  ;;  %v779_v13 = vsub.f32 %v670_v11, %v670_v11 }
  0xe6   :  { %1494 = vmatpush.msrb.mxu1 %v4112_v37  ;;  %v725_v37 = vsub.f32 %v723_v32, %v724_v34  ;;  %v748_v54 = vand.u32 4294901760, %v747_v52 }
  0xe7   :  { %v773_v12 = vsub.f32 %v771_v8, %v772_v10  ;;  %v780_v18 = vand.u32 4294901760, %v779_v13 }
  0xe8   :  { %1496 = vmatpush.msrb.mxu1 %v4116_v42  ;;  %711 = vmatmul.f32.gmra.mxu0 %v710_v26  ;;  %v726_v39 = vand.u32 4294901760, %v725_v37  ;;  %v3721_v42 = vld [vmem:[%s5659_s2 + $0x20] sm:$0xff]   ;;  %v749_v58 = vsub.f32 %v747_v52, %v748_v54 }
  0xe9   :  { %3568 = vmatmul.msk.f32.gmra.mxu1 %vm635_vm1, %v4101_v14  ;;  %894 = vmatmul.f32.gmra.mxu2 %v707_v15  ;;  %v4172_v44 = vunpack.c.l.bf16 %v3721_v42  ;;  %v4179_v50 = vunpack.c.h.bf16 %v3721_v42  ;;  %v3642_v15 = vld [vmem:[%s5658_s1] sm:$0xff]   ;;  %v774_v17 = vand.u32 4294901760, %v773_v12  ;;  %v781_v20 = vsub.f32 %v779_v13, %v780_v18 }
  0xea   :  { %976 = vmatmul.f32.gmra.mxu3 %v708_v19  ;;  %v750_v61 = vand.u32 4294901760, %v749_v58  ;;  %v4212_v16 = vunpack.c.l.bf16 %v3642_v15  ;;  %v4220_v23 = vunpack.c.h.bf16 %v3642_v15  ;;  %v3716_v15 = vld [vmem:[%s5658_s1 + $0x20] sm:$0xff]  }
  0xeb   :  { %2447 = vxpose.xlu0.b32.cont [9/12] (short) (narrow) %v4172_v44, 16  ;;  %v661_v56 = vsel %vm635_vm1, %v4172_v44, 0  ;;  %v664_v63 = vsel %vm635_vm1, %v4179_v50, 0 }
  0xec   :  { %v755_v60 = vsub.f32 %v661_v56, %v661_v56  ;;  %v763_v2 = vsub.f32 %v664_v63, %v664_v63  ;;  %v1173_v19 = vsel %vm635_vm1, %v4212_v16, 0 }
  0xed   :  { %v4218_v21 = vsub.f32 %v1173_v19, %v1173_v19 }
  0xee   :  { %v756_v62 = vand.u32 4294901760, %v755_v60  ;;  %v764_v4 = vand.u32 4294901760, %v763_v2 }
  0xef   :  { %v1228_v26 = vand.u32 4294901760, %v4218_v21 }
  0xf0   :  { %719 = vmatmul.f32.gmra.mxu0 %v718_v33  ;;  %v757_v1 = vsub.f32 %v755_v60, %v756_v62  ;;  %v765_v6 = vsub.f32 %v763_v2, %v764_v4 }
  0xf1   :  { %3569 = vmatmul.msk.f32.gmra.mxu1 %vm635_vm1, %v4107_v24  ;;  %899 = vmatmul.f32.gmra.mxu2 %v715_v25  ;;  %v782_v25 = vand.u32 4294901760, %v781_v20  ;;  %v1229_v29 = vsub.f32 %v4218_v21, %v1228_v26 }
  0xf2   :  { %982 = vmatmul.f32.gmra.mxu3 %v716_v27  ;;  %v758_v3 = vand.u32 4294901760, %v757_v1  ;;  %v766_v9 = vand.u32 4294901760, %v765_v6  ;;  %v1176_v27 = vsel %vm635_vm1, %v4220_v23, 0 }
  0xf3   :  { %2448 = vxpose.xlu0.b32.cont [10/12] (short) (narrow) %v4179_v50, 16  ;;  %v4233_v31 = vsub.f32 %v1176_v27, %v1176_v27  ;;  %v1230_v33 = vand.u32 4294901760, %v1229_v29 }
  0xf8   :  { %727 = vmatmul.f32.gmra.mxu0 %v726_v39  ;;  %v4251_v39 = vunpack.c.h.bf16 %v3713_v28 }
  0xf9   :  { %3570 = vmatmul.msk.f32.gmra.mxu1 %vm635_vm1, %v4114_v41  ;;  %904 = vmatmul.f32.gmra.mxu2 %v723_v32  ;;  %v4235_v32 = vunpack.c.l.bf16 %v3713_v28 }
  0xfa   :  { %988 = vmatmul.f32.gmra.mxu3 %v724_v34  ;;  %v1236_v34 = vand.u32 4294901760, %v4233_v31  ;;  %v1182_v43 = vsel %vm635_vm1, %v4251_v39, 0 }
  0xfb   :  { %2449 = vxpose.xlu0.b32.cont [11/12] (short) (narrow) %v4189_v57, 16  ;;  %v1179_v35 = vsel %vm635_vm1, %v4235_v32, 0 }
  0xfc   :  { %v1237_v37 = vsub.f32 %v4233_v31, %v1236_v34 }
 0x100   :  { %735 = vmatmul.f32.gmra.mxu0 %v734_v47  ;;  %v4266_v47 = vsub.f32 %v1182_v43, %v1182_v43 }
 0x101   :  { %3571 = vmatmul.msk.f32.gmra.mxu1 %vm635_vm1, %v4128_v59  ;;  %909 = vmatmul.f32.gmra.mxu2 %v731_v38  ;;  %v4247_v38 = vsub.f32 %v1179_v35, %v1179_v35 }
 0x102   :  { %994 = vmatmul.f32.gmra.mxu3 %v732_v40  ;;  %v1238_v40 = vand.u32 4294901760, %v1237_v37  ;;  %v1252_v51 = vand.u32 4294901760, %v4266_v47 }
 0x103   :  { %2450 = vxpose.xlu0.b32.end [12/12] (short) (narrow) %v4196_v0, 16  ;;  %v1244_v42 = vand.u32 4294901760, %v4247_v38 }
 0x108   :  { %743 = vmatmul.f32.gmra.mxu0 %v742_v53 }
 0x109   :  { %3572 = vmatmul.msk.f32.gmra.mxu1 %vm635_vm1, %v4142_v22  ;;  %914 = vmatmul.f32.gmra.mxu2 %v739_v46  ;;  %v1245_v46 = vsub.f32 %v4247_v38, %v1244_v42 }
 0x10a   :  { %1000 = vmatmul.f32.gmra.mxu3 %v740_v48  ;;  %v4270_v48 = vunpack.c.l.bf16 %v3714_v45 }
 0x10b   :  { %v1246_v49 = vand.u32 4294901760, %v1245_v46 }
 0x110   :  { %751 = vmatmul.f32.gmra.mxu0 %v750_v61 }
 0x111   :  { %3573 = vmatmul.msk.f32.gmra.mxu1 %vm635_vm1, %v4155_v30  ;;  %919 = vmatmul.f32.gmra.mxu2 %v747_v52  ;;  %v1185_v52 = vsel %vm635_vm1, %v4270_v48, 0 }
 0x112   :  { %1006 = vmatmul.f32.gmra.mxu3 %v748_v54  ;;  %v4282_v53 = vsub.f32 %v1185_v52, %v1185_v52  ;;  %v4286_v54 = vunpack.c.h.bf16 %v3714_v45  ;;  %v4360_v52 = vunpack.c.h.bf16 %v3716_v15 }
 0x114   :  { %v1260_v56 = vand.u32 4294901760, %v4282_v53  ;;  %v1188_v58 = vsel %vm635_vm1, %v4286_v54, 0 }
 0x115   :  { %v4301_v61 = vsub.f32 %v1188_v58, %v1188_v58 }
 0x118   :  { %759 = vmatmul.f32.gmra.mxu0 %v758_v3 }
 0x119   :  { %3574 = vmatmul.msk.f32.gmra.mxu1 %vm635_vm1, %v4162_v36  ;;  %924 = vmatmul.f32.gmra.mxu2 %v755_v60  ;;  %v1261_v60 = vsub.f32 %v4282_v53, %v1260_v56 }
 0x11a   :  { %1012 = vmatmul.f32.gmra.mxu3 %v756_v62 }
 0x11b   :  { %v1262_v1 = vand.u32 4294901760, %v1261_v60 }
 0x120   :  { %767 = vmatmul.f32.gmra.mxu0 %v766_v9 }
 0x121   :  { %3575 = vmatmul.msk.f32.gmra.mxu1 %vm635_vm1, %v4172_v44  ;;  %929 = vmatmul.f32.gmra.mxu2 %v763_v2  ;;  %v1268_v2 = vand.u32 4294901760, %v4301_v61 }
 0x122   :  { %1018 = vmatmul.f32.gmra.mxu3 %v764_v4 }
 0x128   :  { %775 = vmatmul.f32.gmra.mxu0 %v774_v17 }
 0x129   :  { %3576 = vmatmul.msk.f32.gmra.mxu1 %vm635_vm1, %v4179_v50  ;;  %934 = vmatmul.f32.gmra.mxu2 %v771_v8 }
 0x12a   :  { %1024 = vmatmul.f32.gmra.mxu3 %v772_v10 }
 0x130   :  { %783 = vmatmul.f32.gmra.mxu0 %v782_v25  ;;  %v4342_v25 = vunpack.c.l.bf16 %v3716_v15 }
 0x131   :  { %3577 = vmatmul.msk.f32.gmra.mxu1 %vm635_vm1, %v4189_v57  ;;  %939 = vmatmul.f32.gmra.mxu2 %v779_v13 }
 0x132   :  { %1030 = vmatmul.f32.gmra.mxu3 %v780_v18 }
 0x138   :  { %3579 = vmatmul.msk.f32.vlgmr.msra.gmra.mxu0 %vm635_vm1, %v4098_v7 }
 0x139   :  { %3578 = vmatmul.msk.f32.gmra.mxu1 %vm635_vm1, %v4196_v0  ;;  %1231 = vmatmul.f32.vlgmr.msra.gmra.mxu2 %v1230_v33 }
 0x13a   :  { %3603 = vmatmul.msk.f32.vlgmr.msra.gmra.mxu3 %vm635_vm1, %v4212_v16 }
 0x140   :  { %3580 = vmatmul.msk.f32.gmra.mxu0 %vm635_vm1, %v4101_v14 }
 0x141   :  { %3591 = vmatmul.msk.f32.vlgmr.msra.gmra.mxu1 %vm635_vm1, %v4098_v7  ;;  %1239 = vmatmul.f32.gmra.mxu2 %v1238_v40  ;;  %v1253_v7 = vsub.f32 %v4266_v47, %v1252_v51  ;;  %v1197_v40 = vsel %vm635_vm1, %v4342_v25, 0 }
 0x142   :  { %3604 = vmatmul.msk.f32.gmra.mxu3 %vm635_vm1, %v4220_v23  ;;  %v4354_v46 = vsub.f32 %v1197_v40, %v1197_v40 }
 0x143   :  { %v1254_v55 = vand.u32 4294901760, %v1253_v7 }
 0x148   :  { %3581 = vmatmul.msk.f32.gmra.mxu0 %vm635_vm1, %v4107_v24 }
 0x149   :  { %3592 = vmatmul.msk.f32.gmra.mxu1 %vm635_vm1, %v4101_v14  ;;  %1247 = vmatmul.f32.gmra.mxu2 %v1246_v49  ;;  %v3715_v14 = vld [vmem:[%s5658_s1 + $0x18] sm:$0xff]  }
 0x14a   :  { %3605 = vmatmul.msk.f32.gmra.mxu3 %vm635_vm1, %v4235_v32  ;;  %v4305_v62 = vunpack.c.l.bf16 %v3715_v14  ;;  %v4321_v5 = vunpack.c.h.bf16 %v3715_v14 }
 0x14c   :  { %v1191_v3 = vsel %vm635_vm1, %v4305_v62, 0  ;;  %v1194_v13 = vsel %vm635_vm1, %v4321_v5, 0 }
 0x14d   :  { %v4317_v4 = vsub.f32 %v1191_v3, %v1191_v3  ;;  %v4336_v19 = vsub.f32 %v1194_v13, %v1194_v13  ;;  %v3717_v3 = vld [vmem:[%s5658_s1 + $0x28] sm:$0xff]  }
 0x14f   :  { %v1276_v12 = vand.u32 4294901760, %v4317_v4 }
 0x150   :  { %3582 = vmatmul.msk.f32.gmra.mxu0 %vm635_vm1, %v4114_v41 }
 0x151   :  { %3593 = vmatmul.msk.f32.gmra.mxu1 %vm635_vm1, %v4107_v24  ;;  %1255 = vmatmul.f32.gmra.mxu2 %v1254_v55  ;;  %v1269_v24 = vsub.f32 %v4301_v61, %v1268_v2  ;;  %v1277_v18 = vsub.f32 %v4317_v4, %v1276_v12 }
 0x152   :  { %3606 = vmatmul.msk.f32.gmra.mxu3 %vm635_vm1, %v4251_v39 }
 0x153   :  { %v1270_v11 = vand.u32 4294901760, %v1269_v24  ;;  %v1278_v35 = vand.u32 4294901760, %v1277_v18 }
 0x154   :  { %v696_v63 = vpop.f32.mrf.mxu0 }
 0x158   :  { %3583 = vmatmul.msk.f32.gmra.mxu0 %vm635_vm1, %v4128_v59 }
 0x159   :  { %3594 = vmatmul.msk.f32.gmra.mxu1 %vm635_vm1, %v4114_v41  ;;  %1263 = vmatmul.f32.gmra.mxu2 %v1262_v1  ;;  %v1200_v1 = vsel %vm635_vm1, %v4360_v52, 0 }
 0x15a   :  { %3607 = vmatmul.msk.f32.gmra.mxu3 %vm635_vm1, %v4270_v48 }
 0x15c   :  { %v885_v8 = vpop.f32.mrf.mxu2 }
 0x15d   :  { %v704_v6 = vpop.f32.mrf.mxu0  ;;  %v965_v10 = vpop.f32.mrf.mxu3 }
 0x15e   :  { %v815_v9 = vpop.f32.mrf.mxu1 }
 0x15f   :  { %v816_v41 = vadd.f32 %v815_v9, %v696_v63 }
 0x160   :  { %3584 = vmatmul.msk.f32.gmra.mxu0 %vm635_vm1, %v4142_v22 }
 0x161   :  { %v886_v17 = vadd.f32 %v885_v8, %v816_v41  ;;  %3595 = vmatmul.msk.f32.gmra.mxu1 %vm635_vm1, %v4128_v59  ;;  %1271 = vmatmul.f32.gmra.mxu2 %v1270_v11  ;;  %v1284_v59 = vand.u32 4294901760, %v4336_v19  ;;  %v4375_v8 = vsub.f32 %v1200_v1, %v1200_v1 }
 0x162   :  { %3608 = vmatmul.msk.f32.gmra.mxu3 %vm635_vm1, %v4286_v54 }
 0x163   :  { %v4338_v20 = vadd.f32 %v965_v10, %v886_v17  ;;  %v1285_v45 = vsub.f32 %v4336_v19, %v1284_v59  ;;  %v4381_v10 = vunpack.c.l.bf16 %v3717_v3 }
 0x164   :  { %v890_v28 = vpop.f32.mrf.mxu2 }
 0x165   :  { %v712_v27 = vpop.f32.mrf.mxu0  ;;  %v971_v33 = vpop.f32.mrf.mxu3  ;;  %v1286_v60 = vand.u32 4294901760, %v1285_v45 }
 0x166   :  { %v819_v29 = vpop.f32.mrf.mxu1 }
 0x167   :  { %v820_v37 = vadd.f32 %v819_v29, %v704_v6 }
 0x168   :  { %3585 = vmatmul.msk.f32.gmra.mxu0 %vm635_vm1, %v4155_v30 }
 0x169   :  { %v891_v43 = vadd.f32 %v890_v28, %v820_v37  ;;  %3596 = vmatmul.msk.f32.gmra.mxu1 %vm635_vm1, %v4142_v22  ;;  %1279 = vmatmul.f32.gmra.mxu2 %v1278_v35  ;;  %v1292_v22 = vand.u32 4294901760, %v4354_v46  ;;  %v4399_v37 = vunpack.c.h.bf16 %v3717_v3 }
 0x16a   :  { %3609 = vmatmul.msk.f32.gmra.mxu3 %vm635_vm1, %v4305_v62 }
 0x16b   :  { %v4356_v49 = vadd.f32 %v971_v33, %v891_v43  ;;  %v1293_v6 = vsub.f32 %v4354_v46, %v1292_v22 }
 0x16c   :  { %v895_v55 = vpop.f32.mrf.mxu2 }
 0x16d   :  { %v720_v7 = vpop.f32.mrf.mxu0  ;;  %v977_v14 = vpop.f32.mrf.mxu3  ;;  %v1294_v17 = vand.u32 4294901760, %v1293_v6 }
 0x16e   :  { %v823_v58 = vpop.f32.mrf.mxu1 }
 0x16f   :  { %v824_v63 = vadd.f32 %v823_v58, %v712_v27  ;;  %v1203_v27 = vsel %vm635_vm1, %v4381_v10, 0 }
 0x170   :  { %3586 = vmatmul.msk.f32.gmra.mxu0 %vm635_vm1, %v4162_v36  ;;  %v4393_v33 = vsub.f32 %v1203_v27, %v1203_v27 }
 0x171   :  { %v896_v24 = vadd.f32 %v895_v55, %v824_v63  ;;  %3597 = vmatmul.msk.f32.gmra.mxu1 %vm635_vm1, %v4155_v30  ;;  %1287 = vmatmul.f32.gmra.mxu2 %v1286_v60  ;;  %v1300_v30 = vand.u32 4294901760, %v4375_v8 }
 0x172   :  { %3610 = vmatmul.msk.f32.gmra.mxu3 %vm635_vm1, %v4321_v5 }
 0x173   :  { %v4377_v9 = vadd.f32 %v977_v14, %v896_v24  ;;  %v1301_v29 = vsub.f32 %v4375_v8, %v1300_v30  ;;  %v1206_v14 = vsel %vm635_vm1, %v4399_v37, 0 }
 0x174   :  { %v900_v41 = vpop.f32.mrf.mxu2  ;;  %v4411_v1 = vsub.f32 %v1206_v14, %v1206_v14 }
 0x175   :  { %v728_v11 = vpop.f32.mrf.mxu0  ;;  %v983_v15 = vpop.f32.mrf.mxu3  ;;  %v1302_v55 = vand.u32 4294901760, %v1301_v29 }
 0x176   :  { %v827_v13 = vpop.f32.mrf.mxu1 }
 0x177   :  { %v828_v18 = vadd.f32 %v827_v13, %v720_v7 }
 0x178   :  { %3587 = vmatmul.msk.f32.gmra.mxu0 %vm635_vm1, %v4172_v44 }
 0x179   :  { %v901_v28 = vadd.f32 %v900_v41, %v828_v18  ;;  %3598 = vmatmul.msk.f32.gmra.mxu1 %vm635_vm1, %v4162_v36  ;;  %1295 = vmatmul.f32.gmra.mxu2 %v1294_v17  ;;  %v1308_v36 = vand.u32 4294901760, %v4393_v33 }
 0x17a   :  { %3611 = vmatmul.msk.f32.gmra.mxu3 %vm635_vm1, %v4342_v25 }
 0x17b   :  { %v4395_v35 = vadd.f32 %v983_v15, %v901_v28  ;;  %v1309_v63 = vsub.f32 %v4393_v33, %v1308_v36  ;;  %v5675_v15 = vand.u32 4294901760, %v4411_v1 }
 0x17c   :  { %v905_v43 = vpop.f32.mrf.mxu2 }
 0x17d   :  { %v736_v40 = vpop.f32.mrf.mxu0  ;;  %v989_v7 = vpop.f32.mrf.mxu3  ;;  %v1310_v13 = vand.u32 4294901760, %v1309_v63  ;;  %v1317_v18 = vsub.f32 %v4411_v1, %v5675_v15 }
 0x17e   :  { %v831_v45 = vpop.f32.mrf.mxu1 }
 0x17f   :  { %v832_v58 = vadd.f32 %v831_v45, %v728_v11  ;;  %v1318_v45 = vand.u32 4294901760, %v1317_v18 }
 0x180   :  { %3588 = vmatmul.msk.f32.gmra.mxu0 %vm635_vm1, %v4179_v50 }
 0x181   :  { %v906_v60 = vadd.f32 %v905_v43, %v832_v58  ;;  %3599 = vmatmul.msk.f32.gmra.mxu1 %vm635_vm1, %v4172_v44  ;;  %1303 = vmatmul.f32.gmra.mxu2 %v1302_v55 }
 0x182   :  { %3612 = vmatmul.msk.f32.gmra.mxu3 %vm635_vm1, %v4360_v52 }
 0x183   :  { %v4413_v3 = vadd.f32 %v989_v7, %v906_v60 }
 0x184   :  { %v910_v6 = vpop.f32.mrf.mxu2 }
 0x185   :  { %v744_v24 = vpop.f32.mrf.mxu0  ;;  %v995_v41 = vpop.f32.mrf.mxu3 }
 0x186   :  { %v835_v11 = vpop.f32.mrf.mxu1 }
 0x187   :  { %v836_v44 = vadd.f32 %v835_v11, %v736_v40 }
 0x188   :  { %3589 = vmatmul.msk.f32.gmra.mxu0 %vm635_vm1, %v4189_v57 }
 0x189   :  { %v911_v17 = vadd.f32 %v910_v6, %v836_v44  ;;  %3600 = vmatmul.msk.f32.gmra.mxu1 %vm635_vm1, %v4179_v50  ;;  %1311 = vmatmul.f32.gmra.mxu2 %v1310_v13 }
 0x18a   :  { %3613 = vmatmul.msk.f32.gmra.mxu3 %vm635_vm1, %v4381_v10 }
 0x18b   :  { %v4425_v27 = vadd.f32 %v995_v41, %v911_v17 }
 0x18c   :  { %v915_v29 = vpop.f32.mrf.mxu2 }
 0x18d   :  { %v752_v28 = vpop.f32.mrf.mxu0  ;;  %v1001_v43 = vpop.f32.mrf.mxu3 }
 0x18e   :  { %v839_v40 = vpop.f32.mrf.mxu1 }
 0x18f   :  { %v840_v7 = vadd.f32 %v839_v40, %v744_v24 }
 0x190   :  { %3590 = vmatmul.msk.f32.gmra.mxu0 %vm635_vm1, %v4196_v0 }
 0x191   :  { %v916_v50 = vadd.f32 %v915_v29, %v840_v7  ;;  %3601 = vmatmul.msk.f32.gmra.mxu1 %vm635_vm1, %v4189_v57  ;;  %1319 = vmatmul.f32.gmra.mxu2 %v1318_v45 }
 0x192   :  { %3614 = vmatmul.msk.f32.gmra.mxu3 %vm635_vm1, %v4399_v37 }
 0x193   :  { %v4433_v55 = vadd.f32 %v1001_v43, %v916_v50 }
 0x194   :  { %v920_v14 = vpop.f32.mrf.mxu2 }
 0x195   :  { %5682 = vst [vmem:[#allocation15_spill] sm:$0xff] %v4433_v55  ;;  %v760_v58 = vpop.f32.mrf.mxu0  ;;  %v1007_v63 = vpop.f32.mrf.mxu3 }
 0x196   :  { %v843_v60 = vpop.f32.mrf.mxu1 }
 0x197   :  { %v844_v6 = vadd.f32 %v843_v60, %v752_v28 }
 0x198   :  { %1420 = vmatmul.f32.vlgmr.msrb.gmra.mxu0 %v4218_v21 }
 0x199   :  { %v921_v24 = vadd.f32 %v920_v14, %v844_v6  ;;  %3602 = vmatmul.msk.f32.gmra.mxu1 %vm635_vm1, %v4196_v0  ;;  %3615 = vmatmul.msk.f32.vlgmr.msrb.gmra.mxu2 %vm635_vm1, %v4212_v16 }
 0x19a   :  { %3627 = vmatmul.msk.f32.vlgmr.msrb.gmra.mxu3 %vm635_vm1, %v4212_v16 }
 0x19b   :  { %v4442_v57 = vadd.f32 %v1007_v63, %v921_v24 }
 0x19c   :  { %v925_v41 = vpop.f32.mrf.mxu2 }
 0x19d   :  { %5683 = vst [vmem:[#allocation16_spill] sm:$0xff] %v4442_v57  ;;  %v768_v11 = vpop.f32.mrf.mxu0  ;;  %v1013_v44 = vpop.f32.mrf.mxu3 }
 0x19e   :  { %v847_v13 = vpop.f32.mrf.mxu1 }
 0x19f   :  { %v848_v17 = vadd.f32 %v847_v13, %v760_v58 }
 0x1a0   :  { %1425 = vmatmul.f32.gmra.mxu0 %v4233_v31 }
 0x1a1   :  { %v926_v18 = vadd.f32 %v925_v41, %v848_v17  ;;  %1500 = vmatmul.f32.vlgmr.msrb.gmra.mxu1 %v1228_v26  ;;  %3616 = vmatmul.msk.f32.gmra.mxu2 %vm635_vm1, %v4220_v23 }
 0x1a2   :  { %3628 = vmatmul.msk.f32.gmra.mxu3 %vm635_vm1, %v4220_v23 }
 0x1a3   :  { %v4451_v0 = vadd.f32 %v1013_v44, %v926_v18 }
 0x1a4   :  { %v930_v28 = vpop.f32.mrf.mxu2 }
 0x1a5   :  { %5684 = vst [vmem:[#allocation17_spill] sm:$0xff] %v4451_v0  ;;  %v776_v16 = vpop.f32.mrf.mxu0  ;;  %v1019_v40 = vpop.f32.mrf.mxu3 }
 0x1a6   :  { %v851_v29 = vpop.f32.mrf.mxu1 }
 0x1a7   :  { %v852_v43 = vadd.f32 %v851_v29, %v768_v11 }
 0x1a8   :  { %1430 = vmatmul.f32.gmra.mxu0 %v4247_v38 }
 0x1a9   :  { %v931_v45 = vadd.f32 %v930_v28, %v852_v43  ;;  %1506 = vmatmul.f32.gmra.mxu1 %v1236_v34  ;;  %3617 = vmatmul.msk.f32.gmra.mxu2 %vm635_vm1, %v4235_v32  ;;  %v1753_v43 = vld [vmem:[%s5664_s7 + $0x48] sm:$0xff] }
 0x1aa   :  { %3629 = vmatmul.msk.f32.gmra.mxu3 %vm635_vm1, %v4235_v32 }
 0x1ab   :  { %v4460_v21 = vadd.f32 %v1019_v40, %v931_v45 }
 0x1ac   :  { %v935_v26 = vpop.f32.mrf.mxu2 }
 0x1ad   :  { %5685 = vst [vmem:[#allocation18_spill] sm:$0xff] %v4460_v21  ;;  %v784_v23 = vpop.f32.mrf.mxu0  ;;  %v1025_v50 = vpop.f32.mrf.mxu3 }
 0x1ae   :  { %v855_v7 = vpop.f32.mrf.mxu1 }
 0x1af   :  { %v856_v58 = vadd.f32 %v855_v7, %v776_v16  ;;  %v1752_v7 = vld [vmem:[%s5664_s7 + $0x40] sm:$0xff] }
 0x1b0   :  { %1435 = vmatmul.f32.gmra.mxu0 %v4266_v47 }
 0x1b1   :  { %v936_v14 = vadd.f32 %v935_v26, %v856_v58  ;;  %1512 = vmatmul.f32.gmra.mxu1 %v1244_v42  ;;  %3618 = vmatmul.msk.f32.gmra.mxu2 %vm635_vm1, %v4251_v39  ;;  %v4606_v26 = vand.u32 4294901760, %v1753_v43 }
 0x1b2   :  { %3630 = vmatmul.msk.f32.gmra.mxu3 %vm635_vm1, %v4251_v39 }
 0x1b3   :  { %v4469_v31 = vadd.f32 %v1025_v50, %v936_v14  ;;  %v4621_v14 = vsub.f32 %v1753_v43, %v4606_v26 }
 0x1b4   :  { %v940_v34 = vpop.f32.mrf.mxu2 }
 0x1b5   :  { %5686 = vst [vmem:[#allocation19_spill] sm:$0xff] %v4469_v31  ;;  %v4473_v32 = vpop.f32.mrf.mxu0  ;;  %v1031_v63 = vpop.f32.mrf.mxu3 }
 0x1b6   :  { %v859_v60 = vpop.f32.mrf.mxu1 }
 0x1b7   :  { %v860_v6 = vadd.f32 %v859_v60, %v784_v23 }
 0x1b8   :  { %1440 = vmatmul.f32.gmra.mxu0 %v4282_v53 }
 0x1b9   :  { %v941_v24 = vadd.f32 %v940_v34, %v860_v6  ;;  %1518 = vmatmul.f32.gmra.mxu1 %v1252_v51  ;;  %3619 = vmatmul.msk.f32.gmra.mxu2 %vm635_vm1, %v4270_v48 }
 0x1ba   :  { %3631 = vmatmul.msk.f32.gmra.mxu3 %vm635_vm1, %v4270_v48 }
 0x1bb   :  { %v4480_v38 = vadd.f32 %v1031_v63, %v941_v24  ;;  %v5676_v63 = vand.u32 4294901760, %v4621_v14 }
 0x1bc   :  { %v4486_v42 = vpop.f32.mrf.mxu2 }
 0x1bd   :  { %5687 = vst [vmem:[#allocation20_spill] sm:$0xff] %v4480_v38  ;;  %v4484_v39 = vpop.f32.mrf.mxu0  ;;  %v4490_v41 = vpop.f32.mrf.mxu3 }
 0x1be   :  { %v4488_v11 = vpop.f32.mrf.mxu1 }
 0x1c0   :  { %1445 = vmatmul.f32.gmra.mxu0 %v4301_v61 }
 0x1c1   :  { %1524 = vmatmul.f32.gmra.mxu1 %v1260_v56  ;;  %3620 = vmatmul.msk.f32.gmra.mxu2 %vm635_vm1, %v4286_v54 }
 0x1c2   :  { %3632 = vmatmul.msk.f32.gmra.mxu3 %vm635_vm1, %v4286_v54 }
 0x1c4   :  { %v4501_v48 = vpop.f32.mrf.mxu2 }
 0x1c5   :  { %v4499_v47 = vpop.f32.mrf.mxu0  ;;  %v4505_v13 = vpop.f32.mrf.mxu3 }
 0x1c6   :  { %v4503_v51 = vpop.f32.mrf.mxu1 }
 0x1c8   :  { %1450 = vmatmul.f32.gmra.mxu0 %v4317_v4 }
 0x1c9   :  { %1530 = vmatmul.f32.gmra.mxu1 %v1268_v2  ;;  %3621 = vmatmul.msk.f32.gmra.mxu2 %vm635_vm1, %v4305_v62 }
 0x1ca   :  { %3633 = vmatmul.msk.f32.gmra.mxu3 %vm635_vm1, %v4305_v62 }
 0x1cc   :  { %v4516_v54 = vpop.f32.mrf.mxu2 }
 0x1cd   :  { %v4514_v53 = vpop.f32.mrf.mxu0  ;;  %v4520_v44 = vpop.f32.mrf.mxu3 }
 0x1ce   :  { %v4518_v56 = vpop.f32.mrf.mxu1 }
 0x1d0   :  { %1455 = vmatmul.f32.gmra.mxu0 %v4336_v19 }
 0x1d1   :  { %1536 = vmatmul.f32.gmra.mxu1 %v1276_v12  ;;  %3622 = vmatmul.msk.f32.gmra.mxu2 %vm635_vm1, %v4321_v5 }
 0x1d2   :  { %3634 = vmatmul.msk.f32.gmra.mxu3 %vm635_vm1, %v4321_v5 }
 0x1d4   :  { %v4531_v62 = vpop.f32.mrf.mxu2 }
 0x1d5   :  { %v4529_v61 = vpop.f32.mrf.mxu0  ;;  %v4535_v17 = vpop.f32.mrf.mxu3 }
 0x1d6   :  { %v4533_v2 = vpop.f32.mrf.mxu1 }
 0x1d8   :  { %1460 = vmatmul.f32.gmra.mxu0 %v4354_v46  ;;  %v1755_v46 = vld [vmem:[%s5664_s7 + $0x58] sm:$0xff] }
 0x1d9   :  { %1542 = vmatmul.f32.gmra.mxu1 %v1284_v59  ;;  %3623 = vmatmul.msk.f32.gmra.mxu2 %vm635_vm1, %v4342_v25 }
 0x1da   :  { %3635 = vmatmul.msk.f32.gmra.mxu3 %vm635_vm1, %v4342_v25 }
 0x1dc   :  { %v4546_v5 = vpop.f32.mrf.mxu2 }
 0x1dd   :  { %v4544_v4 = vpop.f32.mrf.mxu0  ;;  %v4550_v18 = vpop.f32.mrf.mxu3 }
 0x1de   :  { %v4548_v12 = vpop.f32.mrf.mxu1 }
 0x1e0   :  { %1465 = vmatmul.f32.gmra.mxu0 %v4375_v8  ;;  %v1754_v8 = vld [vmem:[%s5664_s7 + $0x50] sm:$0xff] }
 0x1e1   :  { %1548 = vmatmul.f32.gmra.mxu1 %v1292_v22  ;;  %3624 = vmatmul.msk.f32.gmra.mxu2 %vm635_vm1, %v4360_v52  ;;  %v4593_v40 = vand.u32 4294901760, %v1754_v8 }
 0x1e2   :  { %3636 = vmatmul.msk.f32.gmra.mxu3 %vm635_vm1, %v4360_v52  ;;  %v4577_v52 = vand.u32 4294901760, %v1755_v46 }
 0x1e3   :  { %v4603_v23 = vsub.f32 %v1754_v8, %v4593_v40  ;;  %v1750_v8 = vld [vmem:[%s5664_s7 + $0x30] sm:$0xff] }
 0x1e4   :  { %v4561_v25 = vpop.f32.mrf.mxu2  ;;  %2153 = vmatpush.msra.mxu3 %v4577_v52  ;;  %1802 = vmatpush.msra.mxu0 %v4577_v52  ;;  %v4664_v38 = vand.u32 4294901760, %v1750_v8 }
 0x1e5   :  { %v4559_v19 = vpop.f32.mrf.mxu0  ;;  %v4565_v16 = vpop.f32.mrf.mxu3  ;;  %v5673_v58 = vand.u32 4294901760, %v4603_v23 }
 0x1e6   :  { %5688 = vst [vmem:[#allocation21_spill] sm:$0xff] %v4559_v19  ;;  %v4563_v59 = vpop.f32.mrf.mxu1  ;;  %2155 = vmatpush.msra.mxu3 %v4593_v40  ;;  %1804 = vmatpush.msra.mxu0 %v4593_v40 }
 0x1e7   :  { %5689 = vst [vmem:[#allocation22_spill] sm:$0xff] %v4565_v16  ;;  %v1935_v60 = vsub.f32 %v4603_v23, %v5673_v58  ;;  %v1941_v58 = vsub.f32 %v4621_v14, %v5676_v63 }
 0x1e8   :  { %1470 = vmatmul.f32.gmra.mxu0 %v4393_v33  ;;  %v4623_v33 = vand.u32 4294901760, %v1752_v7  ;;  %2157 = vmatpush.msra.mxu3 %v4606_v26 }
 0x1e9   :  { %1554 = vmatmul.f32.gmra.mxu1 %v1300_v30  ;;  %3625 = vmatmul.msk.f32.gmra.mxu2 %vm635_vm1, %v4381_v10 }
 0x1ea   :  { %3637 = vmatmul.msk.f32.gmra.mxu3 %vm635_vm1, %v4381_v10  ;;  %v4591_v10 = vsub.f32 %v1755_v46, %v4577_v52  ;;  %v4637_v6 = vsub.f32 %v1752_v7, %v4623_v33  ;;  %1806 = vmatpush.msra.mxu0 %v4606_v26 }
 0x1eb   :  { %2159 = vmatpush.msra.mxu3 %v4623_v33 }
 0x1ec   :  { %v4581_v28 = vpop.f32.mrf.mxu2  ;;  %v5674_v45 = vand.u32 4294901760, %v4591_v10  ;;  %2053 = vmatpush.msra.mxu2 %v4591_v10  ;;  %1808 = vmatpush.msra.mxu0 %v4623_v33 }
 0x1ed   :  { %v4579_v22 = vpop.f32.mrf.mxu0  ;;  %5691 = vst [vmem:[#allocation24_spill] sm:$0xff] %v4581_v28  ;;  %v4588_v29 = vpop.f32.mrf.mxu3 }
 0x1ee   :  { %5690 = vst [vmem:[#allocation23_spill] sm:$0xff] %v4579_v22  ;;  %v4586_v30 = vpop.f32.mrf.mxu1  ;;  %v1929_v50 = vsub.f32 %v4591_v10, %v5674_v45  ;;  %2056 = vmatpush.msra.mxu2 %v4603_v23  ;;  %v5677_v45 = vand.u32 4294901760, %v4637_v6 }
 0x1ef   :  { %5692 = vst [vmem:[#allocation25_spill] sm:$0xff] %v4586_v30 }
 0x1f0   :  { %5693 = vst [vmem:[#allocation26_spill] sm:$0xff] %v4588_v29  ;;  %1475 = vmatmul.f32.gmra.mxu0 %v4411_v1  ;;  %v1930_v34 = vand.u32 4294901760, %v1929_v50  ;;  %2059 = vmatpush.msra.mxu2 %v4621_v14  ;;  %v1936_v50 = vand.u32 4294901760, %v1935_v60  ;;  %v1942_v60 = vand.u32 4294901760, %v1941_v58  ;;  %v1947_v63 = vsub.f32 %v4637_v6, %v5677_v45  ;;  %v1748_v58 = vld [vmem:[%s5664_s7 + $0x20] sm:$0xff] }
 0x1f1   :  { %1560 = vmatmul.f32.gmra.mxu1 %v1308_v36  ;;  %3626 = vmatmul.msk.f32.gmra.mxu2 %vm635_vm1, %v4399_v37  ;;  %v1751_v36 = vld [vmem:[%s5664_s7 + $0x38] sm:$0xff] }
 0x1f2   :  { %3638 = vmatmul.msk.f32.gmra.mxu3 %vm635_vm1, %v4399_v37  ;;  %v4646_v46 = vand.u32 4294901760, %v1751_v36  ;;  %1931 = vmatpush.msra.mxu1 %v1930_v34  ;;  %v1749_v34 = vld [vmem:[%s5664_s7 + $0x28] sm:$0xff] }
 0x1f3   :  { %2062 = vmatpush.msra.mxu2 %v4637_v6  ;;  %v4673_v31 = vand.u32 4294901760, %v1749_v34 }
 0x1f4   :  { %v4643_v24 = vpop.f32.mrf.mxu2  ;;  %v4661_v15 = vsub.f32 %v1751_v36, %v4646_v46  ;;  %1937 = vmatpush.msra.mxu1 %v1936_v50  ;;  %2161 = vmatpush.msra.mxu3 %v4646_v46  ;;  %v5698_v36 = vand.u32 4294901760, %v4411_v1  ;;  %v1948_v50 = vand.u32 4294901760, %v1947_v63  ;;  %v1747_v63 = vld [vmem:[%s5664_s7 + $0x18] sm:$0xff] }
 0x1f5   :  { %v4641_v37 = vpop.f32.mrf.mxu0  ;;  %5695 = vst [vmem:[#allocation28_spill] sm:$0xff] %v4643_v24  ;;  %v4653_v7 = vpop.f32.mrf.mxu3  ;;  %v4687_v45 = vsub.f32 %v1749_v34, %v4673_v31  ;;  %1810 = vmatpush.msra.mxu0 %v4646_v46 }
 0x1f6   :  { %5694 = vst [vmem:[#allocation27_spill] sm:$0xff] %v4641_v37  ;;  %v4651_v43 = vpop.f32.mrf.mxu1  ;;  %v5678_v21 = vand.u32 4294901760, %v4661_v15  ;;  %2065 = vmatpush.msra.mxu2 %v4661_v15  ;;  %1943 = vmatpush.msra.mxu1 %v1942_v60  ;;  %v4689_v37 = vand.u32 4294901760, %v1748_v58 }
 0x1f7   :  { %5696 = vst [vmem:[#allocation29_spill] sm:$0xff] %v4651_v43  ;;  %2163 = vmatpush.msra.mxu3 %v4664_v38  ;;  %1812 = vmatpush.msra.mxu0 %v4664_v38 }
 0x1f8   :  { %5697 = vst [vmem:[#allocation30_spill] sm:$0xff] %v4653_v7  ;;  %v4680_v7 = vsub.f32 %v1750_v8, %v4664_v38  ;;  %v1953_v1 = vsub.f32 %v4661_v15, %v5678_v21  ;;  %1949 = vmatpush.msra.mxu1 %v1948_v50  ;;  %v4703_v60 = vsub.f32 %v1748_v58, %v4689_v37  ;;  %v1746_v58 = vld [vmem:[%s5664_s7 + $0x10] sm:$0xff] }
 0x1f9   :  { %1566 = vmatmul.f32.gmra.mxu1 %v5698_v36  ;;  %v4705_v36 = vand.u32 4294901760, %v1747_v63  ;;  %2165 = vmatpush.msra.mxu3 %v4673_v31  ;;  %v4733_v22 = vand.u32 4294901760, %v1746_v58 }
 0x1fa   :  { %2068 = vmatpush.msra.mxu2 %v4680_v7  ;;  %v1954_v0 = vand.u32 4294901760, %v1953_v1  ;;  %v5701_v24 = vand.u32 4294901760, %v4680_v7  ;;  %1814 = vmatpush.msra.mxu0 %v4673_v31 }
 0x1fb   :  { %2167 = vmatpush.msra.mxu3 %v4689_v37 }
 0x1fc   :  { %v4710_v8 = vpop.f32.mrf.mxu2  ;;  %v1959_v43 = vsub.f32 %v4680_v7, %v5701_v24  ;;  %2071 = vmatpush.msra.mxu2 %v4687_v45  ;;  %v4729_v24 = vsub.f32 %v1747_v63, %v4705_v36  ;;  %1955 = vmatpush.msra.mxu1 %v1954_v0  ;;  %v4747_v0 = vsub.f32 %v1746_v58, %v4733_v22 }
 0x1fd   :  { %v4708_v21 = vpop.f32.mrf.mxu0  ;;  %5700 = vst [vmem:[#allocation32_spill] sm:$0xff] %v4710_v8  ;;  %v4722_v34 = vpop.f32.mrf.mxu3  ;;  %v5679_v8 = vand.u32 4294901760, %v4703_v60  ;;  %2169 = vmatpush.msra.mxu3 %v4705_v36  ;;  %1816 = vmatpush.msra.mxu0 %v4689_v37 }
 0x1fe   :  { %5699 = vst [vmem:[#allocation31_spill] sm:$0xff] %v4708_v21  ;;  %v4720_v50 = vpop.f32.mrf.mxu1  ;;  %v5704_v21 = vand.u32 4294901760, %v4687_v45  ;;  %v1960_v29 = vand.u32 4294901760, %v1959_v43  ;;  %2074 = vmatpush.msra.mxu2 %v4703_v60  ;;  %v5680_v63 = vand.u32 4294901760, %v4729_v24  ;;  %v1744_v43 = vld [vmem:[%s5664_s7] sm:$0xff]  ;;  %v1982_v58 = vand.u32 4294901760, %v4747_v0 }
 0x1ff   :  { %5702 = vst [vmem:[#allocation33_spill] sm:$0xff] %v4720_v50  ;;  %2171 = vmatpush.msra.mxu3 %v4733_v22  ;;  %1818 = vmatpush.msra.mxu0 %v4705_v36 }
 0x200   :  { %5703 = vst [vmem:[#allocation34_spill] sm:$0xff] %v4722_v34  ;;  %v1965_v1 = vsub.f32 %v4687_v45, %v5704_v21  ;;  %v1745_v34 = vld [vmem:[%s5664_s7 + $0x8] sm:$0xff]  ;;  %v1971_v21 = vsub.f32 %v4703_v60, %v5679_v8  ;;  %1961 = vmatpush.msra.mxu1 %v1960_v29  ;;  %2077 = vmatpush.msra.mxu2 %v4729_v24  ;;  %v4760_v29 = vand.u32 4294901760, %v1744_v43 }
 0x201   :  { %v4743_v57 = vand.u32 4294901760, %v1745_v34  ;;  %v1977_v8 = vsub.f32 %v4729_v24, %v5680_v63  ;;  %1820 = vmatpush.msra.mxu0 %v4733_v22 }
 0x202   :  { %v1966_v50 = vand.u32 4294901760, %v1965_v1  ;;  %v1972_v1 = vand.u32 4294901760, %v1971_v21  ;;  %2080 = vmatpush.msra.mxu2 %v4747_v0  ;;  %v4767_v16 = vsub.f32 %v1744_v43, %v4760_v29 }
 0x203   :  { %v4757_v28 = vsub.f32 %v1745_v34, %v4743_v57  ;;  %v1978_v30 = vand.u32 4294901760, %v1977_v8  ;;  %2173 = vmatpush.msra.mxu3 %v4743_v57  ;;  %1822 = vmatpush.msra.mxu0 %v4743_v57 }
 0x204   :  { %1967 = vmatpush.msra.mxu1 %v1966_v50  ;;  %v4773_v63 = vpop.f32.mrf.mxu2  ;;  %v1983_v50 = vsub.f32 %v4747_v0, %v1982_v58  ;;  %v1994_v55 = vand.u32 4294901760, %v4767_v16 }
 0x205   :  { %v5681_v21 = vand.u32 4294901760, %v4757_v28  ;;  %v4771_v34 = vpop.f32.mrf.mxu0  ;;  %5706 = vst [vmem:[#allocation36_spill] sm:$0xff] %v4773_v63  ;;  %2083 = vmatpush.msra.mxu2 %v4757_v28  ;;  %v4779_v8 = vpop.f32.mrf.mxu3  ;;  %2175 = vmatpush.msra.mxu3 %v4760_v29 }
 0x206   :  { %5705 = vst [vmem:[#allocation35_spill] sm:$0xff] %v4771_v34  ;;  %1973 = vmatpush.msra.mxu1 %v1972_v1  ;;  %v4777_v19 = vpop.f32.mrf.mxu1  ;;  %v1984_v1 = vand.u32 4294901760, %v1983_v50  ;;  %v1995_v34 = vsub.f32 %v4767_v16, %v1994_v55  ;;  %1824 = vmatpush.msra.mxu0 %v4760_v29 }
 0x207   :  { %5707 = vst [vmem:[#allocation37_spill] sm:$0xff] %v4777_v19  ;;  %v1989_v43 = vsub.f32 %v4757_v28, %v5681_v21  ;;  %2086 = vmatpush.msra.mxu2 %v4767_v16  ;;  %v5709_v21 = vand.u32 4294901760, %v4591_v10  ;;  %v1059_v10 = vadd.f32 %v4473_v32, %v4338_v20 }
 0x208   :  { %5708 = vst [vmem:[#allocation38_spill] sm:$0xff] %v4779_v8  ;;  %1979 = vmatpush.msra.mxu1 %v1978_v30  ;;  %v1996_v8 = vand.u32 4294901760, %v1995_v34  ;;  %v5710_v30 = vand.u32 4294901760, %v4603_v23  ;;  %v5711_v34 = vand.u32 4294901760, %v4621_v14 }
 0x209   :  { %v1990_v0 = vand.u32 4294901760, %v1989_v43  ;;  %2256 = vmatpush.msrb.mxu0 %v5709_v21  ;;  %v5712_v21 = vand.u32 4294901760, %v4637_v6  ;;  %v1126_v23 = vadd.f32 %v4488_v11, %v1059_v10  ;;  %v5715_v11 = vand.u32 4294901760, %v4687_v45 }
 0x20a   :  { %1985 = vmatpush.msra.mxu1 %v1984_v1 }
 0x20b   :  { %2260 = vmatpush.msrb.mxu0 %v5710_v30  ;;  %v1233_v32 = vadd.f32 %v4486_v42, %v1126_v23 }
 0x20c   :  { %1991 = vmatpush.msra.mxu1 %v1990_v0  ;;  %v4795_v19 = vpop.f32.mrf.mxu2 }
 0x20d   :  { %v4793_v63 = vpop.f32.mrf.mxu0  ;;  %v4801_v16 = vpop.f32.mrf.mxu3  ;;  %2264 = vmatpush.msrb.mxu0 %v5711_v34 }
 0x20e   :  { %1997 = vmatpush.msra.mxu1 %v1996_v8  ;;  %v4799_v50 = vpop.f32.mrf.mxu1  ;;  %v5713_v8 = vand.u32 4294901760, %v4661_v15  ;;  %v1063_v15 = vadd.f32 %v4484_v39, %v4356_v49 }
 0x20f   :  { %2268 = vmatpush.msrb.mxu0 %v5712_v21 }
 0x210   :  { %2355 = vmatpush.msrb.mxu1 %v4577_v52  ;;  %v1130_v6 = vadd.f32 %v4503_v51, %v1063_v15  ;;  %v1067_v51 = vadd.f32 %v4499_v47, %v4377_v9 }
 0x211   :  { %2272 = vmatpush.msrb.mxu0 %v5713_v8 }
 0x212   :  { %2357 = vmatpush.msrb.mxu1 %v4593_v40  ;;  %v5714_v40 = vand.u32 4294901760, %v4680_v7  ;;  %v1241_v39 = vadd.f32 %v4501_v48, %v1130_v6  ;;  %v1134_v48 = vadd.f32 %v4518_v56, %v1067_v51 }
 0x214   :  { %2359 = vmatpush.msrb.mxu1 %v4606_v26  ;;  %v4816_v14 = vpop.f32.mrf.mxu2  ;;  %2276 = vmatpush.msrb.mxu0 %v5714_v40  ;;  %v5716_v26 = vand.u32 4294901760, %v4703_v60  ;;  %v1708_v60 = vld [vmem:[%s5661_s4] sm:$0xff]  ;;  %v1249_v47 = vadd.f32 %v4516_v54, %v1134_v48 }
 0x215   :  { %v1421_v52 = vpop.f32.mrf.mxu0  ;;  %v4822_v20 = vpop.f32.mrf.mxu3 }
 0x216   :  { %2361 = vmatpush.msrb.mxu1 %v4623_v33  ;;  %v4820_v43 = vpop.f32.mrf.mxu1  ;;  %2280 = vmatpush.msrb.mxu0 %v5715_v11  ;;  %v1352_v33 = vadd.f32 %v4490_v41, %v1233_v32  ;;  %v5718_v41 = vand.u32 4294901760, %v4757_v28  ;;  %v1360_v10 = vadd.f32 %v4520_v44, %v1249_v47 }
 0x218   :  { %2363 = vmatpush.msrb.mxu1 %v4646_v46  ;;  %2284 = vmatpush.msrb.mxu0 %v5716_v26  ;;  %v5717_v46 = vand.u32 4294901760, %v4729_v24  ;;  %v1422_v42 = vadd.f32 %v1421_v52, %v1352_v33 }
 0x21a   :  { %2365 = vmatpush.msrb.mxu1 %v4664_v38  ;;  %2288 = vmatpush.msrb.mxu0 %v5717_v46 }
 0x21c   :  { %2367 = vmatpush.msrb.mxu1 %v4673_v31  ;;  %v1594_v38 = vpop.f32.mrf.mxu2  ;;  %2292 = vmatpush.msrb.mxu0 %v1982_v58 }
 0x21d   :  { %v1426_v45 = vpop.f32.mrf.mxu0  ;;  %v1661_v49 = vpop.f32.mrf.mxu3 }
 0x21e   :  { %2369 = vmatpush.msrb.mxu1 %v4689_v37  ;;  %v1501_v7 = vpop.f32.mrf.mxu1  ;;  %2296 = vmatpush.msrb.mxu0 %v5718_v41 }
 0x21f   :  { %v1502_v31 = vadd.f32 %v1501_v7, %v1422_v42 }
 0x220   :  { %2371 = vmatpush.msrb.mxu1 %v4705_v36  ;;  %2300 = vmatpush.msrb.mxu0 %v1994_v55  ;;  %v1356_v36 = vadd.f32 %v4505_v13, %v1241_v39 }
 0x221   :  { %v1595_v37 = vadd.f32 %v1594_v38, %v1502_v31 }
 0x222   :  { %2373 = vmatpush.msrb.mxu1 %v4733_v22  ;;  %v1427_v28 = vadd.f32 %v1426_v45, %v1356_v36  ;;  %v1710_v45 = vld [vmem:[%s5661_s4 + $0x10] sm:$0xff] }
 0x223   :  { %v1662_v24 = vadd.f32 %v1661_v49, %v1595_v37 }
 0x224   :  { %2375 = vmatpush.msrb.mxu1 %v4743_v57  ;;  %v1598_v1 = vpop.f32.mrf.mxu2  ;;  %v1071_v57 = vadd.f32 %v4514_v53, %v4395_v35 }
 0x225   :  { %v1720_v22 = vadd.f32 %v1708_v60, %v1662_v24  ;;  %v1431_v58 = vpop.f32.mrf.mxu0  ;;  %v1665_v55 = vpop.f32.mrf.mxu3  ;;  %v1079_v24 = vadd.f32 %v4544_v4, %v4425_v27 }
 0x226   :  { %2377 = vmatpush.msrb.mxu1 %v4760_v29  ;;  %v1507_v9 = vpop.f32.mrf.mxu1  ;;  %v1709_v29 = vld [vmem:[%s5661_s4 + $0x8] sm:$0xff]  ;;  %v1138_v21 = vadd.f32 %v4533_v2, %v1071_v57  ;;  %v1432_v8 = vadd.f32 %v1431_v58, %v1360_v10  ;;  %v1075_v2 = vadd.f32 %v4529_v61, %v4413_v3 }
 0x227   :  { %v1732_v0 = vmax.f32 %v1720_v22, 0.0  ;;  %v1508_v30 = vadd.f32 %v1507_v9, %v1427_v28 }
 0x228   :  { %v1257_v15 = vadd.f32 %v4531_v62, %v1138_v21  ;;  %v1142_v62 = vadd.f32 %v4548_v12, %v1075_v2 }
 0x229   :  { %v1762_v13 = vsel %vm1760_vm2, %v1732_v0, 0  ;;  %v1599_v56 = vadd.f32 %v1598_v1, %v1508_v30  ;;  %v1711_v1 = vld [vmem:[%s5661_s4 + $0x18] sm:$0xff] }
 0x22a   :  { %v4857_v34 = vand.u32 4294901760, %v1762_v13  ;;  %v1364_v7 = vadd.f32 %v4535_v17, %v1257_v15  ;;  %v1265_v36 = vadd.f32 %v4546_v5, %v1142_v62  ;;  %v1146_v5 = vadd.f32 %v4563_v59, %v1079_v24  ;;  %v5726_v24 = vld [vmem:[#allocation26_spill] sm:$0xff] }
 0x22b   :  { %v1666_v23 = vadd.f32 %v1665_v55, %v1599_v56 }
 0x22c   :  { %v1826_v54 = vsub.f32 %v1762_v13, %v4857_v34  ;;  %1999 = vmatmul.f32.vlgmr.msra.gmra.mxu1 %v4857_v34  ;;  %v1602_v52 = vpop.f32.mrf.mxu2  ;;  %v1368_v55 = vadd.f32 %v4550_v18, %v1265_v36  ;;  %v1273_v10 = vadd.f32 %v4561_v25, %v1146_v5  ;;  %v5722_v25 = vld [vmem:[#allocation25_spill] sm:$0xff] }
 0x22d   :  { %v1721_v35 = vadd.f32 %v1709_v29, %v1666_v23  ;;  %v1436_v53 = vpop.f32.mrf.mxu0  ;;  %v1669_v11 = vpop.f32.mrf.mxu3  ;;  %v5719_v23 = vld [vmem:[#allocation15_spill] sm:$0xff] }
 0x22e   :  { %v1827_v40 = vand.u32 4294901760, %v1826_v54  ;;  %v1513_v32 = vpop.f32.mrf.mxu1  ;;  %2089 = vmatmul.f32.vlgmr.msra.gmra.mxu2 %v1826_v54  ;;  %v1437_v61 = vadd.f32 %v1436_v53, %v1364_v7 }
 0x22f   :  { %v1733_v26 = vmax.f32 %v1721_v35, 0.0  ;;  %v1514_v33 = vadd.f32 %v1513_v32, %v1432_v8 }
 0x230   :  { %v1828_v44 = vsub.f32 %v1826_v54, %v1827_v40  ;;  %2179 = vmatmul.f32.vlgmr.msra.gmra.mxu3 %v1827_v40  ;;  %v5720_v54 = vld [vmem:[#allocation21_spill] sm:$0xff]  ;;  %v1712_v40 = vld [vmem:[%s5661_s4 + $0x20] sm:$0xff] }
 0x231   :  { %v1765_v6 = vsel %vm1760_vm2, %v1733_v26, 0  ;;  %v1603_v46 = vadd.f32 %v1602_v52, %v1514_v33  ;;  %v1083_v8 = vadd.f32 %v5720_v54, %v5719_v23 }
 0x232   :  { %v4870_v42 = vand.u32 4294901760, %v1765_v6  ;;  %v1829_v38 = vand.u32 4294901760, %v1828_v44 }
 0x233   :  { %v1670_v49 = vadd.f32 %v1669_v11, %v1603_v46  ;;  %v5721_v11 = vld [vmem:[#allocation22_spill] sm:$0xff]  ;;  %v1150_v26 = vadd.f32 %v5722_v25, %v1083_v8 }
 0x234   :  { %1830 = vmatmul.f32.vlgmr.msra.gmra.mxu0 %v1829_v38  ;;  %2003 = vmatmul.f32.gmra.mxu1 %v4870_v42  ;;  %v1834_v3 = vsub.f32 %v1765_v6, %v4870_v42  ;;  %v1606_v41 = vpop.f32.mrf.mxu2  ;;  %v1372_v15 = vadd.f32 %v5721_v11, %v1273_v10 }
 0x235   :  { %v1722_v39 = vadd.f32 %v1710_v45, %v1670_v49  ;;  %v1441_v31 = vpop.f32.mrf.mxu0  ;;  %v1673_v60 = vpop.f32.mrf.mxu3  ;;  %v5723_v49 = vld [vmem:[#allocation24_spill] sm:$0xff] }
 0x236   :  { %v1519_v51 = vpop.f32.mrf.mxu1  ;;  %2094 = vmatmul.f32.gmra.mxu2 %v1834_v3  ;;  %v1835_v37 = vand.u32 4294901760, %v1834_v3  ;;  %v1442_v4 = vadd.f32 %v1441_v31, %v1368_v55 }
 0x237   :  { %v1734_v48 = vmax.f32 %v1722_v39, 0.0  ;;  %v1520_v17 = vadd.f32 %v1519_v51, %v1437_v61  ;;  %v5725_v51 = vld [vmem:[#allocation23_spill] sm:$0xff] }
 0x238   :  { %2185 = vmatmul.f32.gmra.mxu3 %v1835_v37  ;;  %v1836_v12 = vsub.f32 %v1834_v3, %v1835_v37  ;;  %v1281_v3 = vadd.f32 %v5723_v49, %v1150_v26 }
 0x239   :  { %v1768_v28 = vsel %vm1760_vm2, %v1734_v48, 0  ;;  %v1607_v22 = vadd.f32 %v1606_v41, %v1520_v17  ;;  %v5724_v41 = vld [vmem:[#allocation16_spill] sm:$0xff] }
 0x23a   :  { %v4883_v58 = vand.u32 4294901760, %v1768_v28  ;;  %v1837_v9 = vand.u32 4294901760, %v1836_v12  ;;  %v1087_v37 = vadd.f32 %v5725_v51, %v5724_v41  ;;  %v1713_v17 = vld [vmem:[%s5661_s4 + $0x28] sm:$0xff]  ;;  %v5735_v41 = vld [vmem:[#allocation31_spill] sm:$0xff] }
 0x23b   :  { %v1674_v47 = vadd.f32 %v1673_v60, %v1607_v22  ;;  %v5727_v22 = vld [vmem:[#allocation29_spill] sm:$0xff] }
 0x23c   :  { %1838 = vmatmul.f32.gmra.mxu0 %v1837_v9  ;;  %2007 = vmatmul.f32.gmra.mxu1 %v4883_v58  ;;  %v1842_v27 = vsub.f32 %v1768_v28, %v4883_v58  ;;  %v1610_v57 = vpop.f32.mrf.mxu2  ;;  %v1376_v28 = vadd.f32 %v5726_v24, %v1281_v3  ;;  %v5736_v24 = vld [vmem:[#allocation34_spill] sm:$0xff] }
 0x23d   :  { %v1723_v0 = vadd.f32 %v1711_v1, %v1674_v47  ;;  %v1446_v30 = vpop.f32.mrf.mxu0  ;;  %v1677_v29 = vpop.f32.mrf.mxu3  ;;  %v1154_v1 = vadd.f32 %v5727_v22, %v1087_v37  ;;  %v5737_v22 = vld [vmem:[#allocation37_spill] sm:$0xff] }
 0x23e   :  { %v1525_v13 = vpop.f32.mrf.mxu1  ;;  %2099 = vmatmul.f32.gmra.mxu2 %v1842_v27  ;;  %v1843_v56 = vand.u32 4294901760, %v1842_v27  ;;  %v1447_v2 = vadd.f32 %v1446_v30, %v1372_v15  ;;  %v5732_v15 = vld [vmem:[#allocation33_spill] sm:$0xff] }
 0x23f   :  { %v1735_v21 = vmax.f32 %v1723_v0, 0.0  ;;  %v1526_v18 = vadd.f32 %v1525_v13, %v1442_v4  ;;  %v5728_v13 = vld [vmem:[#allocation28_spill] sm:$0xff] }
 0x240   :  { %2191 = vmatmul.f32.gmra.mxu3 %v1843_v56  ;;  %v1844_v59 = vsub.f32 %v1842_v27, %v1843_v56  ;;  %v1289_v56 = vadd.f32 %v5728_v13, %v1154_v1  ;;  %v5738_v13 = vld [vmem:[#allocation36_spill] sm:$0xff] }
 0x241   :  { %v1771_v35 = vsel %vm1760_vm2, %v1735_v21, 0  ;;  %v1611_v53 = vadd.f32 %v1610_v57, %v1526_v18  ;;  %v5729_v18 = vld [vmem:[#allocation17_spill] sm:$0xff] }
 0x242   :  { %v4896_v52 = vand.u32 4294901760, %v1771_v35  ;;  %v1845_v32 = vand.u32 4294901760, %v1844_v59  ;;  %v5730_v59 = vld [vmem:[#allocation27_spill] sm:$0xff] }
 0x243   :  { %v1678_v33 = vadd.f32 %v1677_v29, %v1611_v53  ;;  %v1091_v23 = vadd.f32 %v5730_v59, %v5729_v18  ;;  %v1714_v53 = vld [vmem:[%s5661_s4 + $0x30] sm:$0xff]  ;;  %v5739_v18 = vld [vmem:[#allocation19_spill] sm:$0xff] }
 0x244   :  { %1846 = vmatmul.f32.gmra.mxu0 %v1845_v32  ;;  %2011 = vmatmul.f32.gmra.mxu1 %v4896_v52  ;;  %v1850_v44 = vsub.f32 %v1771_v35, %v4896_v52  ;;  %v1614_v45 = vpop.f32.mrf.mxu2  ;;  %v5731_v32 = vld [vmem:[#allocation30_spill] sm:$0xff]  ;;  %v5740_v59 = vld [vmem:[#allocation35_spill] sm:$0xff] }
 0x245   :  { %v1724_v6 = vadd.f32 %v1712_v40, %v1678_v33  ;;  %v1451_v46 = vpop.f32.mrf.mxu0  ;;  %v1681_v62 = vpop.f32.mrf.mxu3  ;;  %v1380_v11 = vadd.f32 %v5731_v32, %v1289_v56  ;;  %v1158_v25 = vadd.f32 %v5732_v15, %v1091_v23  ;;  %v1099_v23 = vadd.f32 %v5740_v59, %v5739_v18 }
 0x246   :  { %v1531_v38 = vpop.f32.mrf.mxu1  ;;  %2104 = vmatmul.f32.gmra.mxu2 %v1850_v44  ;;  %v1851_v7 = vand.u32 4294901760, %v1850_v44  ;;  %v1452_v5 = vadd.f32 %v1451_v46, %v1376_v28 }
 0x247   :  { %v1736_v61 = vmax.f32 %v1724_v6, 0.0  ;;  %v1532_v39 = vadd.f32 %v1531_v38, %v1447_v2 }
 0x248   :  { %2197 = vmatmul.f32.gmra.mxu3 %v1851_v7  ;;  %v1852_v31 = vsub.f32 %v1850_v44, %v1851_v7 }
 0x249   :  { %v1774_v60 = vsel %vm1760_vm2, %v1736_v61, 0  ;;  %v1615_v36 = vadd.f32 %v1614_v45, %v1532_v39 }
 0x24a   :  { %v4909_v48 = vand.u32 4294901760, %v1774_v60  ;;  %v1853_v12 = vand.u32 4294901760, %v1852_v31  ;;  %v5734_v31 = vld [vmem:[#allocation18_spill] sm:$0xff] }
 0x24b   :  { %v1682_v9 = vadd.f32 %v1681_v62, %v1615_v36  ;;  %v5733_v62 = vld [vmem:[#allocation32_spill] sm:$0xff]  ;;  %v1095_v51 = vadd.f32 %v5735_v41, %v5734_v31 }
 0x24c   :  { %1854 = vmatmul.f32.gmra.mxu0 %v1853_v12  ;;  %2015 = vmatmul.f32.gmra.mxu1 %v4909_v48  ;;  %v1858_v55 = vsub.f32 %v1774_v60, %v4909_v48  ;;  %v1618_v4 = vpop.f32.mrf.mxu2  ;;  %v1297_v49 = vadd.f32 %v5733_v62, %v1158_v25  ;;  %v1166_v25 = vadd.f32 %v4799_v50, %v1099_v23 }
 0x24d   :  { %v1725_v47 = vadd.f32 %v1713_v17, %v1682_v9  ;;  %v1456_v27 = vpop.f32.mrf.mxu0  ;;  %v1685_v57 = vpop.f32.mrf.mxu3  ;;  %v1715_v17 = vld [vmem:[%s5661_s4 + $0x38] sm:$0xff]  ;;  %v1162_v1 = vadd.f32 %v5737_v22, %v1095_v51 }
 0x24e   :  { %v1537_v0 = vpop.f32.mrf.mxu1  ;;  %2109 = vmatmul.f32.gmra.mxu2 %v1858_v55  ;;  %v1859_v30 = vand.u32 4294901760, %v1858_v55  ;;  %v1457_v44 = vadd.f32 %v1456_v27, %v1380_v11  ;;  %v1384_v28 = vadd.f32 %v5736_v24, %v1297_v49  ;;  %v5741_v11 = vld [vmem:[#allocation38_spill] sm:$0xff] }
 0x24f   :  { %v1737_v29 = vmax.f32 %v1725_v47, 0.0  ;;  %v1538_v10 = vadd.f32 %v1537_v0, %v1452_v5  ;;  %v1305_v56 = vadd.f32 %v5738_v13, %v1162_v1 }
 0x250   :  { %2203 = vmatmul.f32.gmra.mxu3 %v1859_v30  ;;  %v1860_v21 = vsub.f32 %v1858_v55, %v1859_v30 }
 0x251   :  { %v1777_v54 = vsel %vm1760_vm2, %v1737_v29, 0  ;;  %v1619_v8 = vadd.f32 %v1618_v4, %v1538_v10  ;;  %v1388_v15 = vadd.f32 %v5741_v11, %v1305_v56 }
 0x252   :  { %v4922_v35 = vand.u32 4294901760, %v1777_v54  ;;  %v1861_v40 = vand.u32 4294901760, %v1860_v21 }
 0x253   :  { %v1686_v26 = vadd.f32 %v1685_v57, %v1619_v8 }
 0x254   :  { %1862 = vmatmul.f32.gmra.mxu0 %v1861_v40  ;;  %2019 = vmatmul.f32.gmra.mxu1 %v4922_v35  ;;  %v1866_v33 = vsub.f32 %v1777_v54, %v4922_v35  ;;  %v1622_v46 = vpop.f32.mrf.mxu2  ;;  %v1716_v40 = vld [vmem:[%s5661_s4 + $0x40] sm:$0xff] }
 0x255   :  { %v1726_v2 = vadd.f32 %v1714_v53, %v1686_v26  ;;  %v1461_v6 = vpop.f32.mrf.mxu0  ;;  %v1689_v7 = vpop.f32.mrf.mxu3 }
 0x256   :  { %v1543_v45 = vpop.f32.mrf.mxu1  ;;  %2114 = vmatmul.f32.gmra.mxu2 %v1866_v33  ;;  %v1867_v38 = vand.u32 4294901760, %v1866_v33  ;;  %v1462_v5 = vadd.f32 %v1461_v6, %v1384_v28 }
 0x257   :  { %v1738_v3 = vmax.f32 %v1726_v2, 0.0  ;;  %v1544_v61 = vadd.f32 %v1543_v45, %v1457_v44 }
 0x258   :  { %2209 = vmatmul.f32.gmra.mxu3 %v1867_v38  ;;  %v1868_v39 = vsub.f32 %v1866_v33, %v1867_v38 }
 0x259   :  { %v1780_v37 = vsel %vm1760_vm2, %v1738_v3, 0  ;;  %v1623_v60 = vadd.f32 %v1622_v46, %v1544_v61  ;;  %v5742_v61 = vld [vmem:[#allocation20_spill] sm:$0xff] }
 0x25a   :  { %v4935_v36 = vand.u32 4294901760, %v1780_v37  ;;  %v1869_v12 = vand.u32 4294901760, %v1868_v39  ;;  %v1103_v39 = vadd.f32 %v4793_v63, %v5742_v61 }
 0x25b   :  { %v1690_v9 = vadd.f32 %v1689_v7, %v1623_v60  ;;  %v1313_v7 = vadd.f32 %v4795_v19, %v1166_v25  ;;  %v1719_v25 = vld [vmem:[%s5661_s4 + $0x58] sm:$0xff] }
 0x25c   :  { %1870 = vmatmul.f32.gmra.mxu0 %v1869_v12  ;;  %2023 = vmatmul.f32.gmra.mxu1 %v4935_v36  ;;  %v1874_v55 = vsub.f32 %v1780_v37, %v4935_v36  ;;  %v1626_v4 = vpop.f32.mrf.mxu2  ;;  %v1717_v37 = vld [vmem:[%s5661_s4 + $0x48] sm:$0xff] }
 0x25d   :  { %v1727_v47 = vadd.f32 %v1715_v17, %v1690_v9  ;;  %v1466_v27 = vpop.f32.mrf.mxu0  ;;  %v1693_v57 = vpop.f32.mrf.mxu3  ;;  %v1392_v19 = vadd.f32 %v4801_v16, %v1313_v7  ;;  %v1170_v17 = vadd.f32 %v4820_v43, %v1103_v39 }
 0x25e   :  { %v1549_v0 = vpop.f32.mrf.mxu1  ;;  %2119 = vmatmul.f32.gmra.mxu2 %v1874_v55  ;;  %v1875_v30 = vand.u32 4294901760, %v1874_v55  ;;  %v1467_v44 = vadd.f32 %v1466_v27, %v1388_v15 }
 0x25f   :  { %v1739_v29 = vmax.f32 %v1727_v47, 0.0  ;;  %v1550_v10 = vadd.f32 %v1549_v0, %v1462_v5  ;;  %v1321_v5 = vadd.f32 %v4816_v14, %v1170_v17 }
 0x260   :  { %2215 = vmatmul.f32.gmra.mxu3 %v1875_v30  ;;  %v1876_v21 = vsub.f32 %v1874_v55, %v1875_v30 }
 0x261   :  { %v1783_v54 = vsel %vm1760_vm2, %v1739_v29, 0  ;;  %v1627_v8 = vadd.f32 %v1626_v4, %v1550_v10  ;;  %v1396_v56 = vadd.f32 %v4822_v20, %v1321_v5 }
 0x262   :  { %v4948_v53 = vand.u32 4294901760, %v1783_v54  ;;  %v1877_v32 = vand.u32 4294901760, %v1876_v21 }
 0x263   :  { %v1694_v26 = vadd.f32 %v1693_v57, %v1627_v8  ;;  %v1718_v57 = vld [vmem:[%s5661_s4 + $0x50] sm:$0xff] }
 0x264   :  { %1878 = vmatmul.f32.gmra.mxu0 %v1877_v32  ;;  %2027 = vmatmul.f32.gmra.mxu1 %v4948_v53  ;;  %v1882_v33 = vsub.f32 %v1783_v54, %v4948_v53  ;;  %v1630_v6 = vpop.f32.mrf.mxu2 }
 0x265   :  { %v1728_v2 = vadd.f32 %v1716_v40, %v1694_v26  ;;  %v1697_v38 = vpop.f32.mrf.mxu3  ;;  %v1471_v3 = vpop.f32.mrf.mxu0 }
 0x266   :  { %v1555_v46 = vpop.f32.mrf.mxu1  ;;  %2124 = vmatmul.f32.gmra.mxu2 %v1882_v33  ;;  %v1883_v45 = vand.u32 4294901760, %v1882_v33  ;;  %v1472_v24 = vadd.f32 %v1471_v3, %v1392_v19 }
 0x267   :  { %v1740_v62 = vmax.f32 %v1728_v2, 0.0  ;;  %v1556_v49 = vadd.f32 %v1555_v46, %v1467_v44 }
 0x268   :  { %2221 = vmatmul.f32.gmra.mxu3 %v1883_v45  ;;  %v1884_v50 = vsub.f32 %v1882_v33, %v1883_v45 }
 0x269   :  { %v1786_v31 = vsel %vm1760_vm2, %v1740_v62, 0  ;;  %v1631_v41 = vadd.f32 %v1630_v6, %v1556_v49 }
 0x26a   :  { %v4961_v51 = vand.u32 4294901760, %v1786_v31  ;;  %v1885_v60 = vand.u32 4294901760, %v1884_v50 }
 0x26b   :  { %v1698_v12 = vadd.f32 %v1697_v38, %v1631_v41 }
 0x26c   :  { %1886 = vmatmul.f32.gmra.mxu0 %v1885_v60  ;;  %2031 = vmatmul.f32.gmra.mxu1 %v4961_v51  ;;  %v1890_v63 = vsub.f32 %v1786_v31, %v4961_v51  ;;  %v1634_v22 = vpop.f32.mrf.mxu2  ;;  %v5005_v31 = vld [vmem:[%s5665_s8] ss:$0 sm:$0xff] }
 0x26d   :  { %v1729_v28 = vadd.f32 %v1717_v37, %v1698_v12  ;;  %v1701_v55 = vpop.f32.mrf.mxu3  ;;  %v1476_v30 = vpop.f32.mrf.mxu0 }
 0x26e   :  { %v1561_v1 = vpop.f32.mrf.mxu1  ;;  %2129 = vmatmul.f32.gmra.mxu2 %v1890_v63  ;;  %v1891_v9 = vand.u32 4294901760, %v1890_v63  ;;  %v1477_v10 = vadd.f32 %v1476_v30, %v1396_v56 }
 0x26f   :  { %v1741_v47 = vmax.f32 %v1729_v28, 0.0  ;;  %v1562_v27 = vadd.f32 %v1561_v1, %v1472_v24 }
 0x270   :  { %2227 = vmatmul.f32.gmra.mxu3 %v1891_v9  ;;  %v1892_v16 = vsub.f32 %v1890_v63, %v1891_v9 }
 0x271   :  { %v1789_v43 = vsel %vm1760_vm2, %v1741_v47, 0  ;;  %v1635_v4 = vadd.f32 %v1634_v22, %v1562_v27 }
 0x272   :  { %v4972_v0 = vand.u32 4294901760, %v1789_v43  ;;  %v1893_v13 = vand.u32 4294901760, %v1892_v16 }
 0x273   :  { %v1702_v29 = vadd.f32 %v1701_v55, %v1635_v4 }
 0x274   :  { %1894 = vmatmul.f32.gmra.mxu0 %v1893_v13  ;;  %2035 = vmatmul.f32.gmra.mxu1 %v4972_v0  ;;  %v1898_v14 = vsub.f32 %v1789_v43, %v4972_v0  ;;  %v1638_v59 = vpop.f32.mrf.mxu2 }
 0x275   :  { %v1730_v21 = vadd.f32 %v1718_v57, %v1702_v29  ;;  %v1705_v40 = vpop.f32.mrf.mxu3 }
 0x276   :  { %v1567_v18 = vpop.f32.mrf.mxu1  ;;  %2134 = vmatmul.f32.gmra.mxu2 %v1898_v14  ;;  %v1899_v23 = vand.u32 4294901760, %v1898_v14 }
 0x277   :  { %v1742_v54 = vmax.f32 %v1730_v21, 0.0  ;;  %v1568_v8 = vadd.f32 %v1567_v18, %v1477_v10 }
 0x278   :  { %2233 = vmatmul.f32.gmra.mxu3 %v1899_v23  ;;  %v1900_v32 = vsub.f32 %v1898_v14, %v1899_v23 }
 0x279   :  { %v1792_v11 = vsel %vm1760_vm2, %v1742_v54, 0  ;;  %v1639_v20 = vadd.f32 %v1638_v59, %v1568_v8 }
 0x27a   :  { %v4981_v15 = vand.u32 4294901760, %v1792_v11  ;;  %v1901_v26 = vand.u32 4294901760, %v1900_v32 }
 0x27b   :  { %v1706_v33 = vadd.f32 %v1705_v40, %v1639_v20 }
 0x27c   :  { %1902 = vmatmul.f32.gmra.mxu0 %v1901_v26  ;;  %2039 = vmatmul.f32.gmra.mxu1 %v4981_v15  ;;  %v1906_v44 = vsub.f32 %v1792_v11, %v4981_v15 }
 0x27d   :  { %v1731_v2 = vadd.f32 %v1719_v25, %v1706_v33 }
 0x27e   :  { %2139 = vmatmul.f32.gmra.mxu2 %v1906_v44  ;;  %v1907_v6 = vand.u32 4294901760, %v1906_v44 }
 0x27f   :  { %v1743_v46 = vmax.f32 %v1731_v2, 0.0 }
 0x280   :  { %2239 = vmatmul.f32.gmra.mxu3 %v1907_v6  ;;  %v1908_v45 = vsub.f32 %v1906_v44, %v1907_v6 }
 0x281   :  { %v1795_v38 = vsel %vm1760_vm2, %v1743_v46, 0 }
 0x282   :  { %v4989_v7 = vand.u32 4294901760, %v1795_v38  ;;  %v1909_v62 = vand.u32 4294901760, %v1908_v45 }
 0x284   :  { %1910 = vmatmul.f32.gmra.mxu0 %v1909_v62  ;;  %2043 = vmatmul.f32.gmra.mxu1 %v4989_v7  ;;  %v1914_v49 = vsub.f32 %v1795_v38, %v4989_v7 }
 0x286   :  { %2144 = vmatmul.f32.gmra.mxu2 %v1914_v49  ;;  %v1915_v3 = vand.u32 4294901760, %v1914_v49 }
 0x288   :  { %2245 = vmatmul.f32.gmra.mxu3 %v1915_v3  ;;  %v1916_v50 = vsub.f32 %v1914_v49, %v1915_v3 }
 0x28a   :  { %v1917_v61 = vand.u32 4294901760, %v1916_v50 }
 0x28c   :  { %1918 = vmatmul.f32.gmra.mxu0 %v1917_v61  ;;  %2379 = vmatmul.f32.vlgmr.msrb.gmra.mxu1 %v4857_v34 }
 0x294   :  { %2302 = vmatmul.f32.vlgmr.msrb.gmra.mxu0 %v4857_v34  ;;  %2383 = vmatmul.f32.gmra.mxu1 %v4870_v42 }
 0x29c   :  { %2306 = vmatmul.f32.gmra.mxu0 %v4870_v42  ;;  %2387 = vmatmul.f32.gmra.mxu1 %v4883_v58 }
 0x2a4   :  { %2310 = vmatmul.f32.gmra.mxu0 %v4883_v58  ;;  %2391 = vmatmul.f32.gmra.mxu1 %v4896_v52 }
 0x2a9   :  { %v2000_v39 = vpop.f32.mrf.mxu1 }
 0x2ac   :  { %2314 = vmatmul.f32.gmra.mxu0 %v4896_v52  ;;  %2395 = vmatmul.f32.gmra.mxu1 %v4909_v48 }
 0x2b1   :  { %v1831_v34 = vpop.f32.mrf.mxu0  ;;  %v2004_v41 = vpop.f32.mrf.mxu1 }
 0x2b2   :  { %v1832_v42 = vadd.f32 %v5005_v31, %v1831_v34  ;;  %v2090_v37 = vpop.f32.mrf.mxu2 }
 0x2b3   :  { %v2180_v60 = vpop.f32.mrf.mxu3 }
 0x2b4   :  { %v2001_v19 = vadd.f32 %v2000_v39, %v1832_v42  ;;  %2318 = vmatmul.f32.gmra.mxu0 %v4909_v48  ;;  %2399 = vmatmul.f32.gmra.mxu1 %v4922_v35 }
 0x2b6   :  { %v2091_v58 = vadd.f32 %v2090_v37, %v2001_v19 }
 0x2b8   :  { %v5010_v52 = vadd.f32 %v2180_v60, %v2091_v58 }
 0x2b9   :  { %v1839_v17 = vpop.f32.mrf.mxu0  ;;  %v2008_v12 = vpop.f32.mrf.mxu1 }
 0x2ba   :  { %v1840_v63 = vadd.f32 %v5005_v31, %v1839_v17  ;;  %v2095_v24 = vpop.f32.mrf.mxu2 }
 0x2bb   :  { %v2186_v28 = vpop.f32.mrf.mxu3 }
 0x2bc   :  { %v2005_v22 = vadd.f32 %v2004_v41, %v1840_v63  ;;  %2322 = vmatmul.f32.gmra.mxu0 %v4922_v35  ;;  %2403 = vmatmul.f32.gmra.mxu1 %v4935_v36 }
 0x2be   :  { %v2096_v1 = vadd.f32 %v2095_v24, %v2005_v22 }
 0x2c0   :  { %v5015_v9 = vadd.f32 %v2186_v28, %v2096_v1 }
 0x2c1   :  { %v1847_v48 = vpop.f32.mrf.mxu0  ;;  %v2012_v55 = vpop.f32.mrf.mxu1 }
 0x2c2   :  { %v1848_v5 = vadd.f32 %v5005_v31, %v1847_v48  ;;  %v2100_v47 = vpop.f32.mrf.mxu2 }
 0x2c3   :  { %v2192_v27 = vpop.f32.mrf.mxu3 }
 0x2c4   :  { %v2009_v16 = vadd.f32 %v2008_v12, %v1848_v5  ;;  %2326 = vmatmul.f32.gmra.mxu0 %v4935_v36  ;;  %2407 = vmatmul.f32.gmra.mxu1 %v4948_v53 }
 0x2c6   :  { %v2101_v43 = vadd.f32 %v2100_v47, %v2009_v16 }
 0x2c8   :  { %v2193_v4 = vadd.f32 %v2192_v27, %v2101_v43 }
 0x2c9   :  { %v1855_v30 = vpop.f32.mrf.mxu0  ;;  %v2016_v35 = vpop.f32.mrf.mxu1 }
 0x2ca   :  { %v1856_v57 = vadd.f32 %v5005_v31, %v1855_v30  ;;  %v2105_v13 = vpop.f32.mrf.mxu2 }
 0x2cb   :  { %v2198_v29 = vpop.f32.mrf.mxu3 }
 0x2cc   :  { %v2013_v56 = vadd.f32 %v2012_v55, %v1856_v57  ;;  %2330 = vmatmul.f32.gmra.mxu0 %v4948_v53  ;;  %2411 = vmatmul.f32.gmra.mxu1 %v4961_v51 }
 0x2ce   :  { %v2106_v14 = vadd.f32 %v2105_v13, %v2013_v56 }
 0x2d0   :  { %v2199_v10 = vadd.f32 %v2198_v29, %v2106_v14 }
 0x2d1   :  { %v1863_v21 = vpop.f32.mrf.mxu0  ;;  %v5023_v18 = vpop.f32.mrf.mxu1 }
 0x2d2   :  { %v1864_v36 = vadd.f32 %v5005_v31, %v1863_v21  ;;  %v2110_v23 = vpop.f32.mrf.mxu2 }
 0x2d3   :  { %v2204_v8 = vpop.f32.mrf.mxu3 }
 0x2d4   :  { %v2017_v59 = vadd.f32 %v2016_v35, %v1864_v36  ;;  %2334 = vmatmul.f32.gmra.mxu0 %v4961_v51  ;;  %2415 = vmatmul.f32.gmra.mxu1 %v4972_v0 }
 0x2d6   :  { %v2111_v54 = vadd.f32 %v2110_v23, %v2017_v59 }
 0x2d8   :  { %v2205_v40 = vadd.f32 %v2204_v8, %v2111_v54 }
 0x2d9   :  { %v5028_v53 = vpop.f32.mrf.mxu0  ;;  %v2024_v32 = vpop.f32.mrf.mxu1 }
 0x2da   :  { %v2115_v55 = vpop.f32.mrf.mxu2 }
 0x2db   :  { %v2210_v27 = vpop.f32.mrf.mxu3 }
 0x2dc   :  { %2338 = vmatmul.f32.gmra.mxu0 %v4972_v0  ;;  %2419 = vmatmul.f32.gmra.mxu1 %v4981_v15 }
 0x2e1   :  { %v1879_v11 = vpop.f32.mrf.mxu0  ;;  %v2028_v20 = vpop.f32.mrf.mxu1 }
 0x2e2   :  { %v1880_v25 = vadd.f32 %v5005_v31, %v1879_v11 }
 0x2e4   :  { %v5033_v26 = vadd.f32 %v2024_v32, %v1880_v25  ;;  %2342 = vmatmul.f32.gmra.mxu0 %v4981_v15  ;;  %2423 = vmatmul.f32.gmra.mxu1 %v4989_v7 }
 0x2e9   :  { %v1887_v51 = vpop.f32.mrf.mxu0  ;;  %v2032_v33 = vpop.f32.mrf.mxu1 }
 0x2ea   :  { %v1888_v44 = vadd.f32 %v5005_v31, %v1887_v51 }
 0x2ec   :  { %v5038_v2 = vadd.f32 %v2028_v20, %v1888_v44  ;;  %2346 = vmatmul.f32.gmra.mxu0 %v4989_v7 }
 0x2f1   :  { %v1895_v0 = vpop.f32.mrf.mxu0  ;;  %v2036_v6 = vpop.f32.mrf.mxu1 }
 0x2f2   :  { %v1896_v46 = vadd.f32 %v5005_v31, %v1895_v0 }
 0x2f4   :  { %v2033_v45 = vadd.f32 %v2032_v33, %v1896_v46 }
 0x2f9   :  { %v1903_v38 = vpop.f32.mrf.mxu0  ;;  %v2040_v62 = vpop.f32.mrf.mxu1 }
 0x2fa   :  { %v1904_v49 = vadd.f32 %v5005_v31, %v1903_v38 }
 0x2fc   :  { %v2037_v15 = vadd.f32 %v2036_v6, %v1904_v49 }
 0x301   :  { %v1911_v3 = vpop.f32.mrf.mxu0  ;;  %v2044_v50 = vpop.f32.mrf.mxu1 }
 0x302   :  { %v1912_v61 = vadd.f32 %v5005_v31, %v1911_v3  ;;  %v3727_v3 = vld [vmem:[%s5660_s3 + $0x28] sm:$0xff]  }
 0x304   :  { %v2041_v39 = vadd.f32 %v2040_v62, %v1912_v61 }
 0x309   :  { %v1919_v34 = vpop.f32.mrf.mxu0  ;;  %v2380_v41 = vpop.f32.mrf.mxu1 }
 0x30a   :  { %v1920_v42 = vadd.f32 %v5005_v31, %v1919_v34 }
 0x30c   :  { %v5045_v7 = vadd.f32 %v2044_v50, %v1920_v42  ;;  %v3711_v42 = vunpack.c.l.bf16 %v3727_v3 }
 0x311   :  { %v2303_v37 = vpop.f32.mrf.mxu0  ;;  %v2384_v60 = vpop.f32.mrf.mxu1 }
 0x312   :  { %v2304_v19 = vadd.f32 %v2303_v37, %v5010_v52  ;;  %v2120_v52 = vpop.f32.mrf.mxu2 }
 0x313   :  { %v2121_v49 = vadd.f32 %v2120_v52, %v5033_v26  ;;  %v3726_v26 = vld [vmem:[%s5660_s3 + $0x20] sm:$0xff]  }
 0x314   :  { %v5048_v58 = vadd.f32 %v2380_v41, %v2304_v19  ;;  %v3708_v19 = vunpack.c.h.bf16 %v3726_v26 }
 0x319   :  { %v2307_v17 = vpop.f32.mrf.mxu0  ;;  %v2388_v12 = vpop.f32.mrf.mxu1 }
 0x31a   :  { %v2308_v63 = vadd.f32 %v2307_v17, %v5015_v9  ;;  %v2216_v9 = vpop.f32.mrf.mxu3 }
 0x31b   :  { %v2217_v37 = vadd.f32 %v2216_v9, %v2121_v49 }
 0x31c   :  { %v5051_v24 = vadd.f32 %v2384_v60, %v2308_v63 }
 0x321   :  { %v2311_v28 = vpop.f32.mrf.mxu0  ;;  %v2392_v22 = vpop.f32.mrf.mxu1 }
 0x322   :  { %v2312_v1 = vadd.f32 %v2311_v28, %v2193_v4  ;;  %v2125_v4 = vpop.f32.mrf.mxu2  ;;  %v2222_v14 = vpop.f32.mrf.mxu3 }
 0x323   :  { %v2126_v38 = vadd.f32 %v2125_v4, %v5038_v2 }
 0x324   :  { %v5053_v48 = vadd.f32 %v2388_v12, %v2312_v1  ;;  %v3725_v1 = vld [vmem:[%s5660_s3 + $0x18] sm:$0xff]  }
 0x325   :  { %v3704_v52 = vunpack.c.h.bf16 %v3725_v1  ;;  %v3703_v9 = vunpack.c.l.bf16 %v3725_v1 }
 0x329   :  { %v2315_v5 = vpop.f32.mrf.mxu0  ;;  %v2396_v47 = vpop.f32.mrf.mxu1 }
 0x32a   :  { %v2316_v16 = vadd.f32 %v2315_v5, %v2199_v10  ;;  %v2130_v59 = vpop.f32.mrf.mxu2  ;;  %v2228_v23 = vpop.f32.mrf.mxu3 }
 0x32b   :  { %v2131_v44 = vadd.f32 %v2130_v59, %v2033_v45  ;;  %v2223_v45 = vadd.f32 %v2222_v14, %v2126_v38 }
 0x32c   :  { %v5055_v43 = vadd.f32 %v2392_v22, %v2316_v16 }
 0x32d   :  { %v2229_v50 = vadd.f32 %v2228_v23, %v2131_v44  ;;  %v3712_v23 = vunpack.c.h.bf16 %v3727_v3  ;;  %v2455_v44 = vpop.trf.xlu0 }
 0x331   :  { %v2319_v30 = vpop.f32.mrf.mxu0  ;;  %v5057_v35 = vpop.f32.mrf.mxu1 }
 0x332   :  { %v2320_v57 = vadd.f32 %v2319_v30, %v2205_v40  ;;  %v2135_v8 = vpop.f32.mrf.mxu2  ;;  %v2234_v11 = vpop.f32.mrf.mxu3  ;;  %v1872_v40 = vadd.f32 %v5005_v31, %v5028_v53 }
 0x333   :  { %v2136_v33 = vadd.f32 %v2135_v8, %v2037_v15 }
 0x334   :  { %v5059_v13 = vadd.f32 %v2396_v47, %v2320_v57  ;;  %v2021_v46 = vadd.f32 %v5023_v18, %v1872_v40 }
 0x335   :  { %v2235_v62 = vadd.f32 %v2234_v11, %v2136_v33 }
 0x336   :  { %v2116_v31 = vadd.f32 %v2115_v55, %v2021_v46  ;;  %v3707_v55 = vunpack.c.l.bf16 %v3726_v26 }
 0x338   :  { %v2211_v28 = vadd.f32 %v2210_v27, %v2116_v31  ;;  %v3724_v27 = vld [vmem:[%s5660_s3 + $0x10] sm:$0xff]  }
 0x339   :  { %v2323_v56 = vpop.f32.mrf.mxu0  ;;  %v2404_v29 = vpop.f32.mrf.mxu1  ;;  %v3700_v8 = vunpack.c.h.bf16 %v3724_v27 }
 0x33a   :  { %v2140_v25 = vpop.f32.mrf.mxu2  ;;  %v2240_v6 = vpop.f32.mrf.mxu3 }
 0x33b   :  { %v2141_v0 = vadd.f32 %v2140_v25, %v2041_v39  ;;  %v3723_v25 = vld [vmem:[%s5660_s3 + $0x8] sm:$0xff]  }
 0x33d   :  { %v2241_v61 = vadd.f32 %v2240_v6, %v2141_v0  ;;  %v3696_v0 = vunpack.c.h.bf16 %v3723_v25 }
 0x341   :  { %v2327_v21 = vpop.f32.mrf.mxu0  ;;  %v2408_v36 = vpop.f32.mrf.mxu1 }
 0x342   :  { %v2145_v39 = vpop.f32.mrf.mxu2  ;;  %v2328_v63 = vadd.f32 %v2327_v21, %v2217_v37  ;;  %v2246_v22 = vpop.f32.mrf.mxu3 }
 0x343   :  { %v2146_v2 = vadd.f32 %v2145_v39, %v5045_v7  ;;  %v2324_v7 = vadd.f32 %v2323_v56, %v2211_v28 }
 0x344   :  { %v2405_v4 = vadd.f32 %v2404_v29, %v2328_v63 }
 0x345   :  { %v2247_v16 = vadd.f32 %v2246_v22, %v2146_v2 }
 0x346   :  { %v2433_v29 = vmul.f32 %v3703_v9, %v2405_v4 }
 0x348   :  { %v5100_v3 = vand.u32 4294901760, %v2433_v29 }
 0x349   :  { %v2331_v54 = vpop.f32.mrf.mxu0  ;;  %v2412_v10 = vpop.f32.mrf.mxu1 }
 0x34a   :  { %v2332_v60 = vadd.f32 %v2331_v54, %v2223_v45 }
 0x34c   :  { %v2409_v30 = vadd.f32 %v2408_v36, %v2332_v60 }
 0x34e   :  { %v2434_v56 = vmul.f32 %v3704_v52, %v2409_v30 }
 0x351   :  { %v2335_v32 = vpop.f32.mrf.mxu0  ;;  %v2416_v20 = vpop.f32.mrf.mxu1 }
 0x352   :  { %v2336_v41 = vadd.f32 %v2335_v32, %v2229_v50  ;;  %v2401_v32 = vadd.f32 %v5057_v35, %v2324_v7  ;;  %v5092_v35 = vand.u32 4294901760, %v2434_v56  ;;  %v3690_v50 = vld [vmem:[%s5660_s3] sm:$0xff]  }
 0x354   :  { %v2413_v5 = vadd.f32 %v2412_v10, %v2336_v41  ;;  %v2432_v6 = vmul.f32 %v3700_v8, %v2401_v32  ;;  %v5118_v39 = vsub.f32 %v2434_v56, %v5092_v35 }
 0x356   :  { %v2435_v21 = vmul.f32 %v3707_v55, %v2413_v5  ;;  %v5115_v45 = vand.u32 4294901760, %v2432_v6  ;;  %v2552_v1 = vand.u32 4294901760, %v5118_v39  ;;  %v2456_v55 = vpop.trf.xlu0 }
 0x358   :  { %v5087_v40 = vand.u32 4294901760, %v2435_v21  ;;  %v5143_v63 = vsub.f32 %v2432_v6, %v5115_v45 }
 0x359   :  { %v2339_v51 = vpop.f32.mrf.mxu0  ;;  %v2420_v53 = vpop.f32.mrf.mxu1 }
 0x35a   :  { %v2340_v34 = vadd.f32 %v2339_v51, %v2235_v62  ;;  %v3695_v62 = vunpack.c.l.bf16 %v3723_v25 }
 0x35c   :  { %v2417_v17 = vadd.f32 %v2416_v20, %v2340_v34  ;;  %v3699_v20 = vunpack.c.l.bf16 %v3724_v27  ;;  %v2429_v37 = vmul.f32 %v3695_v62, %v5053_v48  ;;  %v2564_v27 = vand.u32 4294901760, %v5143_v63 }
 0x35e   :  { %v2436_v57 = vmul.f32 %v3708_v19, %v2417_v17  ;;  %v2431_v49 = vmul.f32 %v3699_v20, %v5059_v13  ;;  %v2472_v13 = vsel %vm1760_vm2, %v2455_v44, 0 }
 0x35f   :  { %v5137_v17 = vand.u32 4294901760, %v2472_v13 }
 0x360   :  { %v5082_v11 = vand.u32 4294901760, %v2436_v57  ;;  %v5124_v2 = vand.u32 4294901760, %v2431_v49 }
 0x361   :  { %v2343_v15 = vpop.f32.mrf.mxu0  ;;  %v2424_v10 = vpop.f32.mrf.mxu1  ;;  %v5162_v30 = vsub.f32 %v2472_v13, %v5137_v17 }
 0x362   :  { %v2344_v18 = vadd.f32 %v2343_v15, %v2241_v61  ;;  %v5095_v46 = vsub.f32 %v2436_v57, %v5082_v11  ;;  %v5106_v61 = vsub.f32 %v2435_v21, %v5087_v40  ;;  %v2430_v15 = vmul.f32 %v3696_v0, %v5055_v43 }
 0x363   :  { %v5127_v43 = vsub.f32 %v2433_v29, %v5100_v3  ;;  %v2507_v32 = vand.u32 4294901760, %v5162_v30  ;;  %v2565_v29 = vsub.f32 %v5143_v63, %v2564_v27 }
 0x364   :  { %v2421_v12 = vadd.f32 %v2420_v53, %v2344_v18  ;;  %v3692_v53 = vunpack.c.h.bf16 %v3690_v50  ;;  %v3691_v18 = vunpack.c.l.bf16 %v3690_v50  ;;  %v2546_v19 = vand.u32 4294901760, %v5106_v61 }
 0x365   :  { %v2558_v52 = vand.u32 4294901760, %v5127_v43  ;;  %v2508_v62 = vsub.f32 %v5162_v30, %v2507_v32  ;;  %v2566_v50 = vand.u32 4294901760, %v2565_v29  ;;  %v2814_v29 = vld [vmem:[%s5666_s9 + $0x38] sm:$0xff] }
 0x366   :  { %v2437_v47 = vmul.f32 %v3711_v42, %v2421_v12  ;;  %v2540_v42 = vand.u32 4294901760, %v5095_v46  ;;  %v2428_v48 = vmul.f32 %v3692_v53, %v5051_v24  ;;  %v5140_v12 = vand.u32 4294901760, %v2430_v15 }
 0x367   :  { %v2427_v5 = vmul.f32 %v3691_v18, %v5048_v58  ;;  %v5154_v24 = vsub.f32 %v2431_v49, %v5124_v2  ;;  %v2547_v7 = vsub.f32 %v5106_v61, %v2546_v19  ;;  %v2475_v58 = vsel %vm1760_vm2, %v2456_v55, 0 }
 0x368   :  { %v5079_v59 = vand.u32 4294901760, %v2437_v47  ;;  %v2541_v22 = vsub.f32 %v5095_v46, %v2540_v42  ;;  %v5164_v57 = vand.u32 4294901760, %v2428_v48  ;;  %v5168_v9 = vsub.f32 %v2430_v15, %v5140_v12 }
 0x369   :  { %v2347_v14 = vpop.f32.mrf.mxu0  ;;  %v5175_v21 = vand.u32 4294901760, %v2427_v5  ;;  %v2548_v8 = vand.u32 4294901760, %v2547_v7  ;;  %v5186_v56 = vand.u32 4294901760, %v2475_v58 }
 0x36a   :  { %v2348_v54 = vadd.f32 %v2347_v14, %v2247_v16  ;;  %v5090_v51 = vsub.f32 %v2437_v47, %v5079_v59  ;;  %v5151_v47 = vand.u32 4294901760, %v2429_v37  ;;  %v2542_v4 = vand.u32 4294901760, %v2541_v22 }
 0x36b   :  { %v2553_v14 = vsub.f32 %v5118_v39, %v2552_v1  ;;  %v2576_v25 = vand.u32 4294901760, %v5168_v9  ;;  %v5208_v49 = vsub.f32 %v2475_v58, %v5186_v56 }
 0x36c   :  { %v2425_v36 = vadd.f32 %v2424_v10, %v2348_v54  ;;  %v2534_v31 = vand.u32 4294901760, %v5090_v51  ;;  %v2570_v54 = vand.u32 4294901760, %v5154_v24  ;;  %v2559_v10 = vsub.f32 %v5127_v43, %v2558_v52 }
 0x36d   :  { %v2554_v20 = vand.u32 4294901760, %v2553_v14  ;;  %v2577_v53 = vsub.f32 %v5168_v9, %v2576_v25 }
 0x36e   :  { %v2438_v33 = vmul.f32 %v3712_v23, %v2425_v36  ;;  %v2535_v60 = vsub.f32 %v5090_v51, %v2534_v31  ;;  %v5178_v23 = vsub.f32 %v2429_v37, %v5151_v47  ;;  %v5189_v36 = vsub.f32 %v2428_v48, %v5164_v57 }
 0x36f   :  { %v2560_v0 = vand.u32 4294901760, %v2559_v10  ;;  %v2571_v6 = vsub.f32 %v5154_v24, %v2570_v54  ;;  %v2578_v48 = vand.u32 4294901760, %v2577_v53 }
 0x370   :  { %v5097_v38 = vand.u32 4294901760, %v2438_v33  ;;  %v2536_v16 = vand.u32 4294901760, %v2535_v60  ;;  %v2582_v44 = vand.u32 4294901760, %v5178_v23  ;;  %v2588_v15 = vand.u32 4294901760, %v5189_v36 }
 0x371   :  { %v2572_v18 = vand.u32 4294901760, %v2571_v6  ;;  %v2515_v60 = vand.u32 4294901760, %v5208_v49 }
 0x372   :  { %v5109_v34 = vsub.f32 %v2438_v33, %v5097_v38  ;;  %2482 = vmatpush.msrb.mxu2 %v5097_v38  ;;  %v5197_v33 = vsub.f32 %v2427_v5, %v5175_v21  ;;  %v2583_v37 = vsub.f32 %v5178_v23, %v2582_v44 }
 0x373   :  { %v2516_v5 = vsub.f32 %v5208_v49, %v2515_v60 }
 0x374   :  { %2484 = vmatpush.msrb.mxu2 %v5079_v59  ;;  %v2528_v41 = vand.u32 4294901760, %v5109_v34  ;;  %v2594_v13 = vand.u32 4294901760, %v5197_v33  ;;  %v2584_v22 = vand.u32 4294901760, %v2583_v37 }
 0x375   :  { %v2517_v58 = vand.u32 4294901760, %v2516_v5 }
 0x376   :  { %2486 = vmatpush.msrb.mxu2 %v5082_v11  ;;  %v2529_v26 = vsub.f32 %v5109_v34, %v2528_v41  ;;  %v2595_v55 = vsub.f32 %v5197_v33, %v2594_v13 }
 0x378   :  { %2488 = vmatpush.msrb.mxu2 %v5087_v40  ;;  %v2530_v28 = vand.u32 4294901760, %v2529_v26  ;;  %v2509_v26 = vand.u32 4294901760, %v2508_v62  ;;  %v2596_v7 = vand.u32 4294901760, %v2595_v55 }
 0x37a   :  { %2490 = vmatpush.msrb.mxu2 %v5092_v35  ;;  %2531 = vmatpush.msrb.mxu3 %v2530_v28  ;;  %v2589_v28 = vsub.f32 %v5189_v36, %v2588_v15 }
 0x37c   :  { %2492 = vmatpush.msrb.mxu2 %v5100_v3  ;;  %2537 = vmatpush.msrb.mxu3 %v2536_v16  ;;  %v2590_v16 = vand.u32 4294901760, %v2589_v28 }
 0x37e   :  { %2494 = vmatpush.msrb.mxu2 %v5115_v45  ;;  %2543 = vmatpush.msrb.mxu3 %v2542_v4 }
 0x380   :  { %2496 = vmatpush.msrb.mxu2 %v5124_v2  ;;  %2549 = vmatpush.msrb.mxu3 %v2548_v8 }
 0x382   :  { %2498 = vmatpush.msrb.mxu2 %v5140_v12  ;;  %2555 = vmatpush.msrb.mxu3 %v2554_v20 }
 0x384   :  { %2500 = vmatpush.msrb.mxu2 %v5151_v47  ;;  %2561 = vmatpush.msrb.mxu3 %v2560_v0 }
 0x386   :  { %2502 = vmatpush.msrb.mxu2 %v5164_v57  ;;  %2567 = vmatpush.msrb.mxu3 %v2566_v50  ;;  %v2811_v50 = vld [vmem:[%s5666_s9 + $0x20] sm:$0xff] }
 0x387   :  { %v5447_v5 = vand.u32 4294901760, %v2811_v50 }
 0x388   :  { %2504 = vmatpush.msrb.mxu2 %v5175_v21  ;;  %2573 = vmatpush.msrb.mxu3 %v2572_v18 }
 0x389   :  { %2510 = vmatmul.f32.vlgmr.msrb.gmra.mxu2 %v2509_v26 }
 0x38a   :  { %2613 = vmatpush.msra.mxu2 %v5109_v34  ;;  %2579 = vmatpush.msrb.mxu3 %v2578_v48 }
 0x38c   :  { %2616 = vmatpush.msra.mxu2 %v5090_v51  ;;  %2585 = vmatpush.msrb.mxu3 %v2584_v22 }
 0x38e   :  { %2619 = vmatpush.msra.mxu2 %v5095_v46  ;;  %2591 = vmatpush.msrb.mxu3 %v2590_v16  ;;  %v2822_v46 = vld [vmem:[%s5666_s9 + $0x78] sm:$0xff] }
 0x390   :  { %2622 = vmatpush.msra.mxu2 %v5106_v61  ;;  %2597 = vmatpush.msrb.mxu3 %v2596_v7  ;;  %v5318_v61 = vand.u32 4294901760, %v2822_v46 }
 0x391   :  { %2599 = vmatmul.f32.vlgmr.msrb.gmra.mxu3 %v5137_v17  ;;  %2518 = vmatmul.f32.gmra.mxu2 %v2517_v58  ;;  %v2809_v58 = vld [vmem:[%s5666_s9 + $0x10] sm:$0xff] }
 0x392   :  { %2625 = vmatpush.msra.mxu2 %v5118_v39  ;;  %2663 = vmatpush.msra.mxu3 %v5097_v38  ;;  %v2818_v39 = vld [vmem:[%s5666_s9 + $0x58] sm:$0xff] }
 0x393   :  { %3041 = vmatpush.msra.mxu1 %v5318_v61 }
 0x394   :  { %2628 = vmatpush.msra.mxu2 %v5127_v43  ;;  %2665 = vmatpush.msra.mxu3 %v5079_v59 }
 0x396   :  { %2631 = vmatpush.msra.mxu2 %v5143_v63  ;;  %2667 = vmatpush.msra.mxu3 %v5082_v11  ;;  %v5348_v63 = vsub.f32 %v2822_v46, %v5318_v61 }
 0x398   :  { %2634 = vmatpush.msra.mxu2 %v5154_v24  ;;  %2669 = vmatpush.msra.mxu3 %v5087_v40  ;;  %v2878_v4 = vand.u32 4294901760, %v5348_v63 }
 0x399   :  { %2603 = vmatmul.f32.gmra.mxu3 %v5186_v56  ;;  %2983 = vmatpush.msra.mxu0 %v5348_v63 }
 0x39a   :  { %2637 = vmatpush.msra.mxu2 %v5168_v9  ;;  %2671 = vmatpush.msra.mxu3 %v5092_v35  ;;  %v2879_v10 = vsub.f32 %v5348_v63, %v2878_v4 }
 0x39c   :  { %2640 = vmatpush.msra.mxu2 %v5178_v23  ;;  %2673 = vmatpush.msra.mxu3 %v5100_v3 }
 0x39e   :  { %2643 = vmatpush.msra.mxu2 %v5189_v36  ;;  %2675 = vmatpush.msra.mxu3 %v5115_v45 }
 0x3a0   :  { %2646 = vmatpush.msra.mxu2 %v5197_v33  ;;  %2677 = vmatpush.msra.mxu3 %v5124_v2  ;;  %v2812_v33 = vld [vmem:[%s5666_s9 + $0x28] sm:$0xff] }
 0x3a1   :  { %2649 = vmatmul.f32.vlgmr.msra.gmra.mxu2 %v5162_v30  ;;  %v5427_v18 = vand.u32 4294901760, %v2812_v33 }
 0x3a2   :  { %2706 = vmatpush.msrb.mxu2 %v2528_v41  ;;  %2679 = vmatpush.msra.mxu3 %v5140_v12  ;;  %v2817_v41 = vld [vmem:[%s5666_s9 + $0x50] sm:$0xff] }
 0x3a3   :  { %v5337_v43 = vand.u32 4294901760, %v2817_v41 }
 0x3a4   :  { %2710 = vmatpush.msrb.mxu2 %v2534_v31  ;;  %2681 = vmatpush.msra.mxu3 %v5151_v47 }
 0x3a6   :  { %2714 = vmatpush.msrb.mxu2 %v2540_v42  ;;  %2683 = vmatpush.msra.mxu3 %v5164_v57 }
 0x3a8   :  { %2718 = vmatpush.msrb.mxu2 %v2546_v19  ;;  %2685 = vmatpush.msra.mxu3 %v5175_v21  ;;  %v2816_v19 = vld [vmem:[%s5666_s9 + $0x48] sm:$0xff] }
 0x3a9   :  { %2689 = vmatmul.f32.vlgmr.msra.gmra.mxu3 %v2507_v32  ;;  %2654 = vmatmul.f32.gmra.mxu2 %v5208_v49  ;;  %v5357_v24 = vand.u32 4294901760, %v2816_v19 }
 0x3aa   :  { %2722 = vmatpush.msrb.mxu2 %v2552_v1  ;;  %2765 = vmatpush.msrb.mxu3 %v5097_v38  ;;  %v2821_v38 = vld [vmem:[%s5666_s9 + $0x70] sm:$0xff] }
 0x3ab   :  { %v5320_v34 = vand.u32 4294901760, %v2821_v38 }
 0x3ac   :  { %2726 = vmatpush.msrb.mxu2 %v2558_v52  ;;  %2767 = vmatpush.msrb.mxu3 %v5079_v59 }
 0x3ad   :  { %v5351_v1 = vsub.f32 %v2821_v38, %v5320_v34  ;;  %3043 = vmatpush.msra.mxu1 %v5320_v34 }
 0x3ae   :  { %2730 = vmatpush.msrb.mxu2 %v2564_v27  ;;  %2769 = vmatpush.msrb.mxu3 %v5082_v11 }
 0x3af   :  { %v2884_v14 = vand.u32 4294901760, %v5351_v1  ;;  %2986 = vmatpush.msra.mxu0 %v5351_v1 }
 0x3b0   :  { %2734 = vmatpush.msrb.mxu2 %v2570_v54  ;;  %2771 = vmatpush.msrb.mxu3 %v5087_v40  ;;  %v5379_v54 = vsub.f32 %v2816_v19, %v5357_v24 }
 0x3b1   :  { %2695 = vmatmul.f32.gmra.mxu3 %v2515_v60  ;;  %v2885_v32 = vsub.f32 %v5351_v1, %v2884_v14  ;;  %v2810_v60 = vld [vmem:[%s5666_s9 + $0x18] sm:$0xff] }
 0x3b2   :  { %2738 = vmatpush.msrb.mxu2 %v2576_v25  ;;  %2773 = vmatpush.msrb.mxu3 %v5092_v35  ;;  %v2813_v25 = vld [vmem:[%s5666_s9 + $0x30] sm:$0xff]  ;;  %v2914_v49 = vand.u32 4294901760, %v5379_v54 }
 0x3b3   :  { %v2886_v0 = vand.u32 4294901760, %v2885_v32 }
 0x3b4   :  { %2742 = vmatpush.msrb.mxu2 %v2582_v44  ;;  %2775 = vmatpush.msrb.mxu3 %v5100_v3  ;;  %v2820_v3 = vld [vmem:[%s5666_s9 + $0x68] sm:$0xff]  ;;  %v2880_v44 = vand.u32 4294901760, %v2879_v10  ;;  %v2915_v7 = vsub.f32 %v5379_v54, %v2914_v49  ;;  %v5480_v10 = vand.u32 4294901760, %v2809_v58 }
 0x3b5   :  { %v5322_v31 = vand.u32 4294901760, %v2820_v3 }
 0x3b6   :  { %2746 = vmatpush.msrb.mxu2 %v2588_v15  ;;  %2777 = vmatpush.msrb.mxu3 %v5115_v45  ;;  %v2819_v45 = vld [vmem:[%s5666_s9 + $0x60] sm:$0xff]  ;;  %v5423_v15 = vand.u32 4294901760, %v2814_v29 }
 0x3b7   :  { %v5333_v42 = vand.u32 4294901760, %v2819_v45  ;;  %3045 = vmatpush.msra.mxu1 %v5322_v31 }
 0x3b8   :  { %2750 = vmatpush.msrb.mxu2 %v2594_v13  ;;  %2779 = vmatpush.msrb.mxu3 %v5124_v2  ;;  %v5335_v2 = vand.u32 4294901760, %v2818_v39  ;;  %v5425_v13 = vand.u32 4294901760, %v2813_v25  ;;  %v5441_v22 = vsub.f32 %v2814_v29, %v5423_v15  ;;  %v2807_v29 = vld [vmem:[%s5666_s9] sm:$0xff] }
 0x3b9   :  { %2752 = vmatmul.f32.vlgmr.msrb.gmra.mxu2 %v5137_v17  ;;  %v5361_v52 = vsub.f32 %v2819_v45, %v5333_v42  ;;  %3047 = vmatpush.msra.mxu1 %v5333_v42 }
 0x3ba   :  { %2781 = vmatpush.msrb.mxu3 %v5140_v12  ;;  %2828 = vmatpush.msra.mxu2 %v5318_v61  ;;  %v5364_v30 = vsub.f32 %v2818_v39, %v5335_v2  ;;  %v5445_v55 = vsub.f32 %v2813_v25, %v5425_v13 }
 0x3bb   :  { %3049 = vmatpush.msra.mxu1 %v5335_v2 }
 0x3bc   :  { %2783 = vmatpush.msrb.mxu3 %v5151_v47  ;;  %v5354_v47 = vsub.f32 %v2820_v3, %v5322_v31  ;;  %2830 = vmatpush.msra.mxu2 %v5320_v34  ;;  %v2902_v23 = vand.u32 4294901760, %v5364_v30  ;;  %v2926_v3 = vand.u32 4294901760, %v5441_v22 }
 0x3bd   :  { %3051 = vmatpush.msra.mxu1 %v5337_v43 }
 0x3be   :  { %2785 = vmatpush.msrb.mxu3 %v5164_v57  ;;  %v5367_v57 = vsub.f32 %v2817_v41, %v5337_v43  ;;  %v2890_v27 = vand.u32 4294901760, %v5354_v47  ;;  %2832 = vmatpush.msra.mxu2 %v5322_v31  ;;  %v2903_v62 = vsub.f32 %v5364_v30, %v2902_v23  ;;  %v2808_v41 = vld [vmem:[%s5666_s9 + $0x8] sm:$0xff]  ;;  %v2927_v25 = vsub.f32 %v5441_v22, %v2926_v3 }
 0x3bf   :  { %2989 = vmatpush.msra.mxu0 %v5354_v47  ;;  %3053 = vmatpush.msra.mxu1 %v5357_v24 }
 0x3c0   :  { %2787 = vmatpush.msrb.mxu3 %v5175_v21  ;;  %v2896_v21 = vand.u32 4294901760, %v5361_v52  ;;  %v2908_v36 = vand.u32 4294901760, %v5367_v57  ;;  %2834 = vmatpush.msra.mxu2 %v5333_v42  ;;  %v2904_v38 = vand.u32 4294901760, %v2903_v62 }
 0x3c1   :  { %2789 = vmatmul.f32.vlgmr.msrb.gmra.mxu3 %v5137_v17  ;;  %2756 = vmatmul.f32.gmra.mxu2 %v5186_v56  ;;  %v2815_v17 = vld [vmem:[%s5666_s9 + $0x40] sm:$0xff]  ;;  %s3894_s9 = smov 32  }
 0x3c2   :  { %v5369_v9 = vand.u32 4294901760, %v2815_v17  ;;  %v2897_v6 = vsub.f32 %v5361_v52, %v2896_v21  ;;  %2881 = vmatpush.msra.mxu3 %v2880_v44  ;;  %2836 = vmatpush.msra.mxu2 %v5335_v2  ;;  %v2909_v37 = vsub.f32 %v5367_v57, %v2908_v36  ;;  %v5496_v44 = vand.u32 4294901760, %v2808_v41 }
 0x3c3   :  { %2992 = vmatpush.msra.mxu0 %v5361_v52 }
 0x3c4   :  { %v5397_v20 = vsub.f32 %v2815_v17, %v5369_v9  ;;  %2887 = vmatpush.msra.mxu3 %v2886_v0  ;;  %v2898_v28 = vand.u32 4294901760, %v2897_v6  ;;  %2838 = vmatpush.msra.mxu2 %v5337_v43  ;;  %v2910_v19 = vand.u32 4294901760, %v2909_v37  ;;  %v2932_v17 = vand.u32 4294901760, %v5445_v55 }
 0x3c5   :  { %2995 = vmatpush.msra.mxu0 %v5364_v30  ;;  %3055 = vmatpush.msra.mxu1 %v5369_v9  ;;  %v5506_v37 = vsub.f32 %v2809_v58, %v5480_v10  ;;  %v5520_v58 = vsub.f32 %v2808_v41, %v5496_v44 }
 0x3c6   :  { %v2920_v26 = vand.u32 4294901760, %v5397_v20  ;;  %2840 = vmatpush.msra.mxu2 %v5357_v24 }
 0x3c7   :  { %2998 = vmatpush.msra.mxu0 %v5367_v57  ;;  %3057 = vmatpush.msra.mxu1 %v5423_v15 }
 0x3c8   :  { %v2921_v39 = vsub.f32 %v5397_v20, %v2920_v26  ;;  %2842 = vmatpush.msra.mxu2 %v5369_v9 }
 0x3c9   :  { %2793 = vmatmul.f32.gmra.mxu3 %v5186_v56  ;;  %v2891_v56 = vsub.f32 %v5354_v47, %v2890_v27  ;;  %3001 = vmatpush.msra.mxu0 %v5379_v54  ;;  %v5609_v47 = vld [vmem:[#allocation2 + $0x8] sm:$0xff] }
 0x3ca   :  { %2844 = vmatpush.msra.mxu2 %v5423_v15  ;;  %v2922_v6 = vand.u32 4294901760, %v2921_v39  ;;  %3059 = vmatpush.msra.mxu1 %v5425_v13 }
 0x3cb   :  { %v2892_v53 = vand.u32 4294901760, %v2891_v56  ;;  %v2916_v56 = vand.u32 4294901760, %v2915_v7  ;;  %3004 = vmatpush.msra.mxu0 %v5397_v20  ;;  %v2928_v7 = vand.u32 4294901760, %v2927_v25  ;;  %v2962_v25 = vand.u32 4294901760, %v5520_v58 }
 0x3cc   :  { %2846 = vmatpush.msra.mxu2 %v5425_v13  ;;  %3061 = vmatpush.msra.mxu1 %v5427_v18 }
 0x3cd   :  { %2893 = vmatpush.msra.mxu3 %v2892_v53  ;;  %3007 = vmatpush.msra.mxu0 %v5441_v22 }
 0x3ce   :  { %2848 = vmatpush.msra.mxu2 %v5427_v18  ;;  %3063 = vmatpush.msra.mxu1 %v5447_v5 }
 0x3cf   :  { %2899 = vmatpush.msra.mxu3 %v2898_v28  ;;  %3010 = vmatpush.msra.mxu0 %v5445_v55 }
 0x3d0   :  { %2850 = vmatpush.msra.mxu2 %v5447_v5 }
 0x3d1   :  { %2905 = vmatpush.msra.mxu3 %v2904_v38 }
 0x3d3   :  { %2911 = vmatpush.msra.mxu3 %v2910_v19  ;;  %v2956_v19 = vand.u32 4294901760, %v5506_v37 }
 0x3d5   :  { %2917 = vmatpush.msra.mxu3 %v2916_v56 }
 0x3d7   :  { %2923 = vmatpush.msra.mxu3 %v2922_v6  ;;  %v2957_v6 = vsub.f32 %v5506_v37, %v2956_v19 }
 0x3d9   :  { %2929 = vmatpush.msra.mxu3 %v2928_v7  ;;  %v2958_v7 = vand.u32 4294901760, %v2957_v6  ;;  %v3240_v6 = vld [vmem:[#allocation8 + $0x8] sm:$0xff] }
 0x40c   :  { %v5299_v59 = vpop.f32.mrf.mxu2 }
 0x414   :  { %v5301_v11 = vpop.f32.mrf.mxu3  ;;  %v5303_v40 = vpop.f32.mrf.mxu2 }
 0x415   :  { %v2601_v16 = vadd.f32 %v5301_v11, %v5299_v59  ;;  %v5462_v59 = vsub.f32 %v2812_v33, %v5427_v18  ;;  %v5464_v11 = vand.u32 4294901760, %v2810_v60 }
 0x417   :  { %v2938_v33 = vand.u32 4294901760, %v5462_v59  ;;  %3013 = vmatpush.msra.mxu0 %v5462_v59  ;;  %2852 = vmatpush.msra.mxu2 %v5464_v11 }
 0x418   :  { %3065 = vmatpush.msra.mxu1 %v5464_v11 }
 0x419   :  { %2854 = vmatpush.msra.mxu2 %v5480_v10 }
 0x41a   :  { %3067 = vmatpush.msra.mxu1 %v5480_v10 }
 0x41b   :  { %2856 = vmatpush.msra.mxu2 %v5496_v44 }
 0x41c   :  { %v5305_v51 = vpop.f32.mrf.mxu3  ;;  %3069 = vmatpush.msra.mxu1 %v5496_v44 }
 0x41d   :  { %v2605_v28 = vadd.f32 %v5305_v51, %v5303_v40 }
 0x424   :  { %v5307_v35 = vpop.f32.mrf.mxu2 }
 0x425   :  { %v2651_v45 = vadd.f32 %v5307_v35, %v2601_v16  ;;  %v5478_v35 = vsub.f32 %v2811_v50, %v5447_v5  ;;  %v2933_v50 = vsub.f32 %v5445_v55, %v2932_v17 }
 0x427   :  { %v2944_v53 = vand.u32 4294901760, %v5478_v35  ;;  %3016 = vmatpush.msra.mxu0 %v5478_v35 }
 0x429   :  { %v2945_v39 = vsub.f32 %v5478_v35, %v2944_v53 }
 0x42c   :  { %v5345_v12 = vpop.f32.mrf.mxu3  ;;  %v5382_v8 = vpop.f32.mrf.mxu2 }
 0x42d   :  { %v2691_v32 = vadd.f32 %v5345_v12, %v2651_v45  ;;  %v5494_v12 = vsub.f32 %v2810_v60, %v5464_v11  ;;  %v5508_v60 = vand.u32 4294901760, %v2807_v29  ;;  %v2656_v40 = vadd.f32 %v5382_v8, %v2605_v28 }
 0x42e   :  { %v2934_v45 = vand.u32 4294901760, %v2933_v50 }
 0x42f   :  { %v2950_v38 = vand.u32 4294901760, %v5494_v12  ;;  %v5531_v41 = vsub.f32 %v2807_v29, %v5508_v60  ;;  %v2946_v29 = vand.u32 4294901760, %v2945_v39  ;;  %3019 = vmatpush.msra.mxu0 %v5494_v12  ;;  %2858 = vmatpush.msra.mxu2 %v5508_v60 }
 0x430   :  { %2935 = vmatpush.msra.mxu3 %v2934_v45  ;;  %3071 = vmatpush.msra.mxu1 %v5508_v60 }
 0x431   :  { %v2951_v56 = vsub.f32 %v5494_v12, %v2950_v38  ;;  %3022 = vmatpush.msra.mxu0 %v5506_v37  ;;  %3088 = vmatpush.msrb.mxu2 %v2878_v4 }
 0x433   :  { %v2952_v28 = vand.u32 4294901760, %v2951_v56  ;;  %3025 = vmatpush.msra.mxu0 %v5520_v58  ;;  %3092 = vmatpush.msrb.mxu2 %v2884_v14 }
 0x434   :  { %v5438_v48 = vpop.f32.mrf.mxu3 }
 0x435   :  { %v2697_v8 = vadd.f32 %v5438_v48, %v2656_v40  ;;  %3028 = vmatpush.msra.mxu0 %v5531_v41  ;;  %3096 = vmatpush.msrb.mxu2 %v2890_v27 }
 0x437   :  { %3100 = vmatpush.msrb.mxu2 %v2896_v21  ;;  %v3740_v21 = vld [vmem:[%s5667_s10] ss:$0 sm:$0xff]  ;;  %s3895_s10 = smov 96  }
 0x439   :  { %3104 = vmatpush.msrb.mxu2 %v2902_v23 }
 0x43b   :  { %3108 = vmatpush.msrb.mxu2 %v2908_v36 }
 0x43c   :  { %v2753_v46 = vpop.f32.mrf.mxu2 }
 0x43d   :  { %v2754_v0 = vadd.f32 %v2753_v46, %v2691_v32  ;;  %v2939_v46 = vsub.f32 %v5462_v59, %v2938_v33  ;;  %3112 = vmatpush.msrb.mxu2 %v2914_v49 }
 0x43f   :  { %v2940_v32 = vand.u32 4294901760, %v2939_v46  ;;  %3116 = vmatpush.msrb.mxu2 %v2920_v26 }
 0x441   :  { %2941 = vmatpush.msra.mxu3 %v2940_v32  ;;  %3120 = vmatpush.msrb.mxu2 %v2926_v3 }
 0x443   :  { %2947 = vmatpush.msra.mxu3 %v2946_v29  ;;  %3124 = vmatpush.msrb.mxu2 %v2932_v17 }
 0x444   :  { %v2790_v62 = vpop.f32.mrf.mxu3  ;;  %v2757_v51 = vpop.f32.mrf.mxu2 }
 0x445   :  { %v2791_v16 = vadd.f32 %v2790_v62, %v2754_v0  ;;  %v2758_v0 = vadd.f32 %v2757_v51, %v2697_v8  ;;  %v2968_v62 = vand.u32 4294901760, %v5531_v41  ;;  %2953 = vmatpush.msra.mxu3 %v2952_v28  ;;  %3128 = vmatpush.msrb.mxu2 %v2938_v33 }
 0x447   :  { %2799 = vrot.lane.b32.xlu1 %v2791_v16, %s3894_s9  ;;  %v2963_v16 = vsub.f32 %v5520_v58, %v2962_v25  ;;  %v2969_v46 = vsub.f32 %v5531_v41, %v2968_v62  ;;  %2959 = vmatpush.msra.mxu3 %v2958_v7 }
 0x448   :  { %3132 = vmatpush.msrb.mxu2 %v2944_v53 }
 0x449   :  { %v2964_v40 = vand.u32 4294901760, %v2963_v16  ;;  %v2970_v51 = vand.u32 4294901760, %v2969_v46 }
 0x44a   :  { %3136 = vmatpush.msrb.mxu2 %v2950_v38 }
 0x44b   :  { %2965 = vmatpush.msra.mxu3 %v2964_v40 }
 0x44c   :  { %v2794_v48 = vpop.f32.mrf.mxu3  ;;  %3140 = vmatpush.msrb.mxu2 %v2956_v19 }
 0x44d   :  { %v2795_v50 = vadd.f32 %v2794_v48, %v2758_v0  ;;  %2971 = vmatpush.msra.mxu3 %v2970_v51 }
 0x44e   :  { %3144 = vmatpush.msrb.mxu2 %v2962_v25 }
 0x44f   :  { %2801 = vrot.lane.b32.xlu1 %v2795_v50, %s3894_s9  ;;  %3159 = vmatpush.msrb.mxu3 %v5318_v61  ;;  %v3239_v50 = vld [vmem:[#allocation8] sm:$0xff] }
 0x450   :  { %3148 = vmatpush.msrb.mxu2 %v2968_v62  ;;  %v3273_v62 = vand.u32 4294901760, %v3240_v6  ;;  %v3275_v16 = vand.u32 4294901760, %v3239_v50 }
 0x451   :  { %3161 = vmatpush.msrb.mxu3 %v5320_v34  ;;  %v5605_v34 = vld [vmem:[#allocation2] sm:$0xff] }
 0x452   :  { %v3319_v28 = vsub.f32 %v3240_v6, %v3273_v62  ;;  %v3325_v46 = vsub.f32 %v3239_v50, %v3275_v16 }
 0x453   :  { %3163 = vmatpush.msrb.mxu3 %v5322_v31 }
 0x454   :  { %v3320_v7 = vand.u32 4294901760, %v3319_v28  ;;  %v3326_v51 = vand.u32 4294901760, %v3325_v46 }
 0x455   :  { %3165 = vmatpush.msrb.mxu3 %v5333_v42 }
 0x456   :  { %v3321_v40 = vsub.f32 %v3319_v28, %v3320_v7 }
 0x457   :  { %3167 = vmatpush.msrb.mxu3 %v5335_v2 }
 0x459   :  { %3169 = vmatpush.msrb.mxu3 %v5337_v43 }
 0x45b   :  { %3171 = vmatpush.msrb.mxu3 %v5357_v24 }
 0x45d   :  { %3173 = vmatpush.msrb.mxu3 %v5369_v9 }
 0x45f   :  { %3175 = vmatpush.msrb.mxu3 %v5423_v15 }
 0x461   :  { %3177 = vmatpush.msrb.mxu3 %v5425_v13  ;;  %v3242_v13 = vld [vmem:[#allocation8 + $0x18] sm:$0xff] }
 0x462   :  { %v5616_v26 = vand.u32 4294901760, %v3242_v13 }
 0x463   :  { %3179 = vmatpush.msrb.mxu3 %v5427_v18  ;;  %v3241_v18 = vld [vmem:[#allocation8 + $0x10] sm:$0xff] }
 0x464   :  { %v5618_v22 = vand.u32 4294901760, %v3241_v18  ;;  %v3307_v3 = vsub.f32 %v3242_v13, %v5616_v26  ;;  %3270 = vmatpush.msrb.mxu0 %v5616_v26 }
 0x465   :  { %3181 = vmatpush.msrb.mxu3 %v5447_v5 }
 0x466   :  { %v3313_v59 = vsub.f32 %v3241_v18, %v5618_v22  ;;  %v3308_v17 = vand.u32 4294901760, %v3307_v3  ;;  %3272 = vmatpush.msrb.mxu0 %v5618_v22 }
 0x467   :  { %3183 = vmatpush.msrb.mxu3 %v5464_v11 }
 0x468   :  { %v3314_v35 = vand.u32 4294901760, %v3313_v59  ;;  %v3309_v12 = vsub.f32 %v3307_v3, %v3308_v17  ;;  %3274 = vmatpush.msrb.mxu0 %v3273_v62 }
 0x469   :  { %3185 = vmatpush.msrb.mxu3 %v5480_v10 }
 0x46a   :  { %v3310_v38 = vand.u32 4294901760, %v3309_v12  ;;  %3276 = vmatpush.msrb.mxu0 %v3275_v16 }
 0x46b   :  { %3187 = vmatpush.msrb.mxu3 %v5496_v44  ;;  %v3315_v44 = vsub.f32 %v3313_v59, %v3314_v35 }
 0x46c   :  { %3311 = vmatpush.msrb.mxu1 %v3310_v38 }
 0x46d   :  { %3189 = vmatpush.msrb.mxu3 %v5508_v60  ;;  %v3316_v58 = vand.u32 4294901760, %v3315_v44 }
 0x46f   :  { %3317 = vmatpush.msrb.mxu1 %v3316_v58 }
 0x4b9   :  { %v2800_v61 = vpop.permute.xlu1 %2799 }
 0x4ba   :  { %v2805_v31 = vsel %vm192_vm0, %v5605_v34, %v2800_v61  ;;  %v3322_v61 = vand.u32 4294901760, %v3321_v40 }
 0x4bb   :  { %v2859_v42 = vand.u32 4294901760, %v2805_v31 }
 0x4bc   :  { %3323 = vmatpush.msrb.mxu1 %v3322_v61 }
 0x4bd   :  { %v2860_v2 = vsub.f32 %v2805_v31, %v2859_v42  ;;  %2973 = vmatmul.f32.vlgmr.msra.gmra.mxu3 %v2859_v42  ;;  %v3327_v31 = vsub.f32 %v3325_v46, %v3326_v51 }
 0x4be   :  { %3457 = vmatpush.msra.mxu3 %v5616_v26 }
 0x4bf   :  { %v2861_v43 = vand.u32 4294901760, %v2860_v2  ;;  %3031 = vmatmul.f32.vlgmr.msra.gmra.mxu0 %v2860_v2 }
 0x4c0   :  { %3459 = vmatpush.msra.mxu3 %v5618_v22  ;;  %3353 = vmatpush.msra.mxu0 %v3307_v3 }
 0x4c1   :  { %v2862_v63 = vsub.f32 %v2860_v2, %v2861_v43  ;;  %v2802_v1 = vpop.permute.xlu1 %2801  ;;  %3075 = vmatmul.f32.vlgmr.msra.gmra.mxu1 %v2861_v43 }
 0x4c2   :  { %v2806_v24 = vsel %vm192_vm0, %v5609_v47, %v2802_v1  ;;  %3461 = vmatpush.msra.mxu3 %v3273_v62  ;;  %3356 = vmatpush.msra.mxu0 %v3313_v59 }
 0x4c3   :  { %v2863_v52 = vand.u32 4294901760, %v2862_v63  ;;  %v2867_v30 = vand.u32 4294901760, %v2806_v24 }
 0x4c4   :  { %3463 = vmatpush.msra.mxu3 %v3275_v16  ;;  %3359 = vmatpush.msra.mxu0 %v3319_v28 }
 0x4c5   :  { %v2868_v57 = vsub.f32 %v2806_v24, %v2867_v30  ;;  %2864 = vmatmul.f32.vlgmr.msra.gmra.mxu2 %v2863_v52  ;;  %2977 = vmatmul.f32.gmra.mxu3 %v2867_v30 }
 0x4c6   :  { %3422 = vmatpush.msra.mxu2 %v3308_v17  ;;  %3362 = vmatpush.msra.mxu0 %v3325_v46 }
 0x4c7   :  { %v2869_v9 = vand.u32 4294901760, %v2868_v57  ;;  %3036 = vmatmul.f32.gmra.mxu0 %v2868_v57 }
 0x4c8   :  { %3426 = vmatpush.msra.mxu2 %v3314_v35 }
 0x4c9   :  { %v2870_v4 = vsub.f32 %v2868_v57, %v2869_v9  ;;  %3081 = vmatmul.f32.gmra.mxu1 %v2869_v9 }
 0x4ca   :  { %3430 = vmatpush.msra.mxu2 %v3320_v7 }
 0x4cb   :  { %v2871_v14 = vand.u32 4294901760, %v2870_v4 }
 0x4cc   :  { %3434 = vmatpush.msra.mxu2 %v3326_v51 }
 0x4cd   :  { %2872 = vmatmul.f32.gmra.mxu2 %v2871_v14  ;;  %3191 = vmatmul.f32.vlgmr.msrb.gmra.mxu3 %v2859_v42 }
 0x4d5   :  { %3150 = vmatmul.f32.vlgmr.msrb.gmra.mxu2 %v2859_v42  ;;  %3195 = vmatmul.f32.gmra.mxu3 %v2867_v30  ;;  %v3328_v42 = vand.u32 4294901760, %v3327_v31 }
 0x4d7   :  { %3329 = vmatpush.msrb.mxu1 %v3328_v42 }
 0x4d9   :  { %3387 = vmatpush.msra.mxu1 %v5616_v26 }
 0x4db   :  { %3389 = vmatpush.msra.mxu1 %v5618_v22 }
 0x4dd   :  { %3154 = vmatmul.f32.gmra.mxu2 %v2867_v30  ;;  %3391 = vmatpush.msra.mxu1 %v3273_v62 }
 0x4df   :  { %3393 = vmatpush.msra.mxu1 %v3275_v16 }
 0x53c   :  { %v3032_v49 = vpop.f32.mrf.mxu0 }
 0x53e   :  { %v3076_v11 = vpop.f32.mrf.mxu1 }
 0x540   :  { %v2974_v27 = vpop.f32.mrf.mxu3 }
 0x544   :  { %v3037_v45 = vpop.f32.mrf.mxu0 }
 0x546   :  { %v3082_v8 = vpop.f32.mrf.mxu1 }
 0x548   :  { %v2865_v23 = vpop.f32.mrf.mxu2  ;;  %v2978_v36 = vpop.f32.mrf.mxu3 }
 0x549   :  { %v2866_v54 = vadd.f32 %v3740_v21, %v2865_v23 }
 0x54b   :  { %v2975_v20 = vadd.f32 %v2974_v27, %v2866_v54 }
 0x54d   :  { %v3033_v55 = vadd.f32 %v3032_v49, %v2975_v20 }
 0x54f   :  { %v3077_v10 = vadd.f32 %v3076_v11, %v3033_v55  ;;  %v3741_v11 = vld [vmem:[%s5669_s12] ss:$0 sm:$0xff] }
 0x550   :  { %v2873_v15 = vpop.f32.mrf.mxu2  ;;  %v3192_v53 = vpop.f32.mrf.mxu3 }
 0x551   :  { %v2874_v5 = vadd.f32 %v3740_v21, %v2873_v15 }
 0x553   :  { %v2979_v33 = vadd.f32 %v2978_v36, %v2874_v5 }
 0x555   :  { %v3038_v39 = vadd.f32 %v3037_v45, %v2979_v33 }
 0x557   :  { %v3083_v32 = vadd.f32 %v3082_v8, %v3038_v39 }
 0x558   :  { %v3151_v37 = vpop.f32.mrf.mxu2  ;;  %v3196_v0 = vpop.f32.mrf.mxu3 }
 0x559   :  { %v3152_v60 = vadd.f32 %v3151_v37, %v3077_v10 }
 0x55b   :  { %v5626_v19 = vadd.f32 %v3192_v53, %v3152_v60 }
 0x55d   :  { %v3237_v41 = vmax.f32 %v5626_v19, 0.0  ;;  %v3639_v54 = vmul.f32 -1.442695, %v5626_v19 }
 0x55f   :  { %3249 = vrot.lane.b32.xlu2 %v3237_v41, %s3895_s10  ;;  %3744 = vpow2.f32 %v3639_v54 }
 0x560   :  { %v3155_v56 = vpop.f32.mrf.mxu2 }
 0x561   :  { %v3156_v25 = vadd.f32 %v3155_v56, %v3083_v32 }
 0x563   :  { %v3197_v48 = vadd.f32 %v3196_v0, %v3156_v25 }
 0x565   :  { %v3238_v29 = vmax.f32 %v3197_v48, 0.0  ;;  %v3640_v36 = vmul.f32 -1.442695, %v3197_v48  ;;  %v3745_v20 = vpop.eup %3744 }
 0x566   :  { %v3205_v49 = vadd.f32 1.0, %v3745_v20 }
 0x567   :  { %3251 = vrot.lane.b32.xlu2 %v3238_v29, %s3895_s10  ;;  %3746 = vpow2.f32 %v3640_v36 }
 0x568   :  { %3748 = vrcp.f32 %v3205_v49  ;;  %v3218_v53 = vand.u32 2147483648, %v3205_v49  ;;  %vm3212_vm4 = vweird.f32 %v3205_v49  ;;  %v3216_v37 = vand.u32 2147483647, %v3205_v49 }
 0x56a   :  { %v3219_v19 = vor.u32 1.1754944e-38, %v3218_v53  ;;  %vm3217_vm6 = vcmp.eq.f32.partialorder %v3216_v37, 8.507059e+37 }
 0x56d   :  { %v3747_v15 = vpop.eup %3746 }
 0x56e   :  { %v3206_v13 = vadd.f32 1.0, %v3747_v15  ;;  %v3749_v18 = vpop.eup %3748 }
 0x56f   :  { %v3208_v22 = vmul.f32 %v3749_v18, %v3205_v49  ;;  %vm3213_vm3 = vweird.f32 %v3749_v18 }
 0x570   :  { %3750 = vrcp.f32 %v3206_v13  ;;  %vm3214_vm5 = vmor %vm3212_vm4, %vm3213_vm3  ;;  %v3233_v29 = vand.u32 2147483648, %v3206_v13  ;;  %vm3227_vm8 = vweird.f32 %v3206_v13  ;;  %v3231_v50 = vand.u32 2147483647, %v3206_v13 }
 0x571   :  { %v3209_v5 = vsub.f32 1.0, %v3208_v22 }
 0x572   :  { %v3234_v40 = vor.u32 1.1754944e-38, %v3233_v29  ;;  %vm3232_vm10 = vcmp.eq.f32.partialorder %v3231_v50, 8.507059e+37 }
 0x573   :  { %v3210_v17 = vmul.f32 %v3749_v18, %v3209_v5 }
 0x575   :  { %v3211_v12 = vadd.f32 %v3749_v18, %v3210_v17 }
 0x576   :  { %v3751_v3 = vpop.eup %3750 }
 0x577   :  { %v3223_v35 = vmul.f32 %v3751_v3, %v3206_v13  ;;  %v3215_v38 = vsel %vm3214_vm5, %v3749_v18, %v3211_v12  ;;  %vm3228_vm7 = vweird.f32 %v3751_v3 }
 0x578   :  { %v3220_v32 = vsel %vm3217_vm6, %v3219_v19, %v3215_v38  ;;  %vm3229_vm9 = vmor %vm3227_vm8, %vm3228_vm7 }
 0x579   :  { %v3224_v44 = vsub.f32 1.0, %v3223_v35  ;;  %v3475_v62 = vsub.f32 1.0, %v3220_v32 }
 0x57b   :  { %v3225_v58 = vmul.f32 %v3751_v3, %v3224_v44  ;;  %v3477_v31 = vmul.f32 %v5605_v34, %v3475_v62  ;;  %v3896_v34 = vmov 32.0  }
 0x57c   :  { %3752 = vrcp.f32 %v3896_v34 }
 0x57d   :  { %v3226_v0 = vadd.f32 %v3751_v3, %v3225_v58 }
 0x57f   :  { %v3230_v7 = vsel %vm3229_vm9, %v3751_v3, %v3226_v0 }
 0x5b9   :  { %v3250_v2 = vpop.permute.xlu2 %3249 }
 0x5ba   :  { %v3253_v43 = vsel %vm192_vm0, %v3250_v2, 0  ;;  %v3235_v2 = vsel %vm3232_vm10, %v3234_v40, %v3230_v7 }
 0x5bb   :  { %v3277_v63 = vand.u32 4294901760, %v3253_v43 }
 0x5bd   :  { %v3278_v1 = vsub.f32 %v3253_v43, %v3277_v63  ;;  %3331 = vmatmul.f32.vlgmr.msrb.gmra.mxu1 %v3277_v63  ;;  %3436 = vmatmul.f32.vlgmr.msra.gmra.mxu2 %v3277_v63 }
 0x5be   :  { %3465 = vmatmul.f32.vlgmr.msra.gmra.mxu3 %v3277_v63 }
 0x5bf   :  { %v3279_v24 = vand.u32 4294901760, %v3278_v1 }
 0x5c1   :  { %v3280_v52 = vsub.f32 %v3278_v1, %v3279_v24  ;;  %v3252_v30 = vpop.permute.xlu2 %3251 }
 0x5c2   :  { %v3255_v57 = vsel %vm192_vm0, %v3252_v30, 0  ;;  %v3476_v30 = vsub.f32 1.0, %v3235_v2 }
 0x5c3   :  { %v3281_v9 = vand.u32 4294901760, %v3280_v52  ;;  %v3285_v4 = vand.u32 4294901760, %v3255_v57 }
 0x5c5   :  { %v3286_v14 = vsub.f32 %v3255_v57, %v3285_v4  ;;  %3282 = vmatmul.f32.vlgmr.msrb.gmra.mxu0 %v3281_v9  ;;  %3335 = vmatmul.f32.gmra.mxu1 %v3285_v4 }
 0x5c6   :  { %3440 = vmatmul.f32.gmra.mxu2 %v3285_v4  ;;  %3469 = vmatmul.f32.gmra.mxu3 %v3285_v4 }
 0x5c7   :  { %v3287_v27 = vand.u32 4294901760, %v3286_v14 }
 0x5c9   :  { %v3288_v21 = vsub.f32 %v3286_v14, %v3287_v27 }
 0x5cb   :  { %v3289_v23 = vand.u32 4294901760, %v3288_v21 }
 0x5cd   :  { %3290 = vmatmul.f32.gmra.mxu0 %v3289_v23  ;;  %3397 = vmatmul.f32.vlgmr.msra.gmra.mxu1 %v3279_v24  ;;  %v3753_v23 = vpop.eup %3752 }
 0x5ce   :  { %v3488_v54 = vmul.f32 32.0, %v3753_v23  ;;  %vm3492_vm11 = vweird.f32 %v3753_v23 }
 0x5d0   :  { %v3489_v36 = vsub.f32 1.0, %v3488_v54 }
 0x5d2   :  { %v3490_v20 = vmul.f32 %v3753_v23, %v3489_v36 }
 0x5d4   :  { %v3491_v49 = vadd.f32 %v3753_v23, %v3490_v20 }
 0x5d5   :  { %3365 = vmatmul.f32.vlgmr.msra.gmra.mxu0 %v3278_v1  ;;  %3403 = vmatmul.f32.gmra.mxu1 %v3287_v27 }
 0x5d6   :  { %v3493_v15 = vsel %vm3492_vm11, %v3753_v23, %v3491_v49 }
 0x5dd   :  { %3370 = vmatmul.f32.gmra.mxu0 %v3286_v14  ;;  %v3478_v14 = vmul.f32 %v5609_v47, %v3476_v30 }
 0x63a   :  { %v3332_v26 = vpop.f32.mrf.mxu1 }
 0x640   :  { %v3437_v8 = vpop.f32.mrf.mxu2 }
 0x641   :  { %v3466_v48 = vpop.f32.mrf.mxu3 }
 0x642   :  { %v3283_v55 = vpop.f32.mrf.mxu0  ;;  %v3336_v59 = vpop.f32.mrf.mxu1 }
 0x643   :  { %v3284_v33 = vadd.f32 %v3741_v11, %v3283_v55 }
 0x645   :  { %v3333_v60 = vadd.f32 %v3332_v26, %v3284_v33 }
 0x649   :  { %v3441_v1 = vpop.f32.mrf.mxu2  ;;  %v3470_v57 = vpop.f32.mrf.mxu3 }
 0x64a   :  { %v3291_v10 = vpop.f32.mrf.mxu0  ;;  %v3398_v45 = vpop.f32.mrf.mxu1 }
 0x64b   :  { %v3292_v56 = vadd.f32 %v3741_v11, %v3291_v10 }
 0x64d   :  { %v3337_v28 = vadd.f32 %v3336_v59, %v3292_v56 }
 0x652   :  { %v3366_v39 = vpop.f32.mrf.mxu0  ;;  %v3404_v42 = vpop.f32.mrf.mxu1 }
 0x653   :  { %v3367_v41 = vadd.f32 %v3366_v39, %v3333_v60 }
 0x655   :  { %v3399_v25 = vadd.f32 %v3398_v45, %v3367_v41  ;;  %v3742_v41 = vld [vmem:[%s5670_s13] ss:$0 sm:$0xff]  ;;  %s3897_s13 = smov [#allocation10]  }
 0x656   :  { %s3550_s11 = sshll.u32 %s3897_s13, 4  ;;  %s3551_s11 = int_to_ptr.vmem [resolvable:$true] %s3550_s11 }
 0x657   :  { %v3438_v6 = vadd.f32 %v3437_v8, %v3399_v25  ;;  %v3743_v25 = vld [vmem:[%s5671_s14] ss:$0 sm:$0xff] }
 0x659   :  { %v3467_v16 = vadd.f32 %v3466_v48, %v3438_v6 }
 0x65a   :  { %v3371_v46 = vpop.f32.mrf.mxu0 }
 0x65b   :  { %v3372_v51 = vadd.f32 %v3371_v46, %v3337_v28  ;;  %v3473_v61 = vmul.f32 %v3467_v16, %v3220_v32 }
 0x65d   :  { %v3405_v43 = vadd.f32 %v3404_v42, %v3372_v51  ;;  %v3479_v63 = vadd.f32 %v3477_v31, %v3473_v61 }
 0x65f   :  { %v3442_v24 = vadd.f32 %v3441_v1, %v3405_v43  ;;  %v3481_v52 = vsel %vm192_vm0, %v3479_v63, 0.0 }
 0x660   :  { %3482 = vadd.xlane.f32.xlu1 %v3481_v52 }
 0x661   :  { %v3471_v9 = vadd.f32 %v3470_v57, %v3442_v24 }
 0x663   :  { %v3474_v4 = vmul.f32 %v3471_v9, %v3235_v2 }
 0x665   :  { %v3480_v27 = vadd.f32 %v3478_v14, %v3474_v4 }
 0x667   :  { %v3484_v21 = vsel %vm192_vm0, %v3480_v27, 0.0 }
 0x668   :  { %3485 = vadd.xlane.f32.xlu2 %v3484_v21 }
 0x6d3   :  { %v3483_v13 = vpop.xlane.xlu1 %3482 }
 0x6d4   :  { %v3494_v18 = vmul.f32 %v3493_v15, %v3483_v13 }
 0x6d6   :  { %v3496_v26 = vsub.f32 %v3479_v63, %v3494_v18 }
 0x6d8   :  { %v3498_v22 = vmul.f32 %v3496_v26, %v3496_v26 }
 0x6da   :  { %v3500_v55 = vsel %vm192_vm0, %v3498_v22, 0.0 }
 0x6db   :  { %3501 = vadd.xlane.f32.xlu2 %v3500_v55  ;;  %v3486_v47 = vpop.xlane.xlu2 %3485 }
 0x6dc   :  { %v3495_v5 = vmul.f32 %v3493_v15, %v3486_v47 }
 0x6de   :  { %v3497_v3 = vsub.f32 %v3480_v27, %v3495_v5 }
 0x6e0   :  { %v3499_v59 = vmul.f32 %v3497_v3, %v3497_v3 }
 0x6e2   :  { %v3503_v11 = vsel %vm192_vm0, %v3499_v59, 0.0 }
 0x6e3   :  { %3504 = vadd.xlane.f32.xlu1 %v3503_v11 }
 0x74e   :  { %v3502_v17 = vpop.xlane.xlu2 %3501 }
 0x74f   :  { %v3506_v35 = vmul.f32 %v3502_v17, %v3493_v15 }
 0x751   :  { %v3508_v10 = vadd.f32 1e-05, %v3506_v35 }
 0x753   :  { %3754 = vrsqrt.f32 %v3508_v10  ;;  %vm3516_vm13 = vweird.f32 %v3508_v10 }
 0x756   :  { %v3505_v33 = vpop.xlane.xlu1 %3504 }
 0x757   :  { %v3507_v12 = vmul.f32 %v3505_v33, %v3493_v15 }
 0x759   :  { %v3755_v44 = vpop.eup %3754  ;;  %v3509_v53 = vadd.f32 1e-05, %v3507_v12 }
 0x75a   :  { %v3511_v37 = vmul.f32 %v3755_v44, %v3508_v10  ;;  %vm3517_vm12 = vweird.f32 %v3755_v44 }
 0x75b   :  { %3756 = vrsqrt.f32 %v3509_v53  ;;  %vm3518_vm14 = vmor %vm3516_vm13, %vm3517_vm12  ;;  %vm3526_vm1 = vweird.f32 %v3509_v53 }
 0x75c   :  { %v3512_v60 = vmul.f32 %v3755_v44, %v3511_v37 }
 0x75e   :  { %v3513_v38 = vmul.f32 0.5, %v3512_v60 }
 0x760   :  { %v3514_v58 = vsub.f32 1.5, %v3513_v38 }
 0x761   :  { %v3757_v45 = vpop.eup %3756 }
 0x762   :  { %v3515_v39 = vmul.f32 %v3755_v44, %v3514_v58  ;;  %v3521_v19 = vmul.f32 %v3757_v45, %v3509_v53  ;;  %vm3527_vm15 = vweird.f32 %v3757_v45 }
 0x763   :  { %vm3528_vm2 = vmor %vm3526_vm1, %vm3527_vm15 }
 0x764   :  { %v3519_v8 = vsel %vm3518_vm14, %v3755_v44, %v3515_v39  ;;  %v3522_v32 = vmul.f32 %v3757_v45, %v3521_v19 }
 0x765   :  { %v3530_v56 = vmul.f32 %v3519_v8, %v3496_v26 }
 0x766   :  { %v3523_v0 = vmul.f32 0.5, %v3522_v32 }
 0x767   :  { %v3536_v48 = vmul.f32 %v3742_v41, %v3530_v56 }
 0x768   :  { %v3524_v29 = vsub.f32 1.5, %v3523_v0 }
 0x769   :  { %v3542_v6 = vadd.f32 %v3743_v25, %v3536_v48 }
 0x76a   :  { %v3525_v62 = vmul.f32 %v3757_v45, %v3524_v29 }
 0x76b   :  { %3544 = vst.msk [vmem:[#allocation10] sm:$0xff] %vm192_vm0, %v3542_v6 }
 0x76c   :  { %v3529_v50 = vsel %vm3528_vm2, %v3757_v45, %v3525_v62 }
 0x76d   :  { %v3531_v28 = vmul.f32 %v3529_v50, %v3497_v3 }
 0x76f   :  { %v3537_v16 = vmul.f32 %v3742_v41, %v3531_v28 }
 0x771   :  { %v3543_v7 = vadd.f32 %v3743_v25, %v3537_v16 }
 0x773   :  { %3545 = vst.msk [vmem:[#allocation10 + $0x8] sm:$0xff] %vm192_vm0, %v3543_v7 }
 0x774   :  { %3558 = dma.vmem_to_hbm [thread:$0]  %s3551_s11, 256, %s3553_s24, [#allocation4], %s3889_s26, %s3889_s26, %s3890_s27  }
 0x775   :  { %3886 = dma.done.wait [#allocation4], 256  }
 0x776   :  { %3887 = vsyncadd [#allocation4], 4294967040 }
 0x777   :  { %3563 = vsyncpa [#allocation3], 1 }
 0x778   :  { %3564 = vsyncpa [#allocation6], 1 }
 0x779   :  { %3565 = vsyncpa [#allocation9], 1 }
 0x77a   :  { %3566 = vsyncpa [#allocation4], 1 }

</bundles_post_ra>
